<compile_context>
chip_gen: v6e
topology: v6e:2x2x1
jax: 0.10.0
libtpu: 0.0.40
codegen_flags: <defaults>
</compile_context>

<pallas_src>
import jax
import jax.numpy as jnp
from jax.experimental import pallas as pl
from jax.experimental.pallas import tpu as pltpu


LEAKY_SLOPE = 0.01  # PyTorch nn.LeakyReLU() default negative_slope


def _round_up(x, m):
    return ((x + m - 1) // m) * m


def _cdiv(a, b):
    return (a + b - 1) // b


def _vmem_limit_bytes():
    """Per-generation VMEM budget: ~100 MiB on 128-MiB chips (v5e/v6e),
    ~56 MiB on v7x (64 MiB physical).  Conservative fallback if the
    hardware query is unavailable in this environment."""
    try:
        cap = pltpu.get_tpu_info().vmem_capacity_bytes
    except Exception:
        return 48 << 20
    if cap >= (96 << 20):
        return 100 << 20      # v5e / v6e (128 MiB physical)
    return 56 << 20           # v7x (64 MiB physical)


def _pick_tk(H1, max_tk=768):
    """Multiple-of-128 K tile over the 4D hidden axis that minimizes padding
    (ties broken toward the larger tile -> fewer k steps, less accumulator
    read-modify-write traffic).  E.g. H1=3136 -> tk=640 (H1p=3200, 2% pad)."""
    limit = min(max_tk, _round_up(H1, 128))
    best_tk, best_key = 128, None
    for tk in range(128, limit + 1, 128):
        pad = _round_up(H1, tk) - H1
        key = (pad, -tk)
        if best_key is None or key < best_key:
            best_key, best_tk = key, tk
    return best_tk


def encoder_kernel(x_ref, w1_ref, b1_ref, w2_ref, b2_ref, w3_ref, b3_ref,
                   out_ref, acc_ref):
    """Fused MLP encoder, gridded as (m_tiles, k_tiles) with k = 4D axis.

    Per grid step:
      x_ref  : (tm, Dp)   bf16   (constant across k -> DMA'd once per m tile)
      w1_ref : (Dp, tk)   bf16   (k-th column slab, streamed)
      b1_ref : (1, tk)    f32
      w2_ref : (tk, H2)   bf16   (k-th row slab, streamed; dominant HBM traffic)
      b2_ref : (1, H2)    f32    (resident)
      w3_ref : (H2, nzp)  bf16   (resident, nz padded to 128 lanes)
      b3_ref : (1, nzp)   f32    (resident)
      out_ref: (tm, nzp)  f32
      acc_ref: (tm, H2)   f32 scratch -- layer-2 accumulator
    """
    k = pl.program_id(1)

    @pl.when(k == 0)
    def _():
        acc_ref[...] = jnp.zeros_like(acc_ref)

    # Layer 1 (k-th slice of the 4D hidden axis): Linear + LeakyReLU, f32 math.
    h1 = jnp.dot(x_ref[...], w1_ref[...], preferred_element_type=jnp.float32)
    h1 = h1 + b1_ref[...]
    h1 = jnp.where(h1 > 0, h1, LEAKY_SLOPE * h1)

    # Layer 2 partial product, accumulated in f32 over the k axis.
    acc_ref[...] += jnp.dot(h1.astype(w2_ref.dtype), w2_ref[...],
                            preferred_element_type=jnp.float32)

    # Finalize once the reduction over the 4D axis is complete.
    @pl.when(k == pl.num_programs(1) - 1)
    def _():
        h2 = acc_ref[...] + b2_ref[...]
        h2 = jnp.where(h2 > 0, h2, LEAKY_SLOPE * h2)
        h3 = jnp.dot(h2.astype(w3_ref.dtype), w3_ref[...],
                     preferred_element_type=jnp.float32)
        h3 = h3 + b3_ref[...]
        out_ref[...] = jnp.tanh(h3).astype(out_ref.dtype)


def encoder_forward(x_nchw, params, *, block_m=None, max_block_k=768):
    """Flatten NCHW input, pad/cast to TPU-friendly layout, run the kernel."""
    w1, b1, w2, b2, w3, b3 = params            # f32 master params
    B = x_nchw.shape[0]
    D, H1 = w1.shape                           # D, 4D
    H2 = w2.shape[1]                           # 8D
    nz = w3.shape[1]

    # nn.Flatten(): flatten everything after the batch dim (glue, plain JAX).
    x = x_nchw.reshape(B, -1).astype(jnp.float32)
    assert x.shape[1] == D, (x.shape, D)

    # --- per-generation VMEM budget + tiling --------------------------------
    vmem_limit = _vmem_limit_bytes()
    if block_m is None:
        # Keep the whole batch in one m tile whenever it fits, so the weights
        # stream from HBM exactly once.
        block_m = 1024 if vmem_limit >= (96 << 20) else 512

    # M tiling: multiple of 16 (bf16 sublane packing), balanced across tiles
    # so an awkward batch (e.g. B = block_m + 1) doesn't create a nearly
    # empty second tile that doubles weight streaming.
    B16 = _round_up(max(B, 16), 16)
    n_m = _cdiv(B16, block_m)
    tm = _round_up(_cdiv(B16, n_m), 16)
    Bp = tm * n_m

    Dp = _round_up(D, 128)                     # lane-dense layer-1 contraction
    tk = _pick_tk(H1, max_block_k)             # minimal-padding K tile
    H1p = _round_up(H1, tk)
    nzp = _round_up(nz, 128)                   # lane-dense output store

    # bf16 MXU operands; zero padding keeps the math exact:
    #  * padded D columns of x multiply zero rows of w1,
    #  * padded h1 columns are LeakyReLU(0 + 0) = 0 and hit zero rows of w2,
    #  * padded nz lanes are sliced off below.
    x_p = jnp.pad(x, ((0, Bp - B), (0, Dp - D))).astype(jnp.bfloat16)
    w1_p = jnp.pad(w1, ((0, Dp - D), (0, H1p - H1))).astype(jnp.bfloat16)
    b1_p = jnp.pad(b1, ((0, 0), (0, H1p - H1)))                   # f32
    w2_p = jnp.pad(w2, ((0, H1p - H1), (0, 0))).astype(jnp.bfloat16)
    b2_p = b2                                                      # f32
    w3_p = jnp.pad(w3, ((0, 0), (0, nzp - nz))).astype(jnp.bfloat16)
    b3_p = jnp.pad(b3, ((0, 0), (0, nzp - nz)))                    # f32

    grid = (n_m, H1p // tk)

    # Advisory cost estimate: weights are re-streamed once per m tile.
    weight_bytes = ((w1_p.size + w2_p.size + w3_p.size) * 2
                    + (b1_p.size + b2_p.size + b3_p.size) * 4)
    cost = pl.CostEstimate(
        flops=int(2 * Bp * (Dp * H1p + H1p * H2 + H2 * nzp)),
        transcendentals=int(Bp * nzp),
        bytes_accessed=int(n_m * weight_bytes + x_p.size * 2 + Bp * nzp * 4),
    )

    out = pl.pallas_call(
        encoder_kernel,
        out_shape=jax.ShapeDtypeStruct((Bp, nzp), jnp.float32),
        grid_spec=pltpu.PrefetchScalarGridSpec(
            num_scalar_prefetch=0,
            grid=grid,
            in_specs=[
                pl.BlockSpec((tm, Dp), lambda m, k: (m, 0)),   # x  (const in k)
                pl.BlockSpec((Dp, tk), lambda m, k: (0, k)),   # w1 (stream k)
                pl.BlockSpec((1, tk), lambda m, k: (0, k)),    # b1 (stream k)
                pl.BlockSpec((tk, H2), lambda m, k: (k, 0)),   # w2 (stream k)
                pl.BlockSpec((1, H2), lambda m, k: (0, 0)),    # b2 (resident)
                pl.BlockSpec((H2, nzp), lambda m, k: (0, 0)),  # w3 (resident)
                pl.BlockSpec((1, nzp), lambda m, k: (0, 0)),   # b3 (resident)
            ],
            out_specs=pl.BlockSpec((tm, nzp), lambda m, k: (m, 0)),
            scratch_shapes=[pltpu.VMEM((tm, H2), jnp.float32)],
        ),
        compiler_params=pltpu.CompilerParams(
            dimension_semantics=("parallel", "arbitrary"),
            vmem_limit_bytes=vmem_limit,
        ),
        cost_estimate=cost,
    )(x_p, w1_p, b1_p, w2_p, b2_p, w3_p, b3_p)

    return out[:B, :nz]


def init_params(key, image_size, nc, nz):
    """Deterministic init mimicking torch.nn.Linear default:
    U(-1/sqrt(fan_in), 1/sqrt(fan_in)) for both weight and bias."""
    D = image_size * image_size * nc
    dims = [(D, 4 * D), (4 * D, 8 * D), (8 * D, nz)]
    params = []
    for (fan_in, fan_out) in dims:
        key, kw, kb = jax.random.split(key, 3)
        bound = 1.0 / (fan_in ** 0.5)
        w = jax.random.uniform(kw, (fan_in, fan_out), jnp.float32,
                               minval=-bound, maxval=bound)
        b = jax.random.uniform(kb, (1, fan_out), jnp.float32,
                               minval=-bound, maxval=bound)
        params += [w, b]
    return tuple(params)


def reference_forward(x_nchw, params):
    """Pure-JAX reference with the same mixed precision as the kernel
    (bf16 matmul operands, f32 accumulation + biases)."""
    w1, b1, w2, b2, w3, b3 = params
    x = x_nchw.reshape(x_nchw.shape[0], -1)

    def bf(a):
        return a.astype(jnp.bfloat16).astype(jnp.float32)

    def mm(a, b):
        return jnp.dot(bf(a), bf(b), precision=jax.lax.Precision.HIGHEST)

    h1 = mm(x, w1) + b1
    h1 = jnp.where(h1 > 0, h1, LEAKY_SLOPE * h1)
    h2 = mm(h1, w2) + b2
    h2 = jnp.where(h2 > 0, h2, LEAKY_SLOPE * h2)
    return jnp.tanh(mm(h2, w3) + b3)


if __name__ == "__main__":
    # Small demo shapes consistent with the module: image_size=16, nc=1, nz=20.
    # (Architecture is parametric; the minimal-padding tk selection and
    #  single-m-tile batch layout also cover the full 28x28 configuration
    #  within each generation's VMEM budget.)
    image_size = 16
    nc = 1
    nz = 20
    batch = 2

    key = jax.random.PRNGKey(0)
    key, kx = jax.random.split(key)
    x = jax.random.normal(kx, (batch, nc, image_size, image_size),
                          dtype=jnp.float32)
    params = init_params(key, image_size, nc, nz)

    out = encoder_forward(x, params)
    out = jax.block_until_ready(out)

    ref = reference_forward(x, params)
    assert out.shape == (batch, nz), out.shape
    assert jnp.allclose(out, ref, atol=2e-3, rtol=2e-3), "mismatch vs reference"

    print("KERNEL_OK")
</pallas_src>

<mosaic_0001>
module attributes {stable_mosaic.version = 11 : i64} {
  func.func @encoder_kernel(%arg0: i32, %arg1: i32, %arg2: memref<16x256xbf16, #tpu.memory_space<vmem>>, %arg3: memref<256x512xbf16, #tpu.memory_space<vmem>>, %arg4: memref<1x512xf32, #tpu.memory_space<vmem>>, %arg5: memref<512x2048xbf16, #tpu.memory_space<vmem>>, %arg6: memref<1x2048xf32, #tpu.memory_space<vmem>>, %arg7: memref<2048x128xbf16, #tpu.memory_space<vmem>>, %arg8: memref<1x128xf32, #tpu.memory_space<vmem>>, %arg9: memref<16x128xf32, #tpu.memory_space<vmem>>, %arg10: memref<16x2048xf32, #tpu.memory_space<vmem>>) attributes {dimension_semantics = [#tpu.dimension_semantics<parallel>, #tpu.dimension_semantics<arbitrary>], iteration_bounds = array<i64: 1, 2>, scalar_prefetch = 0 : i64, scratch_operands = 1 : i64, tpu.core_type = #tpu.core_type<tc>, window_params = [{transform_indices = @transform_0, window_bounds = array<i64: 16, 256>}, {transform_indices = @transform_1, window_bounds = array<i64: 256, 512>}, {transform_indices = @transform_2, window_bounds = array<i64: 1, 512>}, {transform_indices = @transform_3, window_bounds = array<i64: 512, 2048>}, {pipeline_mode = #tpu.pipeline_mode<synchronous>, transform_indices = @transform_4, window_bounds = array<i64: 1, 2048>}, {pipeline_mode = #tpu.pipeline_mode<synchronous>, transform_indices = @transform_5, window_bounds = array<i64: 2048, 128>}, {pipeline_mode = #tpu.pipeline_mode<synchronous>, transform_indices = @transform_6, window_bounds = array<i64: 1, 128>}, {transform_indices = @transform_7, window_bounds = array<i64: 16, 128>}]} {
    %c0_i32 = arith.constant 0 : i32
    %0 = arith.cmpi eq, %arg1, %c0_i32 : i32
    %1 = arith.extui %0 : i1 to i32
    %c0_i32_0 = arith.constant 0 : i32
    %2 = arith.cmpi ne, %1, %c0_i32_0 : i32
    scf.if %2 {
      %cst_16 = arith.constant 0.000000e+00 : f32
      %23 = vector.broadcast %cst_16 : f32 to vector<16x2048xf32>
      %c0_17 = arith.constant 0 : index
      %c0_18 = arith.constant 0 : index
      %24 = vector.load %arg10[%c0_17, %c0_18] : memref<16x2048xf32, #tpu.memory_space<vmem>>, vector<16x2048xf32>
      tpu.vector_store %arg10[%c0_17, %c0_18], %23 {strides = array<i32>} : memref<16x2048xf32, #tpu.memory_space<vmem>>, vector<16x2048xf32>,
    } else {
    }
    %c0 = arith.constant 0 : index
    %c0_1 = arith.constant 0 : index
    %3 = vector.load %arg2[%c0, %c0_1] : memref<16x256xbf16, #tpu.memory_space<vmem>>, vector<16x256xbf16>
    %c0_2 = arith.constant 0 : index
    %c0_3 = arith.constant 0 : index
    %4 = vector.load %arg3[%c0_2, %c0_3] : memref<256x512xbf16, #tpu.memory_space<vmem>>, vector<256x512xbf16>
    %cst = arith.constant dense<0.000000e+00> : vector<16x512xf32>
    %5 = tpu.matmul %3, %4, %cst {dimension_numbers = #tpu.dot_dimension_numbers<[1], [0], [0], [1], [0, 0, 1, 1], [], []>} : vector<16x256xbf16>, vector<256x512xbf16>, vector<16x512xf32> -> vector<16x512xf32>
    %c0_4 = arith.constant 0 : index
    %c0_5 = arith.constant 0 : index
    %6 = vector.load %arg4[%c0_4, %c0_5] : memref<1x512xf32, #tpu.memory_space<vmem>>, vector<1x512xf32>
    %7 = vector.broadcast %6 : vector<1x512xf32> to vector<16x512xf32>
    %8 = arith.addf %5, %7 : vector<16x512xf32>
    %cst_6 = arith.constant 0.000000e+00 : f32
    %9 = vector.broadcast %cst_6 : f32 to vector<16x512xf32>
    %10 = arith.cmpf ogt, %8, %9 : vector<16x512xf32>
    %cst_7 = arith.constant 0.00999999977 : f32
    %11 = vector.broadcast %cst_7 : f32 to vector<16x512xf32>
    %12 = arith.mulf %11, %8 : vector<16x512xf32>
    %13 = arith.select %10, %8, %12 : vector<16x512xi1>, vector<16x512xf32>
    %c0_8 = arith.constant 0 : index
    %c0_9 = arith.constant 0 : index
    %14 = vector.load %arg10[%c0_8, %c0_9] : memref<16x2048xf32, #tpu.memory_space<vmem>>, vector<16x2048xf32>
    %15 = arith.truncf %13 : vector<16x512xf32> to vector<16x512xbf16>
    %c0_10 = arith.constant 0 : index
    %c0_11 = arith.constant 0 : index
    %16 = vector.load %arg5[%c0_10, %c0_11] : memref<512x2048xbf16, #tpu.memory_space<vmem>>, vector<512x2048xbf16>
    %cst_12 = arith.constant dense<0.000000e+00> : vector<16x2048xf32>
    %17 = tpu.matmul %15, %16, %cst_12 {dimension_numbers = #tpu.dot_dimension_numbers<[1], [0], [0], [1], [0, 0, 1, 1], [], []>} : vector<16x512xbf16>, vector<512x2048xbf16>, vector<16x2048xf32> -> vector<16x2048xf32>
    %18 = arith.addf %14, %17 : vector<16x2048xf32>
    %c0_13 = arith.constant 0 : index
    %c0_14 = arith.constant 0 : index
    %19 = vector.load %arg10[%c0_13, %c0_14] : memref<16x2048xf32, #tpu.memory_space<vmem>>, vector<16x2048xf32>
    tpu.vector_store %arg10[%c0_13, %c0_14], %18 {strides = array<i32>} : memref<16x2048xf32, #tpu.memory_space<vmem>>, vector<16x2048xf32>,
    %c1_i32 = arith.constant 1 : i32
    %20 = arith.cmpi eq, %arg1, %c1_i32 : i32
    %21 = arith.extui %20 : i1 to i32
    %c0_i32_15 = arith.constant 0 : i32
    %22 = arith.cmpi ne, %21, %c0_i32_15 : i32
    scf.if %22 {
      %c0_16 = arith.constant 0 : index
      %c0_17 = arith.constant 0 : index
      %23 = vector.load %arg10[%c0_16, %c0_17] : memref<16x2048xf32, #tpu.memory_space<vmem>>, vector<16x2048xf32>
      %c0_18 = arith.constant 0 : index
      %c0_19 = arith.constant 0 : index
      %24 = vector.load %arg6[%c0_18, %c0_19] : memref<1x2048xf32, #tpu.memory_space<vmem>>, vector<1x2048xf32>
      %25 = vector.broadcast %24 : vector<1x2048xf32> to vector<16x2048xf32>
      %26 = arith.addf %23, %25 : vector<16x2048xf32>
      %cst_20 = arith.constant 0.000000e+00 : f32
      %27 = vector.broadcast %cst_20 : f32 to vector<16x2048xf32>
      %28 = arith.cmpf ogt, %26, %27 : vector<16x2048xf32>
      %cst_21 = arith.constant 0.00999999977 : f32
      %29 = vector.broadcast %cst_21 : f32 to vector<16x2048xf32>
      %30 = arith.mulf %29, %26 : vector<16x2048xf32>
      %31 = arith.select %28, %26, %30 : vector<16x2048xi1>, vector<16x2048xf32>
      %32 = arith.truncf %31 : vector<16x2048xf32> to vector<16x2048xbf16>
      %c0_22 = arith.constant 0 : index
      %c0_23 = arith.constant 0 : index
      %33 = vector.load %arg7[%c0_22, %c0_23] : memref<2048x128xbf16, #tpu.memory_space<vmem>>, vector<2048x128xbf16>
      %cst_24 = arith.constant dense<0.000000e+00> : vector<16x128xf32>
      %34 = tpu.matmul %32, %33, %cst_24 {dimension_numbers = #tpu.dot_dimension_numbers<[1], [0], [0], [1], [0, 0, 1, 1], [], []>} : vector<16x2048xbf16>, vector<2048x128xbf16>, vector<16x128xf32> -> vector<16x128xf32>
      %c0_25 = arith.constant 0 : index
      %c0_26 = arith.constant 0 : index
      %35 = vector.load %arg8[%c0_25, %c0_26] : memref<1x128xf32, #tpu.memory_space<vmem>>, vector<1x128xf32>
      %36 = vector.broadcast %35 : vector<1x128xf32> to vector<16x128xf32>
      %37 = arith.addf %34, %36 : vector<16x128xf32>
      %38 = math.tanh %37 : vector<16x128xf32>
      %c0_27 = arith.constant 0 : index
      %c0_28 = arith.constant 0 : index
      %39 = vector.load %arg9[%c0_27, %c0_28] : memref<16x128xf32, #tpu.memory_space<vmem>>, vector<16x128xf32>
      tpu.vector_store %arg9[%c0_27, %c0_28], %38 {strides = array<i32>} : memref<16x128xf32, #tpu.memory_space<vmem>>, vector<16x128xf32>,
    } else {
    }
    return
  }
  func.func @transform_0(%arg0: i32, %arg1: i32) -> (i32, i32) {
    %c0_i32 = arith.constant 0 : i32
    %c0_i32_0 = arith.constant 0 : i32
    return %arg0, %c0_i32 : i32, i32
  }
  func.func @transform_1(%arg0: i32, %arg1: i32) -> (i32, i32) {
    %c0_i32 = arith.constant 0 : i32
    %c0_i32_0 = arith.constant 0 : i32
    return %c0_i32, %arg1 : i32, i32
  }
  func.func @transform_2(%arg0: i32, %arg1: i32) -> (i32, i32) {
    %c0_i32 = arith.constant 0 : i32
    %c0_i32_0 = arith.constant 0 : i32
    return %c0_i32, %arg1 : i32, i32
  }
  func.func @transform_3(%arg0: i32, %arg1: i32) -> (i32, i32) {
    %c0_i32 = arith.constant 0 : i32
    %c0_i32_0 = arith.constant 0 : i32
    return %arg1, %c0_i32 : i32, i32
  }
  func.func @transform_4(%arg0: i32, %arg1: i32) -> (i32, i32) {
    %c0_i32 = arith.constant 0 : i32
    %c0_i32_0 = arith.constant 0 : i32
    %c0_i32_1 = arith.constant 0 : i32
    return %c0_i32, %c0_i32_0 : i32, i32
  }
  func.func @transform_5(%arg0: i32, %arg1: i32) -> (i32, i32) {
    %c0_i32 = arith.constant 0 : i32
    %c0_i32_0 = arith.constant 0 : i32
    %c0_i32_1 = arith.constant 0 : i32
    return %c0_i32, %c0_i32_0 : i32, i32
  }
  func.func @transform_6(%arg0: i32, %arg1: i32) -> (i32, i32) {
    %c0_i32 = arith.constant 0 : i32
    %c0_i32_0 = arith.constant 0 : i32
    %c0_i32_1 = arith.constant 0 : i32
    return %c0_i32, %c0_i32_0 : i32, i32
  }
  func.func @transform_7(%arg0: i32, %arg1: i32) -> (i32, i32) {
    %c0_i32 = arith.constant 0 : i32
    %c0_i32_0 = arith.constant 0 : i32
    return %arg0, %c0_i32 : i32, i32
  }
}

</mosaic_0001>

<bundles_post_ra>
// kernel: tpu_custom_call.1
= control target key start
LH: loop header
LB: loop body
LE: loop exit
PB: predicated region body
PF: predicated region fallthrough
CT: control target
= control target key end

     0   :  { %s9197_s0 = inlined_call_operand.hbm [shape: bf16[16,256], index: 0, kind: input, shape index: {}]   ;;  %s9198_s1 = inlined_call_operand.hbm [shape: bf16[256,1024], index: 1, kind: input, shape index: {}]   ;;  %s9199_s2 = inlined_call_operand.hbm [shape: f32[1,1024], index: 2, kind: input, shape index: {}]   ;;  %s9200_s3 = inlined_call_operand.hbm [shape: bf16[1024,2048], index: 3, kind: input, shape index: {}]   ;;  %s9201_s4 = inlined_call_operand.hbm [shape: f32[1,2048], index: 4, kind: input, shape index: {}]   ;;  %s9202_s5 = inlined_call_operand.hbm [shape: bf16[2048,128], index: 5, kind: input, shape index: {}]   ;;  %s9203_s6 = inlined_call_operand.hbm [shape: f32[1,128], index: 6, kind: input, shape index: {}]   ;;  %s9204_s7 = inlined_call_operand.hbm [shape: f32[16,128], index: 7, kind: output, shape index: {}]  }
   0x1   :  { %9210 = sst [smem:[#allocation22_spill]] %s9197_s0 }
   0x2   :  { %9211 = sst [smem:[#allocation23_spill]] %s9198_s1 }
   0x3   :  { %9212 = sst [smem:[#allocation24_spill]] %s9201_s4 }
   0x4   :  { %9213 = sst [smem:[#allocation25_spill]] %s9202_s5 }
   0x5   :  { %12 = vsyncpa [#allocation4], 0 }
   0x6   :  { %13 = vsyncpa [#allocation7], 0 }
   0x7   :  { %15 = vsyncpa [#allocation7 + $0x1], 0 }
   0x8   :  { %16 = vsyncpa [#allocation10], 0 }
   0x9   :  { %18 = vsyncpa [#allocation10 + $0x1], 0 }
   0xa   :  { %19 = vsyncpa [#allocation13], 0 }
   0xb   :  { %20 = vsyncpa [#allocation5], 0  ;;  %s8272_s24 = smov 0   ;;  %s8274_s25 = smov 0  }
   0xc   :  { %s8276_s26 = smov 0   ;;  %s8278_s27 = smov 0  }
   0xd   :  { %s8280_s28 = smov 0   ;;  %s8282_s29 = smov 0  }
   0xe LB: > { %s8301_s30 = sadd.s32 4294967295, %s8211_s29   ;;  %p84_p0 = scmp.ne.s32.totalorder %s8195_s25, %s8191_s24  ;;  %s8211_s29 = sphi %s8282_s29, %s26_s29   ;;  %s8207_s28 = sphi %s8280_s28, %s9236_s28   ;;  %s8203_s27 = sphi %s8278_s27, %s9235_s27   ;;  %s8199_s26 = sphi %s8276_s26, %s9234_s26   ;;  %s8195_s25 = sphi %s8274_s25, %s9233_s25   ;;  %s8191_s24 = sphi %s8272_s24, %s9232_s24  }
   0xf   : > { %p9205_p1 = scmp.eq.s32.totalorder %s8301_s30, 0  ;;  %p6657_p2 = scmp.ge.s32.totalorder %s8211_s29, 1 }
  0x10   : > { %p236_p3 = scmp.lt.s32.totalorder %s8211_s29, 3  ;;  %s8213_s10 = smov [#allocation11]  }
  0x11   : > { %p8309_p4 = por %p9205_p1, %p84_p0  ;;  %s266_s11 = sshll.u32 %s8213_s10, 4  ;;  %s267_s11 = int_to_ptr.vmem [resolvable:$true] %s266_s11 }
  0x12   : > { %p8313_p5 = pnand %p6657_p2, %p236_p3  ;;  %s8214_s12 = smov [#allocation12]  }
  0x13   : > { %s9214_s8 = scalar_select %p8309_p4, 1, 0 }
  0x14   : > { %s9215_s9 = scalar_select %p8313_p5, 1, 0 }
  0x15   : > { %p7600_p6 = pneg %p8313_p5  ;;  %s276_s13 = sshll.u32 %s8214_s12, 4  ;;  %s277_s13 = int_to_ptr.vmem [resolvable:$true] %s276_s13 }
  0x16   : > { %s7940_s15 = scalar_lea.vmem %s267_s11, 256  ;;  %p7948_p12 = scmp.lt.s32.totalorder %s267_s11, %s267_s11 }
  0x17   : > { %p8321_p7 = pnand %p7600_p6, %p9205_p1  ;;  %p7941_p9 = scmp.ne.s32.totalorder %s267_s11, %s7940_s15 }
  0x18   : > { %p7949_p13 = scmp.lt.s32.totalorder %s7940_s15, %s7940_s15 }
  0x19   : > { %p7931_p8 = pneg %p8321_p7 }
  0x1a   : > { %p7950_p0 = por %p7949_p13, %p7948_p12 }
  0x1b   : > { %p7943_p10 = pnand %p7941_p9, %p7931_p8 }
  0x1d   : > { %p7944_p11 = pneg %p7943_p10 }
  0x1f   : > { %p7951_p2 = pnand %p7950_p0, %p7944_p11 }
  0x21   : > { %7954 = shalt.err (!%p7951_p2)
}
  0x22   : > { %s9217_s4 = sld [smem:[#allocation24_spill]]  ;;  %s7966_s18 = scalar_lea.vmem %s277_s13, 16384 }
  0x23   : > { %p7967_p3 = scmp.ne.s32.totalorder %s277_s13, %s7966_s18  ;;  %p7974_p9 = scmp.lt.s32.totalorder %s277_s13, %s277_s13 }
  0x24   : > { %p7975_p10 = scmp.lt.s32.totalorder %s7966_s18, %s7966_s18 }
  0x25   : > { %p7969_p6 = pnand %p7967_p3, %p7931_p8 }
  0x26   : > { %p7976_p4 = por %p7975_p10, %p7974_p9 }
  0x27   : > { %p7970_p1 = pneg %p7969_p6 }
  0x28   : > { %7606 = dma.hbm_to_vmem [thread:$0]  (!%p8321_p7), %s9217_s4, 256, %s267_s11, [#allocation10]  }
  0x29   : > { %p7977_p5 = pnand %p7976_p4, %p7970_p1 }
  0x2b   : > { %7980 = shalt.err (!%p7977_p5)
}
  0x2c   : > { %s9208_s19 = smov 64   ;;  %s8216_s20 = smov 4  }
  0x2d   : > { %s9218_s5 = sld [smem:[#allocation25_spill]]  ;;  %s35_s23 = sadd.s32 1, %s8207_s28 }
  0x2e   : > { %s71_s24 = sadd.s32 1, %s8199_s26  ;;  %p36_p1 = scmp.ge.s32.totalorder %s35_s23, 2 }
  0x2f   : > { %p78_p4 = scmp.ne.s32.totalorder %s8199_s26, %s8195_s25  ;;  %p79_p5 = scmp.eq.s32.totalorder %s8211_s29, 0 }
  0x30   : > { %p7627_p11 = scmp.lt.s32.totalorder %s8211_s29, 2  ;;  %s9238_s23 = smov (%p36_p1, %s35_s23), 0 }
  0x31   : > { %p80_p12 = por %p79_p5, %p78_p4  ;;  %s9209_s10 = sand.u32 1, %s8211_s29  }
  0x32   : > { %s68_s11 = ssub.s32 %s8207_s28, %s9238_s23  ;;  %s8357_s12 = sand.u32 1, %s8199_s26  }
  0x33   : > { %7609 = dma.hbm_to_vmem [thread:$0]  (!%p8321_p7), %s9218_s5, 16384, %s277_s13, [#allocation13], %s9208_s19, %s9208_s19, %s8216_s20  }
  0x34   : > { %p69_p13 = scmp.eq.s32.totalorder %s68_s11, 0  ;;  %s6663_s15 = sshll.u32 %s8357_s12, 9 }
  0x35   : > { %s7394_s13 = sshll.u32 %s8207_s28, 8  ;;  %s9219_s1 = sld [smem:[#allocation23_spill]] }
  0x36   : > { %s8362_s16 = scalar_select %p69_p13, %s8199_s26, %s71_s24  }
  0x37   : > { %s305_s21 = scalar_lea.vmem [#allocation6], %s6663_s15  ;;  %p8369_p0 = pnand %p7627_p11, %p80_p12 }
  0x38   : > { %s312_s22 = sshll.u32 %s305_s21, 4  ;;  %s8375_s11 = scalar_lea.sflag [#allocation7], %s9209_s10  ;;  %s313_s22 = int_to_ptr.vmem [resolvable:$true] %s312_s22 }
  0x39   : > { %p7983_p2 = pneg %p8369_p0  ;;  %s7994_s24 = scalar_lea.vmem %s313_s22, 8192 }
  0x3a   : > { %p7995_p3 = scmp.ne.s32.totalorder %s313_s22, %s7994_s24  ;;  %s8217_s15 = smov [#allocation6]  }
  0x3b   : > { %s311_s20 = scalar_lea.hbm %s9219_s1, %s7394_s13  ;;  %s7999_s13 = sshll.u32 %s8217_s15, 4  ;;  %s8000_s13 = int_to_ptr.vmem [resolvable:$false] %s7999_s13 }
  0x3c   : > { %p7997_p6 = pnand %p7995_p3, %p7983_p2  ;;  %s8001_s17 = scalar_lea.vmem %s8000_s13, 16384 }
  0x3d   : > { %p8002_p10 = scmp.lt.s32.totalorder %s313_s22, %s8000_s13  ;;  %p8003_p1 = scmp.lt.s32.totalorder %s8001_s17, %s7994_s24 }
  0x3e   : > { %p7998_p9 = pneg %p7997_p6 }
  0x3f   : > { %p8004_p4 = por %p8003_p1, %p8002_p10 }
  0x41   : > { %p8005_p5 = pnand %p8004_p4, %p7998_p9 }
  0x43   : > { %8008 = shalt.err (!%p8005_p5)
}
  0x44   : > { %s8218_s18 = smov 512   ;;  %s8219_s21 = smov 256  }
  0x45   : > { %s8220_s10 = smov 16   ;;  %s8221_s1 = smov [#allocation3]  }
  0x46   : > { %7616 = dma.hbm_to_vmem [thread:$0]  (!%p8369_p0), %s311_s20, 8192, %s313_s22, %s8375_s11, %s8218_s18, %s8219_s21, %s8220_s10  }
  0x47   : > { %s252_s4 = sshll.u32 %s8221_s1, 4  ;;  %s253_s4 = int_to_ptr.vmem [resolvable:$true] %s252_s4 }
  0x48   : > { %s8020_s5 = scalar_lea.vmem %s253_s4, 256  ;;  %p8028_p3 = scmp.lt.s32.totalorder %s253_s4, %s253_s4 }
  0x49   : > { %p8021_p11 = scmp.ne.s32.totalorder %s253_s4, %s8020_s5  ;;  %p8029_p6 = scmp.lt.s32.totalorder %s8020_s5, %s8020_s5 }
  0x4b   : > { %p8023_p12 = pnand %p8021_p11, %p7931_p8  ;;  %p8030_p9 = por %p8029_p6, %p8028_p3 }
  0x4d   : > { %p8024_p13 = pneg %p8023_p12 }
  0x4f   : > { %p8031_p10 = pnand %p8030_p9, %p8024_p13 }
  0x51   : > { %8034 = shalt.err (!%p8031_p10)
}
  0x52   : > { %s8222_s24 = smov 128   ;;  %s8223_s10 = smov 8  }
  0x53   : > { %s9221_s0 = sld [smem:[#allocation22_spill]]  ;;  %s6666_s22 = sshll.u32 %s8357_s12, 2 }
  0x54   : > { %s8224_s15 = smov [#allocation14]   ;;  %s7395_s17 = sshll.u32 %s8207_s28, 6 }
  0x55   : > { %s290_s13 = sshll.u32 %s8224_s15, 4  ;;  %s291_s13 = int_to_ptr.vmem [resolvable:$true] %s290_s13 }
  0x56   : > { %s8046_s5 = scalar_lea.vmem %s291_s13, 16  ;;  %s8053_s18 = scalar_lea.vmem %s291_s13, 32 }
  0x57   : > { %p8047_p1 = scmp.ne.s32.totalorder %s291_s13, %s8046_s5  ;;  %p8054_p11 = scmp.lt.s32.totalorder %s291_s13, %s291_s13 }
  0x58   : > { %p8055_p12 = scmp.lt.s32.totalorder %s8053_s18, %s8046_s5 }
  0x59   : > { %7603 = dma.hbm_to_vmem [thread:$0]  (!%p8321_p7), %s9221_s0, 256, %s253_s4, [#allocation4], %s8222_s24, %s8222_s24, %s8223_s10  }
  0x5a   : > { %p8049_p4 = pnand %p8047_p1, %p7931_p8  ;;  %p8056_p13 = por %p8055_p12, %p8054_p11 }
  0x5c   : > { %p8050_p5 = pneg %p8049_p4 }
  0x5e   : > { %p8057_p3 = pnand %p8056_p13, %p8050_p5 }
  0x60   : > { %8060 = shalt.err (!%p8057_p3)
}
  0x61   : > { %7612 = dma.hbm_to_vmem [thread:$0]  (!%p8321_p7), %s9203_s6, 16, %s291_s13, [#allocation13]  }
  0x62   : > { %s332_s1 = scalar_lea.hbm %s9199_s2, %s7395_s17  ;;  %s326_s20 = scalar_lea.vmem [#allocation8], %s6666_s22 }
  0x63   : > { %s334_s15 = sshll.u32 %s326_s20, 4  ;;  %s8225_s5 = smov [#allocation8]   ;;  %s335_s15 = int_to_ptr.vmem [resolvable:$true] %s334_s15 }
  0x64   : > { %s8074_s0 = scalar_lea.vmem %s335_s15, 64  ;;  %s8079_s14 = sshll.u32 %s8225_s5, 4  ;;  %s8080_s14 = int_to_ptr.vmem [resolvable:$false] %s8079_s14 }
  0x65   : > { %p8075_p8 = scmp.ne.s32.totalorder %s335_s15, %s8074_s0  ;;  %s8081_s18 = scalar_lea.vmem %s8080_s14, 128 }
  0x66   : > { %p8082_p10 = scmp.lt.s32.totalorder %s335_s15, %s8080_s14  ;;  %p8083_p1 = scmp.lt.s32.totalorder %s8081_s18, %s8074_s0 }
  0x67   : > { %p8077_p6 = pnand %p8075_p8, %p7983_p2 }
  0x68   : > { %p8084_p7 = por %p8083_p1, %p8082_p10 }
  0x69   : > { %p8078_p9 = pneg %p8077_p6 }
  0x6b   : > { %p8085_p4 = pnand %p8084_p7, %p8078_p9 }
  0x6d   : > { %8088 = shalt.err (!%p8085_p4)
}
  0x6e   : > { %7619 = dma.hbm_to_vmem [thread:$0]  (!%p8369_p0), %s332_s1, 64, %s335_s15, %s8375_s11  }
  0x6f   : > { %s6669_s22 = sshll.u32 %s8357_s12, 12  ;;  %s7397_s13 = sshll.u32 %s8207_s28, 16 }
  0x70   : > { %s352_s21 = scalar_lea.hbm %s9200_s3, %s7397_s13  ;;  %s345_s24 = scalar_lea.vmem [#allocation9], %s6669_s22 }
  0x71   : > { %s353_s10 = sshll.u32 %s345_s24, 4  ;;  %s9222_s0 = sand.u32 1, %s8211_s29   ;;  %s354_s10 = int_to_ptr.vmem [resolvable:$true] %s353_s10 }
  0x72   : > { %s342_s20 = scalar_lea.sflag [#allocation10], %s9222_s0  ;;  %s8102_s5 = scalar_lea.vmem %s354_s10, 65536 }
  0x73   : > { %p8103_p5 = scmp.ne.s32.totalorder %s354_s10, %s8102_s5  ;;  %s8226_s14 = smov [#allocation9]  }
  0x74   : > { %s8107_s18 = sshll.u32 %s8226_s14, 4  ;;  %s8108_s18 = int_to_ptr.vmem [resolvable:$false] %s8107_s18 }
  0x75   : > { %p8105_p11 = pnand %p8103_p5, %p7983_p2  ;;  %s8109_s12 = scalar_lea.vmem %s8108_s18, 131072 }
  0x76   : > { %p8110_p13 = scmp.lt.s32.totalorder %s354_s10, %s8108_s18  ;;  %p8111_p3 = scmp.lt.s32.totalorder %s8109_s12, %s8102_s5 }
  0x77   : > { %p8106_p12 = pneg %p8105_p11 }
  0x78   : > { %p8112_p8 = por %p8111_p3, %p8110_p13 }
  0x7a   : > { %p8113_p6 = pnand %p8112_p8, %p8106_p12 }
  0x7c   : > { %8116 = shalt.err (!%p8113_p6)
}
  0x7d   : > { %s8227_s11 = smov 1024   ;;  %s9223_s1 = smov 64  }
  0x7e   : > { %7622 = dma.hbm_to_vmem [thread:$0]  (!%p8369_p0), %s352_s21, 65536, %s354_s10, %s342_s20, %s8227_s11, %s8227_s11, %s9223_s1  }
  0x7f   : > { %p9224_p9 = scmp.ne.s32.totalorder %s9215_s9, 0 }
  0x80   : > { %p9225_p2 = scmp.eq.s32.totalorder (!%p9224_p9), %s8301_s30, 0 }
  0x81   : > { %365 = sbr.rel (%p9224_p9) target bundleno = 1465 (0x5b9), region = 48 }
  0x86   : > { %8166 = dma.done.wait (%p9225_p2), [#allocation4], 256   ;;  %p9226_p10 = pmov %p9225_p2 }
  0x87   : > { %s371_s15 = sand.u32 1, %s8301_s30   ;;  %s373_s22 = sand.u32 1, %s8195_s25  }
  0x88   : > { %8168 = vsyncadd (%p9226_p10), [#allocation4], 4294967040  ;;  %s6675_s13 = sshll.u32 %s373_s22, 9  ;;  %s372_s17 = scalar_lea.sflag [#allocation7], %s371_s15 }
  0x89   : > { %s8433_s4 = scalar_lea.vmem [#allocation6], %s6675_s13  ;;  %p9227_p1 = scmp.ne.s32.totalorder %s9214_s8, 0 }
  0x8b   : > { %8170 = dma.done.wait (%p9227_p1), %s372_s17, 8256  }
  0x8c   : > { %8172 = vsyncadd (%p9227_p1), %s372_s17, 4294959040  ;;  %s6676_s9 = sshll.u32 %s373_s22, 2  ;;  %s6677_s19 = sshll.u32 %s373_s22, 12 }
  0x8d   : > { %s8439_s21 = scalar_lea.vmem [#allocation8], %s6676_s9  ;;  %s390_s24 = scalar_lea.sflag [#allocation10], %s371_s15 }
  0x8e   : > { %s8441_s10 = scalar_lea.vmem [#allocation9], %s6677_s19 }
  0x8f   : > { %8174 = dma.done.wait (%p9227_p1), %s390_s24, 65536  }
  0x90   : > { %8176 = vsyncadd (%p9227_p1), %s390_s24, 4294901760  ;;  %p9228_p0 = pmov %p9225_p2 }
  0x92   : > { %8178 = dma.done.wait (%p9228_p0), [#allocation10], 256   ;;  %p9229_p7 = pmov %p9228_p0 }
  0x93   : > { %p9230_p4 = pmov %p9228_p0 }
  0x94   : > { %8180 = vsyncadd (%p9229_p7), [#allocation10], 4294967040 }
  0x95   : > { %8182 = dma.done.wait (%p9230_p4), [#allocation13], 16400   ;;  %p9231_p5 = pmov %p9228_p0 }
  0x96   : > { %p6681_p11 = scmp.ne.s32.totalorder %s8203_s27, 0 }
  0x97   : > { %8184 = vsyncadd (%p9231_p5), [#allocation13], 4294950896 }
  0x98   : > { %450 = sbr.rel (%p6681_p11) target bundleno = 174 (0xae), region = 80 }
  0x9d   : > { %v8228_v0 = vmov 0.0  }
  0x9e   : > { %451 = vst [vmem:[#allocation2 + $0xb0] sm:$0xff] %v8228_v0  ;;  %452 = vst [vmem:[#allocation2] sm:$0xff] %v8228_v0 }
  0x9f   : > { %453 = vst [vmem:[#allocation2 + $0xd8] sm:$0xff] %v8228_v0  ;;  %454 = vst [vmem:[#allocation2 + $0x18] sm:$0xff] %v8228_v0 }
  0xa0   : > { %455 = vst [vmem:[#allocation2 + $0x50] sm:$0xff] %v8228_v0  ;;  %456 = vst [vmem:[#allocation2 + $0x68] sm:$0xff] %v8228_v0 }
  0xa1   : > { %457 = vst [vmem:[#allocation2 + $0x30] sm:$0xff] %v8228_v0  ;;  %458 = vst [vmem:[#allocation2 + $0x48] sm:$0xff] %v8228_v0 }
  0xa2   : > { %459 = vst [vmem:[#allocation2 + $0x80] sm:$0xff] %v8228_v0  ;;  %460 = vst [vmem:[#allocation2 + $0x88] sm:$0xff] %v8228_v0 }
  0xa3   : > { %461 = vst [vmem:[#allocation2 + $0xe8] sm:$0xff] %v8228_v0  ;;  %462 = vst [vmem:[#allocation2 + $0xb8] sm:$0xff] %v8228_v0 }
  0xa4   : > { %463 = vst [vmem:[#allocation2 + $0x60] sm:$0xff] %v8228_v0  ;;  %464 = vst [vmem:[#allocation2 + $0xf0] sm:$0xff] %v8228_v0 }
  0xa5   : > { %465 = vst [vmem:[#allocation2 + $0x8] sm:$0xff] %v8228_v0  ;;  %466 = vst [vmem:[#allocation2 + $0x78] sm:$0xff] %v8228_v0 }
  0xa6   : > { %467 = vst [vmem:[#allocation2 + $0x38] sm:$0xff] %v8228_v0  ;;  %468 = vst [vmem:[#allocation2 + $0x58] sm:$0xff] %v8228_v0 }
  0xa7   : > { %469 = vst [vmem:[#allocation2 + $0x40] sm:$0xff] %v8228_v0  ;;  %470 = vst [vmem:[#allocation2 + $0xc8] sm:$0xff] %v8228_v0 }
  0xa8   : > { %471 = vst [vmem:[#allocation2 + $0xe0] sm:$0xff] %v8228_v0  ;;  %472 = vst [vmem:[#allocation2 + $0x90] sm:$0xff] %v8228_v0 }
  0xa9   : > { %473 = vst [vmem:[#allocation2 + $0x70] sm:$0xff] %v8228_v0  ;;  %474 = vst [vmem:[#allocation2 + $0xc0] sm:$0xff] %v8228_v0 }
  0xaa   : > { %475 = vst [vmem:[#allocation2 + $0xa8] sm:$0xff] %v8228_v0  ;;  %476 = vst [vmem:[#allocation2 + $0xd0] sm:$0xff] %v8228_v0 }
  0xab   : > { %477 = vst [vmem:[#allocation2 + $0x10] sm:$0xff] %v8228_v0  ;;  %478 = vst [vmem:[#allocation2 + $0x28] sm:$0xff] %v8228_v0 }
  0xac   : > { %479 = vst [vmem:[#allocation2 + $0xa0] sm:$0xff] %v8228_v0  ;;  %480 = vst [vmem:[#allocation2 + $0xf8] sm:$0xff] %v8228_v0 }
  0xad   : > { %481 = vst [vmem:[#allocation2 + $0x20] sm:$0xff] %v8228_v0  ;;  %482 = vst [vmem:[#allocation2 + $0x98] sm:$0xff] %v8228_v0 }
  0xae PF: > { %v7698_v1 = vld [vmem:[%s8433_s4 + $0xe4] ss:$16 sps:$4 sm:$0xff]   ;;  %v7700_v2 = vld [vmem:[%s8433_s4 + $0xec] ss:$16 sps:$4 sm:$0xff]   ;;  %v7702_v3 = vld [vmem:[%s8433_s4 + $0xe0] ss:$16 sps:$4 sm:$0xff]  }
  0xaf   : > { %901 = vmatprep.subr.bf16.mxu0 %v7698_v1  ;;  %v7703_v4 = vld [vmem:[%s8433_s4 + $0xe8] ss:$16 sps:$4 sm:$0xff]   ;;  %944 = vmatprep.subr.bf16.mxu1 %v7700_v2  ;;  %v7704_v5 = vld [vmem:[%s8433_s4 + $0xc4] ss:$16 sps:$4 sm:$0xff]   ;;  %v7706_v6 = vld [vmem:[%s8433_s4 + $0xcc] ss:$16 sps:$4 sm:$0xff]  }
  0xb0   : > { %902 = vmatpush1.bf16.msra.mxu0 %v7702_v3  ;;  %945 = vmatpush1.bf16.msra.mxu1 %v7703_v4  ;;  %v7708_v7 = vld [vmem:[%s8433_s4 + $0xc0] ss:$16 sps:$4 sm:$0xff]   ;;  %v7709_v8 = vld [vmem:[%s8433_s4 + $0xc8] ss:$16 sps:$4 sm:$0xff]   ;;  %v7710_v9 = vld [vmem:[%s8433_s4 + $0xa4] ss:$16 sps:$4 sm:$0xff]  }
  0xb1   : > { %903 = vmatprep.subr.bf16.mxu0 %v7704_v5  ;;  %946 = vmatprep.subr.bf16.mxu1 %v7706_v6  ;;  %v7712_v10 = vld [vmem:[%s8433_s4 + $0xac] ss:$16 sps:$4 sm:$0xff]   ;;  %v7714_v11 = vld [vmem:[%s8433_s4 + $0xa0] ss:$16 sps:$4 sm:$0xff]   ;;  %v7715_v12 = vld [vmem:[%s8433_s4 + $0xa8] ss:$16 sps:$4 sm:$0xff]  }
  0xb2   : > { %v7716_v13 = vld [vmem:[%s8433_s4 + $0x84] ss:$16 sps:$4 sm:$0xff]   ;;  %v7718_v14 = vld [vmem:[%s8433_s4 + $0x8c] ss:$16 sps:$4 sm:$0xff]   ;;  %v7720_v15 = vld [vmem:[%s8433_s4 + $0x80] ss:$16 sps:$4 sm:$0xff]  }
  0xb3   : > { %v7721_v16 = vld [vmem:[%s8433_s4 + $0x88] ss:$16 sps:$4 sm:$0xff]   ;;  %v7722_v17 = vld [vmem:[%s8433_s4 + $0x64] ss:$16 sps:$4 sm:$0xff]   ;;  %v7724_v18 = vld [vmem:[%s8433_s4 + $0x6c] ss:$16 sps:$4 sm:$0xff]  }
  0xb4   : > { %904 = vmatpush1.bf16.msra.mxu0 %v7708_v7  ;;  %947 = vmatpush1.bf16.msra.mxu1 %v7709_v8  ;;  %v7726_v19 = vld [vmem:[%s8433_s4 + $0x60] ss:$16 sps:$4 sm:$0xff]   ;;  %v7727_v20 = vld [vmem:[%s8433_s4 + $0x68] ss:$16 sps:$4 sm:$0xff]   ;;  %v7728_v21 = vld [vmem:[%s8433_s4 + $0x44] ss:$16 sps:$4 sm:$0xff]  }
  0xb5   : > { %905 = vmatprep.subr.bf16.mxu0 %v7710_v9  ;;  %948 = vmatprep.subr.bf16.mxu1 %v7712_v10  ;;  %v7730_v22 = vld [vmem:[%s8433_s4 + $0x4c] ss:$16 sps:$4 sm:$0xff]   ;;  %v7732_v23 = vld [vmem:[%s8433_s4 + $0x40] ss:$16 sps:$4 sm:$0xff]   ;;  %v7733_v24 = vld [vmem:[%s8433_s4 + $0x48] ss:$16 sps:$4 sm:$0xff]  }
  0xb6   : > { %v7734_v25 = vld [vmem:[%s8433_s4 + $0x24] ss:$16 sps:$4 sm:$0xff]   ;;  %v7736_v26 = vld [vmem:[%s8433_s4 + $0x2c] ss:$16 sps:$4 sm:$0xff]   ;;  %v7738_v27 = vld [vmem:[%s8433_s4 + $0x20] ss:$16 sps:$4 sm:$0xff]  }
  0xb7   : > { %v7739_v28 = vld [vmem:[%s8433_s4 + $0x28] ss:$16 sps:$4 sm:$0xff]   ;;  %v7740_v29 = vld [vmem:[%s8433_s4 + $0x4] ss:$16 sps:$4 sm:$0xff]   ;;  %v7742_v30 = vld [vmem:[%s8433_s4 + $0xc] ss:$16 sps:$4 sm:$0xff]  }
  0xb8   : > { %906 = vmatpush1.bf16.msra.mxu0 %v7714_v11  ;;  %949 = vmatpush1.bf16.msra.mxu1 %v7715_v12  ;;  %v7744_v31 = vld [vmem:[%s8433_s4] ss:$16 sps:$4 sm:$0xff]   ;;  %v7745_v32 = vld [vmem:[%s8433_s4 + $0x8] ss:$16 sps:$4 sm:$0xff]   ;;  %v7746_v33 = vld [vmem:[%s8433_s4 + $0x1e4] ss:$16 sps:$4 sm:$0xff]  }
  0xb9   : > { %907 = vmatprep.subr.bf16.mxu0 %v7716_v13  ;;  %950 = vmatprep.subr.bf16.mxu1 %v7718_v14  ;;  %v7748_v34 = vld [vmem:[%s8433_s4 + $0x1ec] ss:$16 sps:$4 sm:$0xff]   ;;  %v7750_v35 = vld [vmem:[%s8433_s4 + $0x1e0] ss:$16 sps:$4 sm:$0xff]   ;;  %v7751_v36 = vld [vmem:[%s8433_s4 + $0x1e8] ss:$16 sps:$4 sm:$0xff]  }
  0xba   : > { %v7752_v37 = vld [vmem:[%s8433_s4 + $0x1c4] ss:$16 sps:$4 sm:$0xff]   ;;  %v7754_v38 = vld [vmem:[%s8433_s4 + $0x1cc] ss:$16 sps:$4 sm:$0xff]   ;;  %v7756_v39 = vld [vmem:[%s8433_s4 + $0x1c0] ss:$16 sps:$4 sm:$0xff]  }
  0xbb   : > { %v7757_v40 = vld [vmem:[%s8433_s4 + $0x1c8] ss:$16 sps:$4 sm:$0xff]   ;;  %v7758_v41 = vld [vmem:[%s8433_s4 + $0x1a4] ss:$16 sps:$4 sm:$0xff]   ;;  %v7760_v42 = vld [vmem:[%s8433_s4 + $0x1ac] ss:$16 sps:$4 sm:$0xff]  }
  0xbc   : > { %908 = vmatpush1.bf16.msra.mxu0 %v7720_v15  ;;  %951 = vmatpush1.bf16.msra.mxu1 %v7721_v16  ;;  %v7762_v43 = vld [vmem:[%s8433_s4 + $0x1a0] ss:$16 sps:$4 sm:$0xff]   ;;  %v7763_v44 = vld [vmem:[%s8433_s4 + $0x1a8] ss:$16 sps:$4 sm:$0xff]   ;;  %v7764_v45 = vld [vmem:[%s8433_s4 + $0x184] ss:$16 sps:$4 sm:$0xff]  }
  0xbd   : > { %909 = vmatprep.subr.bf16.mxu0 %v7722_v17  ;;  %952 = vmatprep.subr.bf16.mxu1 %v7724_v18  ;;  %v7766_v46 = vld [vmem:[%s8433_s4 + $0x18c] ss:$16 sps:$4 sm:$0xff]   ;;  %v7768_v48 = vld [vmem:[%s8433_s4 + $0x180] ss:$16 sps:$4 sm:$0xff]   ;;  %v7769_v49 = vld [vmem:[%s8433_s4 + $0x188] ss:$16 sps:$4 sm:$0xff]  }
  0xbe   : > { %v7796_v47 = vld [vmem:[#allocation3 + $0x4] ss:$8 sps:$4 sm:$0xff]   ;;  %v7774_v52 = vld [vmem:[%s8433_s4 + $0x160] ss:$16 sps:$4 sm:$0xff]   ;;  %v7775_v53 = vld [vmem:[%s8433_s4 + $0x168] ss:$16 sps:$4 sm:$0xff]  }
  0xbf   : > { %v7770_v50 = vld [vmem:[%s8433_s4 + $0x164] ss:$16 sps:$4 sm:$0xff]   ;;  %v7772_v51 = vld [vmem:[%s8433_s4 + $0x16c] ss:$16 sps:$4 sm:$0xff]   ;;  %933 = vmatprep.mubr.bf16.mxu0 %v7796_v47  ;;  %976 = vmatprep.mubr.bf16.mxu1 %v7796_v47  ;;  %v7780_v56 = vld [vmem:[%s8433_s4 + $0x140] ss:$16 sps:$4 sm:$0xff]  }
  0xc0   : > { %910 = vmatpush1.bf16.msra.mxu0 %v7726_v19  ;;  %953 = vmatpush1.bf16.msra.mxu1 %v7727_v20  ;;  %v7776_v54 = vld [vmem:[%s8433_s4 + $0x144] ss:$16 sps:$4 sm:$0xff]   ;;  %v7778_v55 = vld [vmem:[%s8433_s4 + $0x14c] ss:$16 sps:$4 sm:$0xff]   ;;  %v7781_v57 = vld [vmem:[%s8433_s4 + $0x148] ss:$16 sps:$4 sm:$0xff]  }
  0xc1   : > { %911 = vmatprep.subr.bf16.mxu0 %v7728_v21  ;;  %954 = vmatprep.subr.bf16.mxu1 %v7730_v22  ;;  %v7782_v58 = vld [vmem:[%s8433_s4 + $0x124] ss:$16 sps:$4 sm:$0xff]   ;;  %v7784_v59 = vld [vmem:[%s8433_s4 + $0x12c] ss:$16 sps:$4 sm:$0xff]   ;;  %v7786_v60 = vld [vmem:[%s8433_s4 + $0x120] ss:$16 sps:$4 sm:$0xff]  }
  0xc2   : > { %v7787_v61 = vld [vmem:[%s8433_s4 + $0x128] ss:$16 sps:$4 sm:$0xff]   ;;  %v7788_v62 = vld [vmem:[%s8433_s4 + $0x104] ss:$16 sps:$4 sm:$0xff]   ;;  %v7790_v63 = vld [vmem:[%s8433_s4 + $0x10c] ss:$16 sps:$4 sm:$0xff]  }
  0xc3   : > { %v1159_v0 = vld [vmem:[%s8441_s10 + $0x380] sm:$0xff]  ;;  %v7792_v4 = vld [vmem:[%s8433_s4 + $0x100] ss:$16 sps:$4 sm:$0xff]   ;;  %p7260_p12 = scmp.ne.s32.totalorder %s8203_s27, 1 }
  0xc4   : > { %912 = vmatpush1.bf16.msra.mxu0 %v7732_v23  ;;  %955 = vmatpush1.bf16.msra.mxu1 %v7733_v24  ;;  %v1167_v1 = vld [vmem:[%s8441_s10 + $0x3c0] sm:$0xff]  ;;  %v7794_v12 = vld [vmem:[#allocation3] ss:$8 sps:$4 sm:$0xff]  }
  0xc5   : > { %913 = vmatprep.subr.bf16.mxu0 %v7734_v25  ;;  %956 = vmatprep.subr.bf16.mxu1 %v7736_v26  ;;  %v1415_v2 = vld [vmem:[%s8441_s10 + $0xb80] sm:$0xff]  ;;  %v6861_v6 = vcombine.high %v1159_v0, %v1167_v1  ;;  %v6860_v13 = vcombine.low %v1159_v0, %v1167_v1 }
  0xc6   : > { %v1423_v3 = vld [vmem:[%s8441_s10 + $0xbc0] sm:$0xff] }
  0xc7   : > { %v7793_v5 = vld [vmem:[%s8433_s4 + $0x108] ss:$16 sps:$4 sm:$0xff]   ;;  %v7117_v7 = vcombine.high %v1415_v2, %v1423_v3  ;;  %v7116_v14 = vcombine.low %v1415_v2, %v1423_v3 }
  0xc8   : > { %914 = vmatpush1.bf16.msra.mxu0 %v7738_v27  ;;  %957 = vmatpush1.bf16.msra.mxu1 %v7739_v28  ;;  %v1143_v8 = vld [vmem:[%s8441_s10 + $0x300] sm:$0xff] }
  0xc9   : > { %915 = vmatprep.subr.bf16.mxu0 %v7740_v29  ;;  %958 = vmatprep.subr.bf16.mxu1 %v7742_v30  ;;  %v1151_v9 = vld [vmem:[%s8441_s10 + $0x340] sm:$0xff] }
  0xca   : > { %v1399_v10 = vld [vmem:[%s8441_s10 + $0xb00] sm:$0xff]  ;;  %v6845_v15 = vcombine.high %v1143_v8, %v1151_v9  ;;  %v6844_v21 = vcombine.low %v1143_v8, %v1151_v9 }
  0xcb   : > { %v1407_v11 = vld [vmem:[%s8441_s10 + $0xb40] sm:$0xff] }
  0xcc   : > { %916 = vmatpush1.bf16.msra.mxu0 %v7744_v31  ;;  %959 = vmatpush1.bf16.msra.mxu1 %v7745_v32  ;;  %v7101_v16 = vcombine.high %v1399_v10, %v1407_v11  ;;  %v1127_v17 = vld [vmem:[%s8441_s10 + $0x280] sm:$0xff]  ;;  %v7100_v22 = vcombine.low %v1399_v10, %v1407_v11 }
  0xcd   : > { %917 = vmatprep.subr.bf16.mxu0 %v7746_v33  ;;  %960 = vmatprep.subr.bf16.mxu1 %v7748_v34  ;;  %v1135_v18 = vld [vmem:[%s8441_s10 + $0x2c0] sm:$0xff] }
  0xce   : > { %v1383_v19 = vld [vmem:[%s8441_s10 + $0xa80] sm:$0xff]  ;;  %v6829_v23 = vcombine.high %v1127_v17, %v1135_v18  ;;  %v6828_v29 = vcombine.low %v1127_v17, %v1135_v18 }
  0xcf   : > { %v1391_v20 = vld [vmem:[%s8441_s10 + $0xac0] sm:$0xff] }
  0xd0   : > { %918 = vmatpush2.bf16.msra.mxu0 %v7750_v35  ;;  %961 = vmatpush2.bf16.msra.mxu1 %v7751_v36  ;;  %v7085_v24 = vcombine.high %v1383_v19, %v1391_v20  ;;  %v1111_v25 = vld [vmem:[%s8441_s10 + $0x200] sm:$0xff]  ;;  %v7084_v30 = vcombine.low %v1383_v19, %v1391_v20 }
  0xd1   : > { %919 = vmatprep.subr.bf16.mxu0 %v7752_v37  ;;  %962 = vmatprep.subr.bf16.mxu1 %v7754_v38  ;;  %v1119_v26 = vld [vmem:[%s8441_s10 + $0x240] sm:$0xff] }
  0xd2   : > { %v1367_v27 = vld [vmem:[%s8441_s10 + $0xa00] sm:$0xff]  ;;  %v6813_v31 = vcombine.high %v1111_v25, %v1119_v26  ;;  %v6812_v37 = vcombine.low %v1111_v25, %v1119_v26 }
  0xd3   : > { %v1375_v28 = vld [vmem:[%s8441_s10 + $0xa40] sm:$0xff] }
  0xd4   : > { %920 = vmatpush2.bf16.msra.mxu0 %v7756_v39  ;;  %963 = vmatpush2.bf16.msra.mxu1 %v7757_v40  ;;  %v7069_v32 = vcombine.high %v1367_v27, %v1375_v28  ;;  %v1095_v33 = vld [vmem:[%s8441_s10 + $0x180] sm:$0xff]  ;;  %v7068_v38 = vcombine.low %v1367_v27, %v1375_v28 }
  0xd5   : > { %921 = vmatprep.subr.bf16.mxu0 %v7758_v41  ;;  %964 = vmatprep.subr.bf16.mxu1 %v7760_v42  ;;  %v1103_v34 = vld [vmem:[%s8441_s10 + $0x1c0] sm:$0xff] }
  0xd6   : > { %v1351_v35 = vld [vmem:[%s8441_s10 + $0x980] sm:$0xff]  ;;  %v6797_v39 = vcombine.high %v1095_v33, %v1103_v34 }
  0xd7   : > { %v1359_v36 = vld [vmem:[%s8441_s10 + $0x9c0] sm:$0xff] }
  0xd8   : > { %922 = vmatpush2.bf16.msra.mxu0 %v7762_v43  ;;  %965 = vmatpush2.bf16.msra.mxu1 %v7763_v44  ;;  %v7053_v40 = vcombine.high %v1351_v35, %v1359_v36  ;;  %v1079_v41 = vld [vmem:[%s8441_s10 + $0x100] sm:$0xff] }
  0xd9   : > { %923 = vmatprep.subr.bf16.mxu0 %v7764_v45  ;;  %966 = vmatprep.subr.bf16.mxu1 %v7766_v46  ;;  %v1087_v42 = vld [vmem:[%s8441_s10 + $0x140] sm:$0xff]  ;;  %v6796_v45 = vcombine.low %v1095_v33, %v1103_v34  ;;  %v7052_v46 = vcombine.low %v1351_v35, %v1359_v36 }
  0xda   : > { %v1335_v43 = vld [vmem:[%s8441_s10 + $0x900] sm:$0xff]  ;;  %v6781_v47 = vcombine.high %v1079_v41, %v1087_v42 }
  0xdb   : > { %v1343_v44 = vld [vmem:[%s8441_s10 + $0x940] sm:$0xff] }
  0xdc   : > { %924 = vmatpush2.bf16.msra.mxu0 %v7768_v48  ;;  %967 = vmatpush2.bf16.msra.mxu1 %v7769_v49  ;;  %v7037_v48 = vcombine.high %v1335_v43, %v1343_v44  ;;  %v1063_v49 = vld [vmem:[%s8441_s10 + $0x80] sm:$0xff] }
  0xdd   : > { %925 = vmatprep.subr.bf16.mxu0 %v7770_v50  ;;  %968 = vmatprep.subr.bf16.mxu1 %v7772_v51  ;;  %v1071_v50 = vld [vmem:[%s8441_s10 + $0xc0] sm:$0xff] }
  0xde   : > { %v1319_v51 = vld [vmem:[%s8441_s10 + $0x880] sm:$0xff] }
  0xdf   : > { %v1287_v1 = vld [vmem:[%s8441_s10 + $0x780] sm:$0xff] }
  0xe0   : > { %926 = vmatpush2.bf16.msra.mxu0 %v7774_v52  ;;  %969 = vmatpush2.bf16.msra.mxu1 %v7775_v53  ;;  %v1327_v52 = vld [vmem:[%s8441_s10 + $0x8c0] sm:$0xff]  ;;  %v6780_v53 = vcombine.low %v1079_v41, %v1087_v42 }
  0xe1   : > { %927 = vmatprep.subr.bf16.mxu0 %v7776_v54  ;;  %970 = vmatprep.subr.bf16.mxu1 %v7778_v55  ;;  %v7036_v54 = vcombine.low %v1335_v43, %v1343_v44  ;;  %v6765_v55 = vcombine.high %v1063_v49, %v1071_v50  ;;  %v1295_v2 = vld [vmem:[%s8441_s10 + $0x7c0] sm:$0xff] }
  0xe2   : > { %v1543_v3 = vld [vmem:[%s8441_s10 + $0xf80] sm:$0xff] }
  0xe3   : > { %v1271_v9 = vld [vmem:[%s8441_s10 + $0x700] sm:$0xff] }
  0xe4   : > { %928 = vmatpush2.bf16.msra.mxu0 %v7780_v56  ;;  %971 = vmatpush2.bf16.msra.mxu1 %v7781_v57  ;;  %v7021_v56 = vcombine.high %v1319_v51, %v1327_v52  ;;  %v1047_v57 = vld [vmem:[%s8441_s10] sm:$0xff] }
  0xe5   : > { %929 = vmatprep.subr.bf16.mxu0 %v7782_v58  ;;  %972 = vmatprep.subr.bf16.mxu1 %v7784_v59  ;;  %v1055_v58 = vld [vmem:[%s8441_s10 + $0x40] sm:$0xff] }
  0xe6   : > { %v1303_v59 = vld [vmem:[%s8441_s10 + $0x800] sm:$0xff] }
  0xe7   : > { %v1279_v10 = vld [vmem:[%s8441_s10 + $0x740] sm:$0xff] }
  0xe8   : > { %930 = vmatpush2.bf16.msra.mxu0 %v7786_v60  ;;  %973 = vmatpush2.bf16.msra.mxu1 %v7787_v61  ;;  %v1311_v60 = vld [vmem:[%s8441_s10 + $0x840] sm:$0xff]  ;;  %v6764_v61 = vcombine.low %v1063_v49, %v1071_v50 }
  0xe9   : > { %931 = vmatprep.subr.bf16.mxu0 %v7788_v62  ;;  %974 = vmatprep.subr.bf16.mxu1 %v7790_v63  ;;  %v7020_v62 = vcombine.low %v1319_v51, %v1327_v52  ;;  %v6749_v63 = vcombine.high %v1047_v57, %v1055_v58  ;;  %v7005_v0 = vcombine.high %v1303_v59, %v1311_v60  ;;  %v1527_v11 = vld [vmem:[%s8441_s10 + $0xf00] sm:$0xff] }
  0xea   : > { %v1255_v17 = vld [vmem:[%s8441_s10 + $0x680] sm:$0xff] }
  0xeb   : > { %v1263_v18 = vld [vmem:[%s8441_s10 + $0x6c0] sm:$0xff] }
  0xec   : > { %932 = vmatpush2.bf16.msra.mxu0 %v7792_v4  ;;  %975 = vmatpush2.bf16.msra.mxu1 %v7793_v5  ;;  %v1551_v4 = vld [vmem:[%s8441_s10 + $0xfc0] sm:$0xff]  ;;  %v6748_v5 = vcombine.low %v1047_v57, %v1055_v58 }
  0xed   : > { %4119 = vmatprep.subr.bf16.mxu0 %v6861_v6  ;;  %4162 = vmatprep.subr.bf16.mxu1 %v7117_v7  ;;  %v7004_v6 = vcombine.low %v1303_v59, %v1311_v60  ;;  %v6989_v7 = vcombine.high %v1287_v1, %v1295_v2  ;;  %v7245_v8 = vcombine.high %v1543_v3, %v1551_v4  ;;  %v1511_v19 = vld [vmem:[%s8441_s10 + $0xe80] sm:$0xff] }
  0xee   : > { %v1519_v20 = vld [vmem:[%s8441_s10 + $0xec0] sm:$0xff] }
  0xef   : > { %934 = vmatmul.mubr.bf16.vlgmr.msra.gmra.mxu0 %v7794_v12  ;;  %977 = vmatmul.mubr.bf16.vlgmr.msra.gmra.mxu1 %v7794_v12  ;;  %v1535_v12 = vld [vmem:[%s8441_s10 + $0xf40] sm:$0xff] }
  0xf0   : > { %4120 = vmatpush1.bf16.msra.mxu0 %v6860_v13  ;;  %4163 = vmatpush1.bf16.msra.mxu1 %v7116_v14  ;;  %v6988_v13 = vcombine.low %v1287_v1, %v1295_v2  ;;  %v7244_v14 = vcombine.low %v1543_v3, %v1551_v4  ;;  %v1239_v25 = vld [vmem:[%s8441_s10 + $0x600] sm:$0xff]  ;;  %v8585_v3 = vld [vmem:[%s8441_s10 + $0x388] sm:$0xff] }
  0xf1   : > { %4121 = vmatprep.subr.bf16.mxu0 %v6845_v15  ;;  %4164 = vmatprep.subr.bf16.mxu1 %v7101_v16  ;;  %v6973_v15 = vcombine.high %v1271_v9, %v1279_v10  ;;  %v7229_v16 = vcombine.high %v1527_v11, %v1535_v12  ;;  %v1247_v26 = vld [vmem:[%s8441_s10 + $0x640] sm:$0xff]  ;;  %v8588_v4 = vld [vmem:[%s8441_s10 + $0x3c8] sm:$0xff] }
  0xf2   : > { %v1495_v27 = vld [vmem:[%s8441_s10 + $0xe00] sm:$0xff] }
  0xf3   : > { %v1503_v28 = vld [vmem:[%s8441_s10 + $0xe40] sm:$0xff] }
  0xf4   : > { %4122 = vmatpush1.bf16.msra.mxu0 %v6844_v21  ;;  %4165 = vmatpush1.bf16.msra.mxu1 %v7100_v22  ;;  %v6972_v21 = vcombine.low %v1271_v9, %v1279_v10  ;;  %v7228_v22 = vcombine.low %v1527_v11, %v1535_v12  ;;  %v1223_v33 = vld [vmem:[%s8441_s10 + $0x580] sm:$0xff]  ;;  %v551_v11 = vlaneseq }
  0xf5   : > { %4123 = vmatprep.subr.bf16.mxu0 %v6829_v23  ;;  %4166 = vmatprep.subr.bf16.mxu1 %v7085_v24  ;;  %v6957_v23 = vcombine.high %v1255_v17, %v1263_v18  ;;  %v7213_v24 = vcombine.high %v1511_v19, %v1519_v20  ;;  %v1231_v34 = vld [vmem:[%s8441_s10 + $0x5c0] sm:$0xff] }
  0xf6   : > { %v1479_v35 = vld [vmem:[%s8441_s10 + $0xd80] sm:$0xff]  ;;  %v6924_v41 = vcombine.low %v1223_v33, %v1231_v34  ;;  %v8604_v12 = vshrl.u32 %v551_v11, 7 }
  0xf7   : > { %v1487_v36 = vld [vmem:[%s8441_s10 + $0xdc0] sm:$0xff] }
  0xf8   : > { %4124 = vmatpush1.bf16.msra.mxu0 %v6828_v29  ;;  %4167 = vmatpush1.bf16.msra.mxu1 %v7084_v30  ;;  %v6956_v29 = vcombine.low %v1255_v17, %v1263_v18  ;;  %v7212_v30 = vcombine.low %v1511_v19, %v1519_v20  ;;  %v7180_v42 = vcombine.low %v1479_v35, %v1487_v36  ;;  %v1207_v43 = vld [vmem:[%s8441_s10 + $0x500] sm:$0xff]  ;;  %v8617_v17 = vsub.s32 2, %v8604_v12 }
  0xf9   : > { %4125 = vmatprep.subr.bf16.mxu0 %v6813_v31  ;;  %4168 = vmatprep.subr.bf16.mxu1 %v7069_v32  ;;  %v6941_v31 = vcombine.high %v1239_v25, %v1247_v26  ;;  %v7197_v32 = vcombine.high %v1495_v27, %v1503_v28  ;;  %v1215_v44 = vld [vmem:[%s8441_s10 + $0x540] sm:$0xff] }
  0xfa   : > { %v1191_v51 = vld [vmem:[%s8441_s10 + $0x480] sm:$0xff] }
  0xfb   : > { %v1199_v52 = vld [vmem:[%s8441_s10 + $0x4c0] sm:$0xff] }
  0xfc   : > { %4126 = vmatpush1.bf16.msra.mxu0 %v6812_v37  ;;  %4169 = vmatpush1.bf16.msra.mxu1 %v7068_v38  ;;  %v6940_v37 = vcombine.low %v1239_v25, %v1247_v26  ;;  %v7196_v38 = vcombine.low %v1495_v27, %v1503_v28  ;;  %v1175_v59 = vld [vmem:[%s8441_s10 + $0x400] sm:$0xff] }
  0xfd   : > { %4127 = vmatprep.subr.bf16.mxu0 %v6797_v39  ;;  %4170 = vmatprep.subr.bf16.mxu1 %v7053_v40  ;;  %v6925_v39 = vcombine.high %v1223_v33, %v1231_v34  ;;  %v7181_v40 = vcombine.high %v1479_v35, %v1487_v36  ;;  %v1183_v60 = vld [vmem:[%s8441_s10 + $0x440] sm:$0xff] }
 0x100   : > { %4128 = vmatpush1.bf16.msra.mxu0 %v6796_v45  ;;  %4171 = vmatpush1.bf16.msra.mxu1 %v7052_v46  ;;  %v1463_v45 = vld [vmem:[%s8441_s10 + $0xd00] sm:$0xff]  ;;  %v6909_v46 = vcombine.high %v1207_v43, %v1215_v44 }
 0x101   : > { %4129 = vmatprep.subr.bf16.mxu0 %v6781_v47  ;;  %4172 = vmatprep.subr.bf16.mxu1 %v7037_v48  ;;  %v1471_v47 = vld [vmem:[%s8441_s10 + $0xd40] sm:$0xff]  ;;  %v6908_v48 = vcombine.low %v1207_v43, %v1215_v44 }
 0x102   : > { %v7164_v49 = vcombine.low %v1463_v45, %v1471_v47  ;;  %v7165_v50 = vcombine.high %v1463_v45, %v1471_v47 }
 0x104   : > { %4130 = vmatpush1.bf16.msra.mxu0 %v6780_v53  ;;  %4173 = vmatpush1.bf16.msra.mxu1 %v7036_v54  ;;  %v1447_v53 = vld [vmem:[%s8441_s10 + $0xc80] sm:$0xff]  ;;  %v6893_v54 = vcombine.high %v1191_v51, %v1199_v52 }
 0x105   : > { %4131 = vmatprep.subr.bf16.mxu0 %v6765_v55  ;;  %4174 = vmatprep.subr.bf16.mxu1 %v7021_v56  ;;  %v1455_v55 = vld [vmem:[%s8441_s10 + $0xcc0] sm:$0xff]  ;;  %v6892_v56 = vcombine.low %v1191_v51, %v1199_v52  ;;  %v1152_v51 = vld [vmem:[%s8441_s10 + $0x348] sm:$0xff] }
 0x106   : > { %v7148_v57 = vcombine.low %v1447_v53, %v1455_v55  ;;  %v7149_v58 = vcombine.high %v1447_v53, %v1455_v55 }
 0x108   : > { %4132 = vmatpush1.bf16.msra.mxu0 %v6764_v61  ;;  %4175 = vmatpush1.bf16.msra.mxu1 %v7020_v62  ;;  %v1431_v61 = vld [vmem:[%s8441_s10 + $0xc00] sm:$0xff]  ;;  %v6877_v62 = vcombine.high %v1175_v59, %v1183_v60 }
 0x109   : > { %4133 = vmatprep.subr.bf16.mxu0 %v6749_v63  ;;  %4176 = vmatprep.subr.bf16.mxu1 %v7005_v0  ;;  %v1439_v63 = vld [vmem:[%s8441_s10 + $0xc40] sm:$0xff]  ;;  %v6876_v0 = vcombine.low %v1175_v59, %v1183_v60 }
 0x10a   : > { %v7132_v1 = vcombine.low %v1431_v61, %v1439_v63  ;;  %v7133_v2 = vcombine.high %v1431_v61, %v1439_v63  ;;  %v1128_v63 = vld [vmem:[%s8441_s10 + $0x288] sm:$0xff] }
 0x10c   : > { %4134 = vmatpush1.bf16.msra.mxu0 %v6748_v5  ;;  %4177 = vmatpush1.bf16.msra.mxu1 %v7004_v6  ;;  %v8591_v5 = vld [vmem:[%s8441_s10 + $0xb88] sm:$0xff]  ;;  %v6863_v6 = vcombine.high %v8585_v3, %v8588_v4 }
 0x10d   : > { %4135 = vmatprep.subr.bf16.mxu0 %v6989_v7  ;;  %4178 = vmatprep.subr.bf16.mxu1 %v7245_v8  ;;  %v8596_v7 = vld [vmem:[%s8441_s10 + $0xbc8] sm:$0xff]  ;;  %v6862_v8 = vcombine.low %v8585_v3, %v8588_v4 }
 0x10e   : > { %v7118_v9 = vcombine.low %v8591_v5, %v8596_v7  ;;  %v7119_v10 = vcombine.high %v8591_v5, %v8596_v7  ;;  %v1120_v3 = vld [vmem:[%s8441_s10 + $0x248] sm:$0xff] }
 0x10f   : > { %v1368_v4 = vld [vmem:[%s8441_s10 + $0xa08] sm:$0xff] }
 0x110   : > { %4136 = vmatpush2.bf16.msra.mxu0 %v6988_v13  ;;  %4179 = vmatpush2.bf16.msra.mxu1 %v7244_v14  ;;  %v8607_v13 = vsub.s32 0, %v8604_v12  ;;  %v549_v14 = vld [vmem:[%s8439_s21] sm:$0xf] }
 0x111   : > { %4137 = vmatprep.subr.bf16.mxu0 %v6973_v15  ;;  %4180 = vmatprep.subr.bf16.mxu1 %v7229_v16  ;;  %v8611_v15 = vsub.s32 1, %v8604_v12  ;;  %v8614_v16 = vsub.s32 3, %v8604_v12 }
 0x112   : > { %v554_v18 = vrot.slane %v549_v14, %v8607_v13 }
 0x114   : > { %4138 = vmatpush2.bf16.msra.mxu0 %v6972_v21  ;;  %4181 = vmatpush2.bf16.msra.mxu1 %v7228_v22  ;;  %v558_v21 = vrot.slane %v549_v14, %v8611_v15  ;;  %v566_v22 = vrot.slane %v549_v14, %v8614_v16 }
 0x115   : > { %4139 = vmatprep.subr.bf16.mxu0 %v6957_v23  ;;  %4182 = vmatprep.subr.bf16.mxu1 %v7213_v24  ;;  %v562_v23 = vrot.slane %v549_v14, %v8617_v17 }
 0x118   : > { %4140 = vmatpush2.bf16.msra.mxu0 %v6956_v29  ;;  %4183 = vmatpush2.bf16.msra.mxu1 %v7212_v30 }
 0x119   : > { %4141 = vmatprep.subr.bf16.mxu0 %v6941_v31  ;;  %4184 = vmatprep.subr.bf16.mxu1 %v7197_v32 }
 0x11c   : > { %4142 = vmatpush2.bf16.msra.mxu0 %v6940_v37  ;;  %4185 = vmatpush2.bf16.msra.mxu1 %v7196_v38 }
 0x11d   : > { %4143 = vmatprep.subr.bf16.mxu0 %v6925_v39  ;;  %4186 = vmatprep.subr.bf16.mxu1 %v7181_v40 }
 0x120   : > { %4144 = vmatpush2.bf16.msra.mxu0 %v6924_v41  ;;  %4187 = vmatpush2.bf16.msra.mxu1 %v7180_v42 }
 0x121   : > { %4145 = vmatprep.subr.bf16.mxu0 %v6909_v46  ;;  %4188 = vmatprep.subr.bf16.mxu1 %v7165_v50  ;;  %v1144_v50 = vld [vmem:[%s8441_s10 + $0x308] sm:$0xff] }
 0x124   : > { %4146 = vmatpush2.bf16.msra.mxu0 %v6908_v48  ;;  %4189 = vmatpush2.bf16.msra.mxu1 %v7164_v49 }
 0x125   : > { %4147 = vmatprep.subr.bf16.mxu0 %v6893_v54  ;;  %4190 = vmatprep.subr.bf16.mxu1 %v7149_v58 }
 0x128   : > { %4148 = vmatpush2.bf16.msra.mxu0 %v6892_v56  ;;  %4191 = vmatpush2.bf16.msra.mxu1 %v7148_v57  ;;  %v1400_v56 = vld [vmem:[%s8441_s10 + $0xb08] sm:$0xff] }
 0x129   : > { %4149 = vmatprep.subr.bf16.mxu0 %v6877_v62  ;;  %4192 = vmatprep.subr.bf16.mxu1 %v7133_v2  ;;  %v1408_v57 = vld [vmem:[%s8441_s10 + $0xb48] sm:$0xff]  ;;  %v6847_v62 = vcombine.high %v1144_v50, %v1152_v51 }
 0x12a   : > { %v1384_v2 = vld [vmem:[%s8441_s10 + $0xa88] sm:$0xff]  ;;  %v7102_v11 = vcombine.low %v1400_v56, %v1408_v57 }
 0x12c   : > { %4150 = vmatpush2.bf16.msra.mxu0 %v6876_v0  ;;  %4193 = vmatpush2.bf16.msra.mxu1 %v7132_v1  ;;  %v1136_v0 = vld [vmem:[%s8441_s10 + $0x2c8] sm:$0xff]  ;;  %v7103_v1 = vcombine.high %v1400_v56, %v1408_v57 }
 0x12d   : > { %4205 = vmatprep.subr.bf16.mxu0 %v6863_v6  ;;  %4248 = vmatprep.subr.bf16.mxu1 %v7119_v10  ;;  %v1392_v6 = vld [vmem:[%s8441_s10 + $0xac8] sm:$0xff]  ;;  %v6846_v10 = vcombine.low %v1144_v50, %v1152_v51  ;;  %v6831_v14 = vcombine.high %v1128_v63, %v1136_v0  ;;  %v6830_v5 = vcombine.low %v1128_v63, %v1136_v0 }
 0x12e   : > { %v7086_v7 = vcombine.low %v1384_v2, %v1392_v6  ;;  %v1544_v56 = vld [vmem:[%s8441_s10 + $0xf88] sm:$0xff] }
 0x12f   : > { %v1552_v57 = vld [vmem:[%s8441_s10 + $0xfc8] sm:$0xff] }
 0x130   : > { %v7247_v0 = vcombine.high %v1544_v56, %v1552_v57 }
 0x1af   : > { %v935_v19 = vpop.f32.mrf.mxu0  ;;  %v978_v20 = vpop.f32.mrf.mxu1 }
 0x1b0   : > { %v936_v26 = vadd.f32 %v935_v19, %v554_v18  ;;  %v979_v33 = vadd.f32 %v978_v20, %v562_v23  ;;  %v1112_v19 = vld [vmem:[%s8441_s10 + $0x208] sm:$0xff] }
 0x1b1   : > { %v937_v24 = vpop.f32.mrf.mxu0  ;;  %v980_v25 = vpop.f32.mrf.mxu1 }
 0x1b2   : > { %v938_v27 = vadd.f32 %v937_v24, %v558_v21  ;;  %v981_v30 = vadd.f32 %v980_v25, %v566_v22  ;;  %vm987_vm0 = vcmp.gt.f32.partialorder %v936_v26, 0.0  ;;  %v995_v41 = vmul.f32 0.01, %v936_v26  ;;  %v1360_v24 = vld [vmem:[%s8441_s10 + $0x9c8] sm:$0xff] }
 0x1b3   : > { %v939_v28 = vpop.f32.mrf.mxu0  ;;  %v982_v29 = vpop.f32.mrf.mxu1  ;;  %v997_v43 = vmul.f32 0.01, %v979_v33  ;;  %vm989_vm6 = vcmp.gt.f32.partialorder %v979_v33, 0.0  ;;  %v6814_v25 = vcombine.low %v1112_v19, %v1120_v3 }
 0x1b4   : > { %v940_v31 = vadd.f32 %v939_v28, %v554_v18  ;;  %v983_v32 = vadd.f32 %v982_v29, %v562_v23  ;;  %v996_v36 = vmul.f32 0.01, %v938_v27  ;;  %vm988_vm2 = vcmp.gt.f32.partialorder %v938_v27, 0.0  ;;  %v1352_v23 = vld [vmem:[%s8441_s10 + $0x988] sm:$0xff] }
 0x1b5   : > { %v941_v34 = vpop.f32.mrf.mxu0  ;;  %v984_v35 = vpop.f32.mrf.mxu1  ;;  %v998_v42 = vmul.f32 0.01, %v981_v30  ;;  %vm990_vm4 = vcmp.gt.f32.partialorder %v981_v30, 0.0  ;;  %v1003_v52 = vsel %vm987_vm0, %v936_v26, %v995_v41  ;;  %v1005_v58 = vsel %vm989_vm6, %v979_v33, %v997_v43  ;;  %v1080_v29 = vld [vmem:[%s8441_s10 + $0x108] sm:$0xff] }
 0x1b6   : > { %v999_v37 = vmul.f32 0.01, %v940_v31  ;;  %vm991_vm1 = vcmp.gt.f32.partialorder %v940_v31, 0.0  ;;  %v1001_v38 = vmul.f32 0.01, %v983_v32  ;;  %v942_v39 = vadd.f32 %v941_v34, %v558_v21  ;;  %v1096_v21 = vld [vmem:[%s8441_s10 + $0x188] sm:$0xff] }
 0x1b7   : > { %v985_v40 = vadd.f32 %v984_v35, %v566_v22  ;;  %vm993_vm3 = vcmp.gt.f32.partialorder %v983_v32, 0.0  ;;  %v1004_v47 = vsel %vm988_vm2, %v938_v27, %v996_v36  ;;  %v1006_v53 = vsel %vm990_vm4, %v981_v30, %v998_v42  ;;  %v1104_v22 = vld [vmem:[%s8441_s10 + $0x1c8] sm:$0xff] }
 0x1b8   : > { %vm992_vm5 = vcmp.gt.f32.partialorder %v942_v39, 0.0  ;;  %v1000_v44 = vmul.f32 0.01, %v942_v39  ;;  %v1007_v45 = vsel %vm991_vm1, %v940_v31, %v999_v37  ;;  %v1009_v48 = vsel %vm993_vm3, %v983_v32, %v1001_v38  ;;  %v1088_v30 = vld [vmem:[%s8441_s10 + $0x148] sm:$0xff] }
 0x1b9   : > { %vm994_vm7 = vcmp.gt.f32.partialorder %v985_v40, 0.0  ;;  %v1002_v46 = vmul.f32 0.01, %v985_v40  ;;  %v8630_v59 = vpack.c.bf16 %v1007_v45, %v1003_v52  ;;  %v8634_v61 = vpack.c.bf16 %v1009_v48, %v1005_v58  ;;  %v1336_v31 = vld [vmem:[%s8441_s10 + $0x908] sm:$0xff] }
 0x1ba   : > { %v1008_v49 = vsel %vm992_vm5, %v942_v39, %v1000_v44  ;;  %v7087_v18 = vcombine.high %v1384_v2, %v1392_v6  ;;  %v6799_v27 = vcombine.high %v1096_v21, %v1104_v22  ;;  %v7055_v28 = vcombine.high %v1352_v23, %v1360_v24  ;;  %v1344_v32 = vld [vmem:[%s8441_s10 + $0x948] sm:$0xff] }
 0x1bb   : > { %v8626_v54 = vpack.c.bf16 %v1008_v49, %v1004_v47  ;;  %v1010_v55 = vsel %vm994_vm7, %v985_v40, %v1002_v46  ;;  %v6798_v33 = vcombine.low %v1096_v21, %v1104_v22  ;;  %v7054_v34 = vcombine.low %v1352_v23, %v1360_v24  ;;  %v1064_v37 = vld [vmem:[%s8441_s10 + $0x88] sm:$0xff] }
 0x1bc   : > { %v8632_v60 = vpack.c.bf16 %v1010_v55, %v1006_v53  ;;  %v6783_v35 = vcombine.high %v1080_v29, %v1088_v30  ;;  %v7039_v36 = vcombine.high %v1336_v31, %v1344_v32  ;;  %v1072_v38 = vld [vmem:[%s8441_s10 + $0xc8] sm:$0xff]  ;;  %v6782_v41 = vcombine.low %v1080_v29, %v1088_v30 }
 0x1bd   : > { %4151 = vmatprep.mubr.bf16.mxu0 %v8626_v54  ;;  %v1320_v39 = vld [vmem:[%s8441_s10 + $0x888] sm:$0xff]  ;;  %v7038_v42 = vcombine.low %v1336_v31, %v1344_v32  ;;  %v6767_v43 = vcombine.high %v1064_v37, %v1072_v38  ;;  %v6766_v49 = vcombine.low %v1064_v37, %v1072_v38 }
 0x1be   : > { %4194 = vmatprep.mubr.bf16.mxu1 %v8632_v60  ;;  %4152 = vmatmul.mubr.bf16.vlgmr.msra.gmra.mxu0 %v8630_v59  ;;  %v1328_v40 = vld [vmem:[%s8441_s10 + $0x8c8] sm:$0xff] }
 0x1bf   : > { %4195 = vmatmul.mubr.bf16.vlgmr.msra.gmra.mxu1 %v8634_v61  ;;  %4206 = vmatpush1.bf16.msra.mxu0 %v6862_v8  ;;  %v1376_v8 = vld [vmem:[%s8441_s10 + $0xa48] sm:$0xff]  ;;  %v7023_v44 = vcombine.high %v1320_v39, %v1328_v40  ;;  %v7022_v50 = vcombine.low %v1320_v39, %v1328_v40 }
 0x1c0   : > { %4249 = vmatpush1.bf16.msra.mxu1 %v7118_v9  ;;  %4237 = vmatprep.mubr.bf16.mxu0 %v8626_v54  ;;  %v6815_v9 = vcombine.high %v1112_v19, %v1120_v3  ;;  %v7071_v20 = vcombine.high %v1368_v4, %v1376_v8  ;;  %v7070_v26 = vcombine.low %v1368_v4, %v1376_v8  ;;  %v1048_v45 = vld [vmem:[%s8441_s10 + $0x8] sm:$0xff] }
 0x1c1   : > { %4280 = vmatprep.mubr.bf16.mxu1 %v8632_v60  ;;  %4207 = vmatprep.subr.bf16.mxu0 %v6847_v62  ;;  %v1056_v46 = vld [vmem:[%s8441_s10 + $0x48] sm:$0xff] }
 0x1c2   : > { %4250 = vmatprep.subr.bf16.mxu1 %v7103_v1  ;;  %v1304_v47 = vld [vmem:[%s8441_s10 + $0x808] sm:$0xff]  ;;  %v6751_v51 = vcombine.high %v1048_v45, %v1056_v46  ;;  %v6750_v58 = vcombine.low %v1048_v45, %v1056_v46 }
 0x1c3   : > { %4208 = vmatpush1.bf16.msra.mxu0 %v6846_v10  ;;  %v1312_v48 = vld [vmem:[%s8441_s10 + $0x848] sm:$0xff] }
 0x1c4   : > { %4251 = vmatpush1.bf16.msra.mxu1 %v7102_v11  ;;  %4209 = vmatprep.subr.bf16.mxu0 %v6831_v14  ;;  %v7007_v52 = vcombine.high %v1304_v47, %v1312_v48  ;;  %v1288_v53 = vld [vmem:[%s8441_s10 + $0x788] sm:$0xff]  ;;  %v7006_v62 = vcombine.low %v1304_v47, %v1312_v48  ;;  %v7246_v14 = vcombine.low %v1544_v56, %v1552_v57 }
 0x1c5   : > { %4252 = vmatprep.subr.bf16.mxu1 %v7087_v18  ;;  %v1296_v55 = vld [vmem:[%s8441_s10 + $0x7c8] sm:$0xff] }
 0x1c6   : > { %v6991_v63 = vcombine.high %v1288_v53, %v1296_v55  ;;  %v1272_v1 = vld [vmem:[%s8441_s10 + $0x708] sm:$0xff]  ;;  %v6990_v11 = vcombine.low %v1288_v53, %v1296_v55 }
 0x1c7   : > { %4210 = vmatpush1.bf16.msra.mxu0 %v6830_v5  ;;  %v1280_v2 = vld [vmem:[%s8441_s10 + $0x748] sm:$0xff] }
 0x1c8   : > { %4253 = vmatpush1.bf16.msra.mxu1 %v7086_v7  ;;  %4211 = vmatprep.subr.bf16.mxu0 %v6815_v9  ;;  %v1528_v6 = vld [vmem:[%s8441_s10 + $0xf08] sm:$0xff]  ;;  %v6975_v18 = vcombine.high %v1272_v1, %v1280_v2  ;;  %v6974_v7 = vcombine.low %v1272_v1, %v1280_v2  ;;  %v1161_v2 = vld [vmem:[%s8441_s10 + $0x390] sm:$0xff] }
 0x1c9   : > { %4254 = vmatprep.subr.bf16.mxu1 %v7071_v20  ;;  %v1536_v10 = vld [vmem:[%s8441_s10 + $0xf48] sm:$0xff] }
 0x1ca   : > { %v7231_v19 = vcombine.high %v1528_v6, %v1536_v10  ;;  %v1256_v3 = vld [vmem:[%s8441_s10 + $0x688] sm:$0xff]  ;;  %v7230_v9 = vcombine.low %v1528_v6, %v1536_v10  ;;  %v1169_v6 = vld [vmem:[%s8441_s10 + $0x3d0] sm:$0xff] }
 0x1cb   : > { %4212 = vmatpush1.bf16.msra.mxu0 %v6814_v25  ;;  %v1264_v4 = vld [vmem:[%s8441_s10 + $0x6c8] sm:$0xff]  ;;  %v1417_v10 = vld [vmem:[%s8441_s10 + $0xb90] sm:$0xff] }
 0x1cc   : > { %4255 = vmatpush1.bf16.msra.mxu1 %v7070_v26  ;;  %4213 = vmatprep.subr.bf16.mxu0 %v6799_v27  ;;  %v1512_v8 = vld [vmem:[%s8441_s10 + $0xe88] sm:$0xff]  ;;  %v6959_v20 = vcombine.high %v1256_v3, %v1264_v4  ;;  %v6958_v26 = vcombine.low %v1256_v3, %v1264_v4  ;;  %v1145_v4 = vld [vmem:[%s8441_s10 + $0x310] sm:$0xff] }
 0x1cd   : > { %4256 = vmatprep.subr.bf16.mxu1 %v7055_v28  ;;  %v1520_v5 = vld [vmem:[%s8441_s10 + $0xec8] sm:$0xff] }
 0x1ce   : > { %v7215_v21 = vcombine.high %v1512_v8, %v1520_v5  ;;  %v1240_v22 = vld [vmem:[%s8441_s10 + $0x608] sm:$0xff]  ;;  %v7214_v27 = vcombine.low %v1512_v8, %v1520_v5  ;;  %v1153_v8 = vld [vmem:[%s8441_s10 + $0x350] sm:$0xff]  ;;  %v6864_v5 = vcombine.low %v1161_v2, %v1169_v6 }
 0x1cf   : > { %4214 = vmatpush1.bf16.msra.mxu0 %v6798_v33  ;;  %v1248_v23 = vld [vmem:[%s8441_s10 + $0x648] sm:$0xff] }
 0x1d0   : > { %4257 = vmatpush1.bf16.msra.mxu1 %v7054_v34  ;;  %4215 = vmatprep.subr.bf16.mxu0 %v6783_v35  ;;  %v1496_v24 = vld [vmem:[%s8441_s10 + $0xe08] sm:$0xff]  ;;  %v6943_v28 = vcombine.high %v1240_v22, %v1248_v23  ;;  %v6942_v34 = vcombine.low %v1240_v22, %v1248_v23  ;;  %v1129_v22 = vld [vmem:[%s8441_s10 + $0x290] sm:$0xff] }
 0x1d1   : > { %4258 = vmatprep.subr.bf16.mxu1 %v7039_v36  ;;  %v1504_v25 = vld [vmem:[%s8441_s10 + $0xe48] sm:$0xff]  ;;  %v1137_v23 = vld [vmem:[%s8441_s10 + $0x2d0] sm:$0xff] }
 0x1d2   : > { %v7199_v29 = vcombine.high %v1496_v24, %v1504_v25  ;;  %v1224_v30 = vld [vmem:[%s8441_s10 + $0x588] sm:$0xff]  ;;  %v7198_v35 = vcombine.low %v1496_v24, %v1504_v25  ;;  %v1385_v25 = vld [vmem:[%s8441_s10 + $0xa90] sm:$0xff] }
 0x1d3   : > { %4216 = vmatpush1.bf16.msra.mxu0 %v6782_v41  ;;  %v1232_v31 = vld [vmem:[%s8441_s10 + $0x5c8] sm:$0xff] }
 0x1d4   : > { %4259 = vmatpush1.bf16.msra.mxu1 %v7038_v42  ;;  %4217 = vmatprep.subr.bf16.mxu0 %v6767_v43  ;;  %v1480_v32 = vld [vmem:[%s8441_s10 + $0xd88] sm:$0xff]  ;;  %v6927_v36 = vcombine.high %v1224_v30, %v1232_v31  ;;  %v6926_v42 = vcombine.low %v1224_v30, %v1232_v31  ;;  %v1113_v31 = vld [vmem:[%s8441_s10 + $0x210] sm:$0xff] }
 0x1d5   : > { %4260 = vmatprep.subr.bf16.mxu1 %v7023_v44  ;;  %v1488_v33 = vld [vmem:[%s8441_s10 + $0xdc8] sm:$0xff] }
 0x1d6   : > { %v7183_v37 = vcombine.high %v1480_v32, %v1488_v33  ;;  %v1208_v38 = vld [vmem:[%s8441_s10 + $0x508] sm:$0xff]  ;;  %v7182_v43 = vcombine.low %v1480_v32, %v1488_v33  ;;  %v1121_v32 = vld [vmem:[%s8441_s10 + $0x250] sm:$0xff] }
 0x1d7   : > { %4218 = vmatpush1.bf16.msra.mxu0 %v6766_v49  ;;  %v1216_v39 = vld [vmem:[%s8441_s10 + $0x548] sm:$0xff]  ;;  %v1369_v33 = vld [vmem:[%s8441_s10 + $0xa10] sm:$0xff] }
 0x1d8   : > { %4261 = vmatpush1.bf16.msra.mxu1 %v7022_v50  ;;  %4219 = vmatprep.subr.bf16.mxu0 %v6751_v51  ;;  %v1464_v40 = vld [vmem:[%s8441_s10 + $0xd08] sm:$0xff]  ;;  %v6911_v44 = vcombine.high %v1208_v38, %v1216_v39  ;;  %v6910_v50 = vcombine.low %v1208_v38, %v1216_v39  ;;  %v1097_v39 = vld [vmem:[%s8441_s10 + $0x190] sm:$0xff] }
 0x1d9   : > { %4262 = vmatprep.subr.bf16.mxu1 %v7007_v52  ;;  %v1472_v41 = vld [vmem:[%s8441_s10 + $0xd48] sm:$0xff] }
 0x1da   : > { %v7167_v45 = vcombine.high %v1464_v40, %v1472_v41  ;;  %v1192_v46 = vld [vmem:[%s8441_s10 + $0x488] sm:$0xff]  ;;  %v7166_v51 = vcombine.low %v1464_v40, %v1472_v41  ;;  %v1105_v40 = vld [vmem:[%s8441_s10 + $0x1d0] sm:$0xff] }
 0x1db   : > { %4220 = vmatpush1.bf16.msra.mxu0 %v6750_v58  ;;  %v1200_v47 = vld [vmem:[%s8441_s10 + $0x4c8] sm:$0xff]  ;;  %v1353_v41 = vld [vmem:[%s8441_s10 + $0x990] sm:$0xff] }
 0x1dc   : > { %4263 = vmatpush1.bf16.msra.mxu1 %v7006_v62  ;;  %4221 = vmatprep.subr.bf16.mxu0 %v6991_v63  ;;  %v1448_v48 = vld [vmem:[%s8441_s10 + $0xc88] sm:$0xff]  ;;  %v6895_v52 = vcombine.high %v1192_v46, %v1200_v47  ;;  %v6894_v62 = vcombine.low %v1192_v46, %v1200_v47  ;;  %v1081_v47 = vld [vmem:[%s8441_s10 + $0x110] sm:$0xff] }
 0x1dd   : > { %4264 = vmatprep.subr.bf16.mxu1 %v7247_v0  ;;  %v1456_v49 = vld [vmem:[%s8441_s10 + $0xcc8] sm:$0xff] }
 0x1de   : > { %v7151_v53 = vcombine.high %v1448_v48, %v1456_v49  ;;  %v1176_v55 = vld [vmem:[%s8441_s10 + $0x408] sm:$0xff]  ;;  %v7150_v63 = vcombine.low %v1448_v48, %v1456_v49  ;;  %v1089_v48 = vld [vmem:[%s8441_s10 + $0x150] sm:$0xff] }
 0x1df   : > { %4222 = vmatpush2.bf16.msra.mxu0 %v6990_v11  ;;  %v1184_v56 = vld [vmem:[%s8441_s10 + $0x448] sm:$0xff]  ;;  %v1425_v11 = vld [vmem:[%s8441_s10 + $0xbd0] sm:$0xff] }
 0x1e0   : > { %4265 = vmatpush2.bf16.msra.mxu1 %v7246_v14  ;;  %4223 = vmatprep.subr.bf16.mxu0 %v6975_v18  ;;  %v1432_v57 = vld [vmem:[%s8441_s10 + $0xc08] sm:$0xff]  ;;  %v6879_v0 = vcombine.high %v1176_v55, %v1184_v56  ;;  %v6878_v14 = vcombine.low %v1176_v55, %v1184_v56  ;;  %v7121_v3 = vcombine.high %v1417_v10, %v1425_v11  ;;  %v1337_v49 = vld [vmem:[%s8441_s10 + $0x910] sm:$0xff] }
 0x1e1   : > { %4266 = vmatprep.subr.bf16.mxu1 %v7231_v19  ;;  %v1440_v58 = vld [vmem:[%s8441_s10 + $0xc48] sm:$0xff]  ;;  %v6865_v19 = vcombine.high %v1161_v2, %v1169_v6  ;;  %v1065_v56 = vld [vmem:[%s8441_s10 + $0x90] sm:$0xff] }
 0x1e2   : > { %v7135_v1 = vcombine.high %v1432_v57, %v1440_v58  ;;  %v7134_v18 = vcombine.low %v1432_v57, %v1440_v58  ;;  %v1073_v57 = vld [vmem:[%s8441_s10 + $0xd0] sm:$0xff] }
 0x1e3   : > { %4224 = vmatpush2.bf16.msra.mxu0 %v6974_v7  ;;  %v1401_v7 = vld [vmem:[%s8441_s10 + $0xb10] sm:$0xff] }
 0x1e4   : > { %4267 = vmatpush2.bf16.msra.mxu1 %v7230_v9  ;;  %4225 = vmatprep.subr.bf16.mxu0 %v6959_v20  ;;  %v1409_v9 = vld [vmem:[%s8441_s10 + $0xb50] sm:$0xff]  ;;  %v7120_v20 = vcombine.low %v1417_v10, %v1425_v11 }
 0x1e5   : > { %4268 = vmatprep.subr.bf16.mxu1 %v7215_v21  ;;  %v6849_v21 = vcombine.high %v1145_v4, %v1153_v8  ;;  %v7105_v24 = vcombine.high %v1401_v7, %v1409_v9  ;;  %v1321_v58 = vld [vmem:[%s8441_s10 + $0x890] sm:$0xff] }
 0x1e6   : > { %v1049_v6 = vld [vmem:[%s8441_s10 + $0x10] sm:$0xff] }
 0x1e7   : > { %4226 = vmatpush2.bf16.msra.mxu0 %v6958_v26  ;;  %v1393_v26 = vld [vmem:[%s8441_s10 + $0xad0] sm:$0xff] }
 0x1e8   : > { %4269 = vmatpush2.bf16.msra.mxu1 %v7214_v27  ;;  %4227 = vmatprep.subr.bf16.mxu0 %v6943_v28  ;;  %v6848_v27 = vcombine.low %v1145_v4, %v1153_v8  ;;  %v7104_v28 = vcombine.low %v1401_v7, %v1409_v9  ;;  %v7089_v30 = vcombine.high %v1385_v25, %v1393_v26  ;;  %v1057_v10 = vld [vmem:[%s8441_s10 + $0x50] sm:$0xff] }
 0x1e9   : > { %4270 = vmatprep.subr.bf16.mxu1 %v7199_v29  ;;  %v6833_v29 = vcombine.high %v1129_v22, %v1137_v23  ;;  %v1305_v11 = vld [vmem:[%s8441_s10 + $0x810] sm:$0xff] }
 0x1ea   : > { %v1289_v8 = vld [vmem:[%s8441_s10 + $0x790] sm:$0xff] }
 0x1eb   : > { %4228 = vmatpush2.bf16.msra.mxu0 %v6942_v34  ;;  %v1377_v34 = vld [vmem:[%s8441_s10 + $0xa50] sm:$0xff] }
 0x1ec   : > { %4271 = vmatpush2.bf16.msra.mxu1 %v7198_v35  ;;  %4229 = vmatprep.subr.bf16.mxu0 %v6927_v36  ;;  %v6832_v35 = vcombine.low %v1129_v22, %v1137_v23  ;;  %v7088_v36 = vcombine.low %v1385_v25, %v1393_v26  ;;  %v7073_v38 = vcombine.high %v1369_v33, %v1377_v34  ;;  %v1545_v7 = vld [vmem:[%s8441_s10 + $0xf90] sm:$0xff] }
 0x1ed   : > { %4272 = vmatprep.subr.bf16.mxu1 %v7183_v37  ;;  %v6817_v37 = vcombine.high %v1113_v31, %v1121_v32  ;;  %v1553_v9 = vld [vmem:[%s8441_s10 + $0xfd0] sm:$0xff] }
 0x1ee   : > { %v7249_v23 = vcombine.high %v1545_v7, %v1553_v9  ;;  %v1281_v25 = vld [vmem:[%s8441_s10 + $0x750] sm:$0xff] }
 0x1ef   : > { %4230 = vmatpush2.bf16.msra.mxu0 %v6926_v42  ;;  %v1361_v42 = vld [vmem:[%s8441_s10 + $0x9d0] sm:$0xff] }
 0x1f0   : > { %4273 = vmatpush2.bf16.msra.mxu1 %v7182_v43  ;;  %4231 = vmatprep.subr.bf16.mxu0 %v6911_v44  ;;  %v6816_v43 = vcombine.low %v1113_v31, %v1121_v32  ;;  %v7072_v44 = vcombine.low %v1369_v33, %v1377_v34  ;;  %v7057_v46 = vcombine.high %v1353_v41, %v1361_v42  ;;  %v1529_v26 = vld [vmem:[%s8441_s10 + $0xf10] sm:$0xff] }
 0x1f1   : > { %4274 = vmatprep.subr.bf16.mxu1 %v7167_v45  ;;  %v6801_v45 = vcombine.high %v1097_v39, %v1105_v40  ;;  %v1257_v32 = vld [vmem:[%s8441_s10 + $0x690] sm:$0xff] }
 0x1f2   : > { %v1265_v33 = vld [vmem:[%s8441_s10 + $0x6d0] sm:$0xff] }
 0x1f3   : > { %4232 = vmatpush2.bf16.msra.mxu0 %v6910_v50  ;;  %v1345_v50 = vld [vmem:[%s8441_s10 + $0x950] sm:$0xff] }
 0x1f4   : > { %4275 = vmatpush2.bf16.msra.mxu1 %v7166_v51  ;;  %4233 = vmatprep.subr.bf16.mxu0 %v6895_v52  ;;  %v6800_v51 = vcombine.low %v1097_v39, %v1105_v40  ;;  %v7056_v52 = vcombine.low %v1353_v41, %v1361_v42  ;;  %v7041_v55 = vcombine.high %v1337_v49, %v1345_v50  ;;  %v1513_v34 = vld [vmem:[%s8441_s10 + $0xe90] sm:$0xff] }
 0x1f5   : > { %4276 = vmatprep.subr.bf16.mxu1 %v7151_v53  ;;  %v6785_v53 = vcombine.high %v1081_v47, %v1089_v48  ;;  %v1241_v40 = vld [vmem:[%s8441_s10 + $0x610] sm:$0xff] }
 0x1f6   : > { %v1249_v41 = vld [vmem:[%s8441_s10 + $0x650] sm:$0xff] }
 0x1f7   : > { %4234 = vmatpush2.bf16.msra.mxu0 %v6894_v62  ;;  %v1329_v62 = vld [vmem:[%s8441_s10 + $0x8d0] sm:$0xff] }
 0x1f8   : > { %4277 = vmatpush2.bf16.msra.mxu1 %v7150_v63  ;;  %4235 = vmatprep.subr.bf16.mxu0 %v6879_v0  ;;  %v6784_v63 = vcombine.low %v1081_v47, %v1089_v48  ;;  %v7040_v0 = vcombine.low %v1337_v49, %v1345_v50  ;;  %v7025_v2 = vcombine.high %v1321_v58, %v1329_v62  ;;  %v1497_v42 = vld [vmem:[%s8441_s10 + $0xe10] sm:$0xff] }
 0x1f9   : > { %4278 = vmatprep.subr.bf16.mxu1 %v7135_v1  ;;  %v6769_v1 = vcombine.high %v1065_v56, %v1073_v57  ;;  %v1225_v48 = vld [vmem:[%s8441_s10 + $0x590] sm:$0xff] }
 0x1fa   : > { %v1233_v49 = vld [vmem:[%s8441_s10 + $0x5d0] sm:$0xff] }
 0x1fb   : > { %4236 = vmatpush2.bf16.msra.mxu0 %v6878_v14  ;;  %v1313_v14 = vld [vmem:[%s8441_s10 + $0x850] sm:$0xff] }
 0x1fc   : > { %4279 = vmatpush2.bf16.msra.mxu1 %v7134_v18  ;;  %4291 = vmatprep.subr.bf16.mxu0 %v6865_v19  ;;  %v6768_v18 = vcombine.low %v1065_v56, %v1073_v57  ;;  %v7024_v19 = vcombine.low %v1321_v58, %v1329_v62  ;;  %v7009_v4 = vcombine.high %v1305_v11, %v1313_v14  ;;  %v1481_v50 = vld [vmem:[%s8441_s10 + $0xd90] sm:$0xff] }
 0x1fd   : > { %4334 = vmatprep.subr.bf16.mxu1 %v7121_v3  ;;  %v6753_v3 = vcombine.high %v1049_v6, %v1057_v10  ;;  %v1209_v57 = vld [vmem:[%s8441_s10 + $0x510] sm:$0xff] }
 0x1fe   : > { %4238 = vmatmul.mubr.bf16.vlgmr.msra.gmra.mxu0 %v8630_v59  ;;  %v1217_v58 = vld [vmem:[%s8441_s10 + $0x550] sm:$0xff] }
 0x1ff   : > { %4281 = vmatmul.mubr.bf16.vlgmr.msra.gmra.mxu1 %v8634_v61  ;;  %4292 = vmatpush1.bf16.msra.mxu0 %v6864_v5  ;;  %v1297_v5 = vld [vmem:[%s8441_s10 + $0x7d0] sm:$0xff] }
 0x200   : > { %4323 = vmatprep.mubr.bf16.mxu0 %v8626_v54  ;;  %4335 = vmatpush1.bf16.msra.mxu1 %v7120_v20  ;;  %v6752_v20 = vcombine.low %v1049_v6, %v1057_v10  ;;  %v6993_v22 = vcombine.high %v1289_v8, %v1297_v5  ;;  %v1465_v62 = vld [vmem:[%s8441_s10 + $0xd10] sm:$0xff] }
 0x201   : > { %4366 = vmatprep.mubr.bf16.mxu1 %v8632_v60  ;;  %4293 = vmatprep.subr.bf16.mxu0 %v6849_v21  ;;  %v7008_v21 = vcombine.low %v1305_v11, %v1313_v14  ;;  %v1193_v10 = vld [vmem:[%s8441_s10 + $0x490] sm:$0xff] }
 0x202   : > { %4336 = vmatprep.subr.bf16.mxu1 %v7105_v24  ;;  %v1273_v24 = vld [vmem:[%s8441_s10 + $0x710] sm:$0xff] }
 0x203   : > { %4294 = vmatpush1.bf16.msra.mxu0 %v6848_v27  ;;  %v1537_v27 = vld [vmem:[%s8441_s10 + $0xf50] sm:$0xff] }
 0x204   : > { %4337 = vmatpush1.bf16.msra.mxu1 %v7104_v28  ;;  %4295 = vmatprep.subr.bf16.mxu0 %v6833_v29  ;;  %v6992_v28 = vcombine.low %v1289_v8, %v1297_v5  ;;  %v7248_v29 = vcombine.low %v1545_v7, %v1553_v9  ;;  %v7233_v31 = vcombine.high %v1529_v26, %v1537_v27  ;;  %v1201_v11 = vld [vmem:[%s8441_s10 + $0x4d0] sm:$0xff] }
 0x205   : > { %4338 = vmatprep.subr.bf16.mxu1 %v7089_v30  ;;  %v6977_v30 = vcombine.high %v1273_v24, %v1281_v25  ;;  %v1449_v14 = vld [vmem:[%s8441_s10 + $0xc90] sm:$0xff] }
 0x206   : > { %v1177_v5 = vld [vmem:[%s8441_s10 + $0x410] sm:$0xff] }
 0x207   : > { %4296 = vmatpush1.bf16.msra.mxu0 %v6832_v35  ;;  %v1521_v35 = vld [vmem:[%s8441_s10 + $0xed0] sm:$0xff] }
 0x208   : > { %4339 = vmatpush1.bf16.msra.mxu1 %v7088_v36  ;;  %4297 = vmatprep.subr.bf16.mxu0 %v6817_v37  ;;  %v6976_v36 = vcombine.low %v1273_v24, %v1281_v25  ;;  %v7232_v37 = vcombine.low %v1529_v26, %v1537_v27  ;;  %v7217_v39 = vcombine.high %v1513_v34, %v1521_v35  ;;  %v1185_v7 = vld [vmem:[%s8441_s10 + $0x450] sm:$0xff]  ;;  %v1162_v25 = vld [vmem:[%s8441_s10 + $0x398] sm:$0xff] }
 0x209   : > { %4340 = vmatprep.subr.bf16.mxu1 %v7073_v38  ;;  %v6961_v38 = vcombine.high %v1257_v32, %v1265_v33  ;;  %v1433_v9 = vld [vmem:[%s8441_s10 + $0xc10] sm:$0xff]  ;;  %v1170_v26 = vld [vmem:[%s8441_s10 + $0x3d8] sm:$0xff] }
 0x20a   : > { %v1418_v27 = vld [vmem:[%s8441_s10 + $0xb98] sm:$0xff] }
 0x20b   : > { %4298 = vmatpush1.bf16.msra.mxu0 %v6816_v43  ;;  %v1505_v43 = vld [vmem:[%s8441_s10 + $0xe50] sm:$0xff] }
 0x20c   : > { %4341 = vmatpush1.bf16.msra.mxu1 %v7072_v44  ;;  %4299 = vmatprep.subr.bf16.mxu0 %v6801_v45  ;;  %v6960_v44 = vcombine.low %v1257_v32, %v1265_v33  ;;  %v7216_v45 = vcombine.low %v1513_v34, %v1521_v35  ;;  %v7201_v47 = vcombine.high %v1497_v42, %v1505_v43  ;;  %v1146_v33 = vld [vmem:[%s8441_s10 + $0x318] sm:$0xff] }
 0x20d   : > { %4342 = vmatprep.subr.bf16.mxu1 %v7057_v46  ;;  %v6945_v46 = vcombine.high %v1241_v40, %v1249_v41  ;;  %v1154_v34 = vld [vmem:[%s8441_s10 + $0x358] sm:$0xff]  ;;  %v6866_v35 = vcombine.low %v1162_v25, %v1170_v26 }
 0x20f   : > { %4300 = vmatpush1.bf16.msra.mxu0 %v6800_v51  ;;  %v1489_v51 = vld [vmem:[%s8441_s10 + $0xdd0] sm:$0xff] }
 0x210   : > { %4343 = vmatpush1.bf16.msra.mxu1 %v7056_v52  ;;  %4301 = vmatprep.subr.bf16.mxu0 %v6785_v53  ;;  %v6944_v52 = vcombine.low %v1241_v40, %v1249_v41  ;;  %v7200_v53 = vcombine.low %v1497_v42, %v1505_v43  ;;  %v7185_v56 = vcombine.high %v1481_v50, %v1489_v51  ;;  %v1130_v40 = vld [vmem:[%s8441_s10 + $0x298] sm:$0xff] }
 0x211   : > { %4344 = vmatprep.subr.bf16.mxu1 %v7041_v55  ;;  %v6929_v55 = vcombine.high %v1225_v48, %v1233_v49  ;;  %v1138_v41 = vld [vmem:[%s8441_s10 + $0x2d8] sm:$0xff] }
 0x212   : > { %v1386_v43 = vld [vmem:[%s8441_s10 + $0xa98] sm:$0xff] }
 0x213   : > { %4302 = vmatpush1.bf16.msra.mxu0 %v6784_v63  ;;  %v1473_v63 = vld [vmem:[%s8441_s10 + $0xd50] sm:$0xff] }
 0x214   : > { %4345 = vmatpush1.bf16.msra.mxu1 %v7040_v0  ;;  %4303 = vmatprep.subr.bf16.mxu0 %v6769_v1  ;;  %v6928_v0 = vcombine.low %v1225_v48, %v1233_v49  ;;  %v7184_v1 = vcombine.low %v1481_v50, %v1489_v51  ;;  %v7169_v6 = vcombine.high %v1465_v62, %v1473_v63  ;;  %v1114_v49 = vld [vmem:[%s8441_s10 + $0x218] sm:$0xff] }
 0x215   : > { %4346 = vmatprep.subr.bf16.mxu1 %v7025_v2  ;;  %v6913_v2 = vcombine.high %v1209_v57, %v1217_v58  ;;  %v1122_v50 = vld [vmem:[%s8441_s10 + $0x258] sm:$0xff] }
 0x216   : > { %v1370_v51 = vld [vmem:[%s8441_s10 + $0xa18] sm:$0xff] }
 0x217   : > { %4304 = vmatpush1.bf16.msra.mxu0 %v6768_v18  ;;  %v1457_v18 = vld [vmem:[%s8441_s10 + $0xcd0] sm:$0xff] }
 0x218   : > { %4347 = vmatpush1.bf16.msra.mxu1 %v7024_v19  ;;  %4305 = vmatprep.subr.bf16.mxu0 %v6753_v3  ;;  %v6912_v19 = vcombine.low %v1209_v57, %v1217_v58  ;;  %v7168_v3 = vcombine.low %v1465_v62, %v1473_v63  ;;  %v7153_v8 = vcombine.high %v1449_v14, %v1457_v18  ;;  %v1098_v58 = vld [vmem:[%s8441_s10 + $0x198] sm:$0xff] }
 0x219   : > { %4348 = vmatprep.subr.bf16.mxu1 %v7009_v4  ;;  %v6897_v4 = vcombine.high %v1193_v10, %v1201_v11  ;;  %v1106_v62 = vld [vmem:[%s8441_s10 + $0x1d8] sm:$0xff] }
 0x21a   : > { %v1354_v63 = vld [vmem:[%s8441_s10 + $0x998] sm:$0xff] }
 0x21b   : > { %4306 = vmatpush1.bf16.msra.mxu0 %v6752_v20  ;;  %v1441_v20 = vld [vmem:[%s8441_s10 + $0xc50] sm:$0xff] }
 0x21c   : > { %4349 = vmatpush1.bf16.msra.mxu1 %v7008_v21  ;;  %4307 = vmatprep.subr.bf16.mxu0 %v6993_v22  ;;  %v6896_v21 = vcombine.low %v1193_v10, %v1201_v11  ;;  %v7152_v22 = vcombine.low %v1449_v14, %v1457_v18  ;;  %v7137_v24 = vcombine.high %v1433_v9, %v1441_v20  ;;  %v1082_v11 = vld [vmem:[%s8441_s10 + $0x118] sm:$0xff] }
 0x21d   : > { %4350 = vmatprep.subr.bf16.mxu1 %v7249_v23  ;;  %v6881_v23 = vcombine.high %v1177_v5, %v1185_v7  ;;  %v1090_v14 = vld [vmem:[%s8441_s10 + $0x158] sm:$0xff] }
 0x21e   : > { %v1338_v18 = vld [vmem:[%s8441_s10 + $0x918] sm:$0xff] }
 0x21f   : > { %4308 = vmatpush2.bf16.msra.mxu0 %v6992_v28  ;;  %v1426_v28 = vld [vmem:[%s8441_s10 + $0xbd8] sm:$0xff] }
 0x220   : > { %4351 = vmatpush2.bf16.msra.mxu1 %v7248_v29  ;;  %4309 = vmatprep.subr.bf16.mxu0 %v6977_v30  ;;  %v6880_v29 = vcombine.low %v1177_v5, %v1185_v7  ;;  %v7136_v30 = vcombine.low %v1433_v9, %v1441_v20  ;;  %v7123_v32 = vcombine.high %v1418_v27, %v1426_v28  ;;  %v1066_v7 = vld [vmem:[%s8441_s10 + $0x98] sm:$0xff] }
 0x221   : > { %4352 = vmatprep.subr.bf16.mxu1 %v7233_v31  ;;  %v6867_v31 = vcombine.high %v1162_v25, %v1170_v26  ;;  %v1074_v9 = vld [vmem:[%s8441_s10 + $0xd8] sm:$0xff] }
 0x222   : > { %v1322_v20 = vld [vmem:[%s8441_s10 + $0x898] sm:$0xff] }
 0x223   : > { %4310 = vmatpush2.bf16.msra.mxu0 %v6976_v36  ;;  %v1402_v36 = vld [vmem:[%s8441_s10 + $0xb18] sm:$0xff] }
 0x224   : > { %4353 = vmatpush2.bf16.msra.mxu1 %v7232_v37  ;;  %4311 = vmatprep.subr.bf16.mxu0 %v6961_v38  ;;  %v1410_v37 = vld [vmem:[%s8441_s10 + $0xb58] sm:$0xff]  ;;  %v7122_v38 = vcombine.low %v1418_v27, %v1426_v28 }
 0x225   : > { %4354 = vmatprep.subr.bf16.mxu1 %v7217_v39  ;;  %v6851_v39 = vcombine.high %v1146_v33, %v1154_v34  ;;  %v7107_v42 = vcombine.high %v1402_v36, %v1410_v37  ;;  %v1050_v26 = vld [vmem:[%s8441_s10 + $0x18] sm:$0xff] }
 0x226   : > { %v1058_v27 = vld [vmem:[%s8441_s10 + $0x58] sm:$0xff] }
 0x227   : > { %4312 = vmatpush2.bf16.msra.mxu0 %v6960_v44  ;;  %v1394_v44 = vld [vmem:[%s8441_s10 + $0xad8] sm:$0xff] }
 0x228   : > { %4355 = vmatpush2.bf16.msra.mxu1 %v7216_v45  ;;  %4313 = vmatprep.subr.bf16.mxu0 %v6945_v46  ;;  %v6850_v45 = vcombine.low %v1146_v33, %v1154_v34  ;;  %v7106_v46 = vcombine.low %v1402_v36, %v1410_v37  ;;  %v7091_v48 = vcombine.high %v1386_v43, %v1394_v44  ;;  %v1306_v28 = vld [vmem:[%s8441_s10 + $0x818] sm:$0xff] }
 0x229   : > { %4356 = vmatprep.subr.bf16.mxu1 %v7201_v47  ;;  %v6835_v47 = vcombine.high %v1130_v40, %v1138_v41  ;;  %v1290_v34 = vld [vmem:[%s8441_s10 + $0x798] sm:$0xff] }
 0x22a   : > { %v1546_v36 = vld [vmem:[%s8441_s10 + $0xf98] sm:$0xff] }
 0x22b   : > { %4314 = vmatpush2.bf16.msra.mxu0 %v6944_v52  ;;  %v1378_v52 = vld [vmem:[%s8441_s10 + $0xa58] sm:$0xff] }
 0x22c   : > { %4357 = vmatpush2.bf16.msra.mxu1 %v7200_v53  ;;  %4315 = vmatprep.subr.bf16.mxu0 %v6929_v55  ;;  %v6834_v53 = vcombine.low %v1130_v40, %v1138_v41  ;;  %v7090_v55 = vcombine.low %v1386_v43, %v1394_v44  ;;  %v7075_v57 = vcombine.high %v1370_v51, %v1378_v52  ;;  %v1554_v37 = vld [vmem:[%s8441_s10 + $0xfd8] sm:$0xff] }
 0x22d   : > { %4358 = vmatprep.subr.bf16.mxu1 %v7185_v56  ;;  %v6819_v56 = vcombine.high %v1114_v49, %v1122_v50  ;;  %v7251_v41 = vcombine.high %v1546_v36, %v1554_v37  ;;  %v1282_v43 = vld [vmem:[%s8441_s10 + $0x758] sm:$0xff] }
 0x22e   : > { %v1530_v44 = vld [vmem:[%s8441_s10 + $0xf18] sm:$0xff] }
 0x22f   : > { %4316 = vmatpush2.bf16.msra.mxu0 %v6928_v0  ;;  %v1362_v0 = vld [vmem:[%s8441_s10 + $0x9d8] sm:$0xff] }
 0x230   : > { %4359 = vmatpush2.bf16.msra.mxu1 %v7184_v1  ;;  %4317 = vmatprep.subr.bf16.mxu0 %v6913_v2  ;;  %v6818_v1 = vcombine.low %v1114_v49, %v1122_v50  ;;  %v7074_v2 = vcombine.low %v1370_v51, %v1378_v52  ;;  %v7059_v10 = vcombine.high %v1354_v63, %v1362_v0  ;;  %v1258_v50 = vld [vmem:[%s8441_s10 + $0x698] sm:$0xff] }
 0x231   : > { %4360 = vmatprep.subr.bf16.mxu1 %v7169_v6  ;;  %v6803_v6 = vcombine.high %v1098_v58, %v1106_v62  ;;  %v1266_v51 = vld [vmem:[%s8441_s10 + $0x6d8] sm:$0xff] }
 0x232   : > { %v1514_v52 = vld [vmem:[%s8441_s10 + $0xe98] sm:$0xff] }
 0x233   : > { %4318 = vmatpush2.bf16.msra.mxu0 %v6912_v19  ;;  %v1346_v19 = vld [vmem:[%s8441_s10 + $0x958] sm:$0xff] }
 0x234   : > { %4361 = vmatpush2.bf16.msra.mxu1 %v7168_v3  ;;  %4319 = vmatprep.subr.bf16.mxu0 %v6897_v4  ;;  %v6802_v3 = vcombine.low %v1098_v58, %v1106_v62  ;;  %v7058_v4 = vcombine.low %v1354_v63, %v1362_v0  ;;  %v7043_v5 = vcombine.high %v1338_v18, %v1346_v19  ;;  %v1242_v62 = vld [vmem:[%s8441_s10 + $0x618] sm:$0xff] }
 0x235   : > { %4362 = vmatprep.subr.bf16.mxu1 %v7153_v8  ;;  %v6787_v8 = vcombine.high %v1082_v11, %v1090_v14  ;;  %v1250_v63 = vld [vmem:[%s8441_s10 + $0x658] sm:$0xff] }
 0x236   : > { %v1498_v0 = vld [vmem:[%s8441_s10 + $0xe18] sm:$0xff] }
 0x237   : > { %4320 = vmatpush2.bf16.msra.mxu0 %v6896_v21  ;;  %v1330_v21 = vld [vmem:[%s8441_s10 + $0x8d8] sm:$0xff] }
 0x238   : > { %4363 = vmatpush2.bf16.msra.mxu1 %v7152_v22  ;;  %4321 = vmatprep.subr.bf16.mxu0 %v6881_v23  ;;  %v6786_v22 = vcombine.low %v1082_v11, %v1090_v14  ;;  %v7042_v23 = vcombine.low %v1338_v18, %v1346_v19  ;;  %v7027_v25 = vcombine.high %v1322_v20, %v1330_v21  ;;  %v1226_v14 = vld [vmem:[%s8441_s10 + $0x598] sm:$0xff] }
 0x239   : > { %4364 = vmatprep.subr.bf16.mxu1 %v7137_v24  ;;  %v6771_v24 = vcombine.high %v1066_v7, %v1074_v9  ;;  %v1234_v18 = vld [vmem:[%s8441_s10 + $0x5d8] sm:$0xff] }
 0x23a   : > { %v1482_v19 = vld [vmem:[%s8441_s10 + $0xd98] sm:$0xff] }
 0x23b   : > { %4322 = vmatpush2.bf16.msra.mxu0 %v6880_v29  ;;  %v1314_v29 = vld [vmem:[%s8441_s10 + $0x858] sm:$0xff] }
 0x23c   : > { %4365 = vmatpush2.bf16.msra.mxu1 %v7136_v30  ;;  %4377 = vmatprep.subr.bf16.mxu0 %v6867_v31  ;;  %v6770_v30 = vcombine.low %v1066_v7, %v1074_v9  ;;  %v7026_v31 = vcombine.low %v1322_v20, %v1330_v21  ;;  %v7011_v33 = vcombine.high %v1306_v28, %v1314_v29  ;;  %v1210_v9 = vld [vmem:[%s8441_s10 + $0x518] sm:$0xff] }
 0x23d   : > { %4420 = vmatprep.subr.bf16.mxu1 %v7123_v32  ;;  %v6755_v32 = vcombine.high %v1050_v26, %v1058_v27  ;;  %v1218_v20 = vld [vmem:[%s8441_s10 + $0x558] sm:$0xff] }
 0x23e   : > { %4324 = vmatmul.mubr.bf16.vlgmr.msra.gmra.mxu0 %v8630_v59  ;;  %v1466_v21 = vld [vmem:[%s8441_s10 + $0xd18] sm:$0xff] }
 0x23f   : > { %4367 = vmatmul.mubr.bf16.vlgmr.msra.gmra.mxu1 %v8634_v61  ;;  %4378 = vmatpush1.bf16.msra.mxu0 %v6866_v35  ;;  %v1298_v35 = vld [vmem:[%s8441_s10 + $0x7d8] sm:$0xff] }
 0x240   : > { %4409 = vmatprep.mubr.bf16.mxu0 %v8626_v54  ;;  %4421 = vmatpush1.bf16.msra.mxu1 %v7122_v38  ;;  %v6754_v38 = vcombine.low %v1050_v26, %v1058_v27  ;;  %v6995_v40 = vcombine.high %v1290_v34, %v1298_v35  ;;  %v1194_v27 = vld [vmem:[%s8441_s10 + $0x498] sm:$0xff] }
 0x241   : > { %4452 = vmatprep.mubr.bf16.mxu1 %v8632_v60  ;;  %4379 = vmatprep.subr.bf16.mxu0 %v6851_v39  ;;  %v7010_v39 = vcombine.low %v1306_v28, %v1314_v29  ;;  %v1202_v28 = vld [vmem:[%s8441_s10 + $0x4d8] sm:$0xff] }
 0x242   : > { %4422 = vmatprep.subr.bf16.mxu1 %v7107_v42  ;;  %v1274_v42 = vld [vmem:[%s8441_s10 + $0x718] sm:$0xff] }
 0x243   : > { %4380 = vmatpush1.bf16.msra.mxu0 %v6850_v45  ;;  %v1538_v45 = vld [vmem:[%s8441_s10 + $0xf58] sm:$0xff] }
 0x244   : > { %4423 = vmatpush1.bf16.msra.mxu1 %v7106_v46  ;;  %4381 = vmatprep.subr.bf16.mxu0 %v6835_v47  ;;  %v6994_v46 = vcombine.low %v1290_v34, %v1298_v35  ;;  %v7250_v47 = vcombine.low %v1546_v36, %v1554_v37  ;;  %v7235_v49 = vcombine.high %v1530_v44, %v1538_v45  ;;  %v1450_v29 = vld [vmem:[%s8441_s10 + $0xc98] sm:$0xff] }
 0x245   : > { %4424 = vmatprep.subr.bf16.mxu1 %v7091_v48  ;;  %v6979_v48 = vcombine.high %v1274_v42, %v1282_v43  ;;  %v1178_v35 = vld [vmem:[%s8441_s10 + $0x418] sm:$0xff] }
 0x246   : > { %v1186_v36 = vld [vmem:[%s8441_s10 + $0x458] sm:$0xff] }
 0x247   : > { %4382 = vmatpush1.bf16.msra.mxu0 %v6834_v53  ;;  %v1522_v53 = vld [vmem:[%s8441_s10 + $0xed8] sm:$0xff] }
 0x248   : > { %4425 = vmatpush1.bf16.msra.mxu1 %v7090_v55  ;;  %4383 = vmatprep.subr.bf16.mxu0 %v6819_v56  ;;  %v6978_v55 = vcombine.low %v1274_v42, %v1282_v43  ;;  %v7234_v56 = vcombine.low %v1530_v44, %v1538_v45  ;;  %v7219_v58 = vcombine.high %v1514_v52, %v1522_v53  ;;  %v1434_v37 = vld [vmem:[%s8441_s10 + $0xc18] sm:$0xff]  ;;  %v1163_v43 = vld [vmem:[%s8441_s10 + $0x3a0] sm:$0xff] }
 0x249   : > { %4426 = vmatprep.subr.bf16.mxu1 %v7075_v57  ;;  %v6963_v57 = vcombine.high %v1258_v50, %v1266_v51  ;;  %v1171_v44 = vld [vmem:[%s8441_s10 + $0x3e0] sm:$0xff] }
 0x24a   : > { %v1419_v45 = vld [vmem:[%s8441_s10 + $0xba0] sm:$0xff] }
 0x24b   : > { %4384 = vmatpush1.bf16.msra.mxu0 %v6818_v1  ;;  %v1506_v1 = vld [vmem:[%s8441_s10 + $0xe58] sm:$0xff] }
 0x24c   : > { %4427 = vmatpush1.bf16.msra.mxu1 %v7074_v2  ;;  %4385 = vmatprep.subr.bf16.mxu0 %v6803_v6  ;;  %v6962_v2 = vcombine.low %v1258_v50, %v1266_v51  ;;  %v7218_v6 = vcombine.low %v1514_v52, %v1522_v53  ;;  %v7203_v11 = vcombine.high %v1498_v0, %v1506_v1  ;;  %v1147_v51 = vld [vmem:[%s8441_s10 + $0x320] sm:$0xff] }
 0x24d   : > { %4428 = vmatprep.subr.bf16.mxu1 %v7059_v10  ;;  %v6947_v10 = vcombine.high %v1242_v62, %v1250_v63  ;;  %v1155_v52 = vld [vmem:[%s8441_s10 + $0x360] sm:$0xff]  ;;  %v6868_v53 = vcombine.low %v1163_v43, %v1171_v44 }
 0x24f   : > { %4386 = vmatpush1.bf16.msra.mxu0 %v6802_v3  ;;  %v1490_v3 = vld [vmem:[%s8441_s10 + $0xdd8] sm:$0xff] }
 0x250   : > { %4429 = vmatpush1.bf16.msra.mxu1 %v7058_v4  ;;  %4387 = vmatprep.subr.bf16.mxu0 %v6787_v8  ;;  %v6946_v4 = vcombine.low %v1242_v62, %v1250_v63  ;;  %v7202_v8 = vcombine.low %v1498_v0, %v1506_v1  ;;  %v7187_v7 = vcombine.high %v1482_v19, %v1490_v3  ;;  %v1131_v62 = vld [vmem:[%s8441_s10 + $0x2a0] sm:$0xff] }
 0x251   : > { %4430 = vmatprep.subr.bf16.mxu1 %v7043_v5  ;;  %v6931_v5 = vcombine.high %v1226_v14, %v1234_v18  ;;  %v1139_v63 = vld [vmem:[%s8441_s10 + $0x2e0] sm:$0xff] }
 0x253   : > { %4388 = vmatpush1.bf16.msra.mxu0 %v6786_v22  ;;  %v1474_v22 = vld [vmem:[%s8441_s10 + $0xd58] sm:$0xff] }
 0x254   : > { %4431 = vmatpush1.bf16.msra.mxu1 %v7042_v23  ;;  %4389 = vmatprep.subr.bf16.mxu0 %v6771_v24  ;;  %v6930_v23 = vcombine.low %v1226_v14, %v1234_v18  ;;  %v7186_v24 = vcombine.low %v1482_v19, %v1490_v3  ;;  %v7171_v26 = vcombine.high %v1466_v21, %v1474_v22 }
 0x255   : > { %4432 = vmatprep.subr.bf16.mxu1 %v7027_v25  ;;  %v6915_v25 = vcombine.high %v1210_v9, %v1218_v20  ;;  %v6852_v14 = vcombine.low %v1147_v51, %v1155_v52 }
 0x257   : > { %4390 = vmatpush1.bf16.msra.mxu0 %v6770_v30  ;;  %v1458_v30 = vld [vmem:[%s8441_s10 + $0xcd8] sm:$0xff] }
 0x258   : > { %4433 = vmatpush1.bf16.msra.mxu1 %v7026_v31  ;;  %4391 = vmatprep.subr.bf16.mxu0 %v6755_v32  ;;  %v6914_v31 = vcombine.low %v1210_v9, %v1218_v20  ;;  %v7170_v32 = vcombine.low %v1466_v21, %v1474_v22  ;;  %v7155_v34 = vcombine.high %v1450_v29, %v1458_v30  ;;  %v1115_v9 = vld [vmem:[%s8441_s10 + $0x220] sm:$0xff] }
 0x259   : > { %4434 = vmatprep.subr.bf16.mxu1 %v7011_v33  ;;  %v6899_v33 = vcombine.high %v1194_v27, %v1202_v28  ;;  %v1123_v20 = vld [vmem:[%s8441_s10 + $0x260] sm:$0xff] }
 0x25b   : > { %4392 = vmatpush1.bf16.msra.mxu0 %v6754_v38  ;;  %v1442_v38 = vld [vmem:[%s8441_s10 + $0xc58] sm:$0xff] }
 0x25c   : > { %4435 = vmatpush1.bf16.msra.mxu1 %v7010_v39  ;;  %4393 = vmatprep.subr.bf16.mxu0 %v6995_v40  ;;  %v6898_v39 = vcombine.low %v1194_v27, %v1202_v28  ;;  %v7154_v40 = vcombine.low %v1450_v29, %v1458_v30  ;;  %v7139_v42 = vcombine.high %v1434_v37, %v1442_v38 }
 0x25d   : > { %4436 = vmatprep.subr.bf16.mxu1 %v7251_v41  ;;  %v6883_v41 = vcombine.high %v1178_v35, %v1186_v36  ;;  %v6836_v28 = vcombine.low %v1131_v62, %v1139_v63 }
 0x25f   : > { %4394 = vmatpush2.bf16.msra.mxu0 %v6994_v46  ;;  %v1427_v46 = vld [vmem:[%s8441_s10 + $0xbe0] sm:$0xff] }
 0x260   : > { %4437 = vmatpush2.bf16.msra.mxu1 %v7250_v47  ;;  %4395 = vmatprep.subr.bf16.mxu0 %v6979_v48  ;;  %v6882_v47 = vcombine.low %v1178_v35, %v1186_v36  ;;  %v7138_v48 = vcombine.low %v1434_v37, %v1442_v38  ;;  %v7125_v50 = vcombine.high %v1419_v45, %v1427_v46  ;;  %v1099_v37 = vld [vmem:[%s8441_s10 + $0x1a0] sm:$0xff] }
 0x261   : > { %4438 = vmatprep.subr.bf16.mxu1 %v7235_v49  ;;  %v6869_v49 = vcombine.high %v1163_v43, %v1171_v44  ;;  %v1107_v38 = vld [vmem:[%s8441_s10 + $0x1e0] sm:$0xff]  ;;  %v6820_v43 = vcombine.low %v1115_v9, %v1123_v20 }
 0x263   : > { %4396 = vmatpush2.bf16.msra.mxu0 %v6978_v55  ;;  %v1403_v55 = vld [vmem:[%s8441_s10 + $0xb20] sm:$0xff] }
 0x264   : > { %4439 = vmatpush2.bf16.msra.mxu1 %v7234_v56  ;;  %4397 = vmatprep.subr.bf16.mxu0 %v6963_v57  ;;  %v1411_v56 = vld [vmem:[%s8441_s10 + $0xb60] sm:$0xff]  ;;  %v7124_v57 = vcombine.low %v1419_v45, %v1427_v46  ;;  %v6805_v46 = vcombine.high %v1099_v37, %v1107_v38 }
 0x265   : > { %4440 = vmatprep.subr.bf16.mxu1 %v7219_v58  ;;  %v6853_v58 = vcombine.high %v1147_v51, %v1155_v52  ;;  %v7109_v1 = vcombine.high %v1403_v55, %v1411_v56  ;;  %v7108_v3 = vcombine.low %v1403_v55, %v1411_v56  ;;  %v1347_v51 = vld [vmem:[%s8441_s10 + $0x960] sm:$0xff]  ;;  %v6804_v52 = vcombine.low %v1099_v37, %v1107_v38 }
 0x267   : > { %4398 = vmatpush2.bf16.msra.mxu0 %v6962_v2  ;;  %v1387_v2 = vld [vmem:[%s8441_s10 + $0xaa0] sm:$0xff] }
 0x268   : > { %4441 = vmatpush2.bf16.msra.mxu1 %v7218_v6  ;;  %4399 = vmatprep.subr.bf16.mxu0 %v6947_v10  ;;  %v1395_v6 = vld [vmem:[%s8441_s10 + $0xae0] sm:$0xff]  ;;  %v1011_v10 = vld [vmem:[#allocation2 + $0xb0] sm:$0xff] }
 0x269   : > { %4442 = vmatprep.subr.bf16.mxu1 %v7203_v11  ;;  %v7092_v29 = vcombine.low %v1387_v2, %v1395_v6 }
 0x26b   : > { %4400 = vmatpush2.bf16.msra.mxu0 %v6946_v4  ;;  %v6837_v4 = vcombine.high %v1131_v62, %v1139_v63  ;;  %v1323_v62 = vld [vmem:[%s8441_s10 + $0x8a0] sm:$0xff] }
 0x26c   : > { %4443 = vmatpush2.bf16.msra.mxu1 %v7202_v8  ;;  %4401 = vmatprep.subr.bf16.mxu0 %v6931_v5  ;;  %v1012_v8 = vld [vmem:[#allocation2] sm:$0xff]  ;;  %v1331_v63 = vld [vmem:[%s8441_s10 + $0x8e0] sm:$0xff] }
 0x26d   : > { %4444 = vmatprep.subr.bf16.mxu1 %v7187_v7  ;;  %v7093_v7 = vcombine.high %v1387_v2, %v1395_v6  ;;  %v7029_v6 = vcombine.high %v1323_v62, %v1331_v63 }
 0x26f   : > { %4402 = vmatpush2.bf16.msra.mxu0 %v6930_v23 }
 0x270   : > { %4445 = vmatpush2.bf16.msra.mxu1 %v7186_v24  ;;  %4403 = vmatprep.subr.bf16.mxu0 %v6915_v25  ;;  %v1371_v24 = vld [vmem:[%s8441_s10 + $0xa20] sm:$0xff] }
 0x271   : > { %4446 = vmatprep.subr.bf16.mxu1 %v7171_v26  ;;  %v1379_v25 = vld [vmem:[%s8441_s10 + $0xa60] sm:$0xff] }
 0x272   : > { %v1027_v26 = vld [vmem:[#allocation2 + $0x38] sm:$0xff]  ;;  %v7077_v36 = vcombine.high %v1371_v24, %v1379_v25  ;;  %v7076_v45 = vcombine.low %v1371_v24, %v1379_v25 }
 0x273   : > { %4404 = vmatpush2.bf16.msra.mxu0 %v6914_v31  ;;  %v1275_v25 = vld [vmem:[%s8441_s10 + $0x720] sm:$0xff] }
 0x274   : > { %4447 = vmatpush2.bf16.msra.mxu1 %v7170_v32  ;;  %4405 = vmatprep.subr.bf16.mxu0 %v6899_v33  ;;  %v6821_v33 = vcombine.high %v1115_v9, %v1123_v20  ;;  %v1547_v9 = vld [vmem:[%s8441_s10 + $0xfa0] sm:$0xff] }
 0x275   : > { %4448 = vmatprep.subr.bf16.mxu1 %v7155_v34  ;;  %v1028_v34 = vld [vmem:[#allocation2 + $0x58] sm:$0xff] }
 0x276   : > { %v1555_v20 = vld [vmem:[%s8441_s10 + $0xfe0] sm:$0xff] }
 0x277   : > { %4406 = vmatpush2.bf16.msra.mxu0 %v6898_v39  ;;  %v7253_v24 = vcombine.high %v1547_v9, %v1555_v20 }
 0x278   : > { %4449 = vmatpush2.bf16.msra.mxu1 %v7154_v40  ;;  %4407 = vmatprep.subr.bf16.mxu0 %v6883_v41  ;;  %v1355_v41 = vld [vmem:[%s8441_s10 + $0x9a0] sm:$0xff] }
 0x279   : > { %4450 = vmatprep.subr.bf16.mxu1 %v7139_v42  ;;  %v1363_v42 = vld [vmem:[%s8441_s10 + $0x9e0] sm:$0xff] }
 0x27b   : > { %4408 = vmatpush2.bf16.msra.mxu0 %v6882_v47  ;;  %v7061_v47 = vcombine.high %v1355_v41, %v1363_v42 }
 0x27c   : > { %4451 = vmatpush2.bf16.msra.mxu1 %v7138_v48  ;;  %4463 = vmatprep.subr.bf16.mxu0 %v6869_v49  ;;  %v1083_v48 = vld [vmem:[%s8441_s10 + $0x120] sm:$0xff] }
 0x27d   : > { %4506 = vmatprep.subr.bf16.mxu1 %v7125_v50  ;;  %v1091_v49 = vld [vmem:[%s8441_s10 + $0x160] sm:$0xff] }
 0x27e   : > { %4410 = vmatmul.mubr.bf16.vlgmr.msra.gmra.mxu0 %v8630_v59  ;;  %v4153_v0 = vpop.f32.mrf.mxu0  ;;  %v1339_v50 = vld [vmem:[%s8441_s10 + $0x920] sm:$0xff]  ;;  %v6789_v55 = vcombine.high %v1083_v48, %v1091_v49 }
 0x27f   : > { %4453 = vmatmul.mubr.bf16.vlgmr.msra.gmra.mxu1 %v8634_v61  ;;  %v4196_v11 = vpop.f32.mrf.mxu1  ;;  %4464 = vmatpush1.bf16.msra.mxu0 %v6868_v53  ;;  %v7060_v53 = vcombine.low %v1355_v41, %v1363_v42  ;;  %v7045_v56 = vcombine.high %v1339_v50, %v1347_v51  ;;  %v1243_v41 = vld [vmem:[%s8441_s10 + $0x620] sm:$0xff] }
 0x280   : > { %v4197_v18 = vadd.f32 %v4196_v11, %v4153_v0  ;;  %4495 = vmatprep.mubr.bf16.mxu0 %v8626_v54  ;;  %4507 = vmatpush1.bf16.msra.mxu1 %v7124_v57  ;;  %v4155_v19 = vpop.f32.mrf.mxu0  ;;  %v1067_v57 = vld [vmem:[%s8441_s10 + $0xa0] sm:$0xff]  ;;  %v6788_v0 = vcombine.low %v1083_v48, %v1091_v49 }
 0x281   : > { %4538 = vmatprep.mubr.bf16.mxu1 %v8632_v60  ;;  %v4198_v5 = vpop.f32.mrf.mxu1  ;;  %4465 = vmatprep.subr.bf16.mxu0 %v6853_v58  ;;  %v1075_v58 = vld [vmem:[%s8441_s10 + $0xe0] sm:$0xff] }
 0x282   : > { %v4807_v21 = vadd.f32 %v4197_v18, %v1011_v10  ;;  %v4199_v22 = vadd.f32 %v4198_v5, %v4155_v19  ;;  %4508 = vmatprep.subr.bf16.mxu1 %v7109_v1  ;;  %v4157_v23 = vpop.f32.mrf.mxu0  ;;  %v7044_v1 = vcombine.low %v1339_v50, %v1347_v51  ;;  %v6773_v2 = vcombine.high %v1067_v57, %v1075_v58  ;;  %v1051_v10 = vld [vmem:[%s8441_s10 + $0x20] sm:$0xff] }
 0x283   : > { %v4200_v27 = vpop.f32.mrf.mxu1  ;;  %4466 = vmatpush1.bf16.msra.mxu0 %v6852_v14  ;;  %v1059_v11 = vld [vmem:[%s8441_s10 + $0x60] sm:$0xff]  ;;  %v6772_v19 = vcombine.low %v1067_v57, %v1075_v58 }
 0x284   : > { %4839 = vst [vmem:[#allocation2 + $0xb0] sm:$0xff] %v4807_v21  ;;  %v4808_v30 = vadd.f32 %v4199_v22, %v1012_v8  ;;  %v4201_v31 = vadd.f32 %v4200_v27, %v4157_v23  ;;  %4509 = vmatpush1.bf16.msra.mxu1 %v7108_v3  ;;  %v4159_v32 = vpop.f32.mrf.mxu0  ;;  %4467 = vmatprep.subr.bf16.mxu0 %v6837_v4  ;;  %v1307_v14 = vld [vmem:[%s8441_s10 + $0x820] sm:$0xff] }
 0x285   : > { %v4202_v35 = vpop.f32.mrf.mxu1  ;;  %4510 = vmatprep.subr.bf16.mxu1 %v7093_v7  ;;  %v1315_v18 = vld [vmem:[%s8441_s10 + $0x860] sm:$0xff]  ;;  %v7028_v3 = vcombine.low %v1323_v62, %v1331_v63  ;;  %v6757_v4 = vcombine.high %v1051_v10, %v1059_v11  ;;  %v6756_v21 = vcombine.low %v1051_v10, %v1059_v11 }
 0x286   : > { %4840 = vst [vmem:[#allocation2] sm:$0xff] %v4808_v30  ;;  %v4823_v39 = vadd.f32 %v4201_v31, %v1027_v26  ;;  %v4203_v40 = vadd.f32 %v4202_v35, %v4159_v32  ;;  %v7013_v8 = vcombine.high %v1307_v14, %v1315_v18  ;;  %v1291_v5 = vld [vmem:[%s8441_s10 + $0x7a0] sm:$0xff]  ;;  %v7012_v22 = vcombine.low %v1307_v14, %v1315_v18 }
 0x287   : > { %4468 = vmatpush1.bf16.msra.mxu0 %v6836_v28  ;;  %v1299_v7 = vld [vmem:[%s8441_s10 + $0x7e0] sm:$0xff]  ;;  %v7252_v30 = vcombine.low %v1547_v9, %v1555_v20 }
 0x288   : > { %4855 = vst [vmem:[#allocation2 + $0x38] sm:$0xff] %v4823_v39  ;;  %v4824_v44 = vadd.f32 %v4203_v40, %v1028_v34  ;;  %4511 = vmatpush1.bf16.msra.mxu1 %v7092_v29  ;;  %4469 = vmatprep.subr.bf16.mxu0 %v6821_v33  ;;  %v6997_v23 = vcombine.high %v1291_v5, %v1299_v7  ;;  %v1283_v26 = vld [vmem:[%s8441_s10 + $0x760] sm:$0xff] }
 0x289   : > { %4512 = vmatprep.subr.bf16.mxu1 %v7077_v36  ;;  %v1531_v27 = vld [vmem:[%s8441_s10 + $0xf20] sm:$0xff]  ;;  %v6996_v29 = vcombine.low %v1291_v5, %v1299_v7  ;;  %v6981_v31 = vcombine.high %v1275_v25, %v1283_v26  ;;  %v6980_v37 = vcombine.low %v1275_v25, %v1283_v26  ;;  %v1164_v26 = vld [vmem:[%s8441_s10 + $0x3a8] sm:$0xff] }
 0x28a   : > { %4856 = vst [vmem:[#allocation2 + $0x58] sm:$0xff] %v4824_v44  ;;  %v1539_v28 = vld [vmem:[%s8441_s10 + $0xf60] sm:$0xff] }
 0x28b   : > { %4470 = vmatpush1.bf16.msra.mxu0 %v6820_v43  ;;  %v7237_v32 = vcombine.high %v1531_v27, %v1539_v28  ;;  %v1259_v33 = vld [vmem:[%s8441_s10 + $0x6a0] sm:$0xff]  ;;  %v7236_v38 = vcombine.low %v1531_v27, %v1539_v28  ;;  %v1172_v27 = vld [vmem:[%s8441_s10 + $0x3e8] sm:$0xff] }
 0x28c   : > { %4513 = vmatpush1.bf16.msra.mxu1 %v7076_v45  ;;  %4471 = vmatprep.subr.bf16.mxu0 %v6805_v46  ;;  %v1267_v34 = vld [vmem:[%s8441_s10 + $0x6e0] sm:$0xff]  ;;  %v1420_v28 = vld [vmem:[%s8441_s10 + $0xba8] sm:$0xff] }
 0x28d   : > { %4514 = vmatprep.subr.bf16.mxu1 %v7061_v47  ;;  %v1515_v35 = vld [vmem:[%s8441_s10 + $0xea0] sm:$0xff]  ;;  %v6965_v39 = vcombine.high %v1259_v33, %v1267_v34  ;;  %v6964_v45 = vcombine.low %v1259_v33, %v1267_v34  ;;  %v1148_v34 = vld [vmem:[%s8441_s10 + $0x328] sm:$0xff] }
 0x28e   : > { %v1523_v36 = vld [vmem:[%s8441_s10 + $0xee0] sm:$0xff] }
 0x28f   : > { %4472 = vmatpush1.bf16.msra.mxu0 %v6804_v52  ;;  %v7221_v40 = vcombine.high %v1515_v35, %v1523_v36  ;;  %v1251_v42 = vld [vmem:[%s8441_s10 + $0x660] sm:$0xff]  ;;  %v7220_v46 = vcombine.low %v1515_v35, %v1523_v36  ;;  %v1156_v35 = vld [vmem:[%s8441_s10 + $0x368] sm:$0xff]  ;;  %v6870_v36 = vcombine.low %v1164_v26, %v1172_v27 }
 0x290   : > { %4515 = vmatpush1.bf16.msra.mxu1 %v7060_v53  ;;  %4473 = vmatprep.subr.bf16.mxu0 %v6789_v55  ;;  %v1499_v43 = vld [vmem:[%s8441_s10 + $0xe20] sm:$0xff]  ;;  %v6949_v47 = vcombine.high %v1243_v41, %v1251_v42  ;;  %v6948_v53 = vcombine.low %v1243_v41, %v1251_v42  ;;  %v1132_v41 = vld [vmem:[%s8441_s10 + $0x2a8] sm:$0xff] }
 0x291   : > { %4516 = vmatprep.subr.bf16.mxu1 %v7045_v56  ;;  %v1507_v44 = vld [vmem:[%s8441_s10 + $0xe60] sm:$0xff]  ;;  %v1140_v42 = vld [vmem:[%s8441_s10 + $0x2e8] sm:$0xff] }
 0x292   : > { %v7205_v48 = vcombine.high %v1499_v43, %v1507_v44  ;;  %v1227_v49 = vld [vmem:[%s8441_s10 + $0x5a0] sm:$0xff]  ;;  %v7204_v55 = vcombine.low %v1499_v43, %v1507_v44 }
 0x293   : > { %4474 = vmatpush1.bf16.msra.mxu0 %v6788_v0  ;;  %v1235_v50 = vld [vmem:[%s8441_s10 + $0x5e0] sm:$0xff] }
 0x294   : > { %4517 = vmatpush1.bf16.msra.mxu1 %v7044_v1  ;;  %4475 = vmatprep.subr.bf16.mxu0 %v6773_v2  ;;  %v1483_v51 = vld [vmem:[%s8441_s10 + $0xda0] sm:$0xff]  ;;  %v6933_v56 = vcombine.high %v1227_v49, %v1235_v50  ;;  %v6932_v1 = vcombine.low %v1227_v49, %v1235_v50  ;;  %v6854_v49 = vcombine.low %v1148_v34, %v1156_v35 }
 0x295   : > { %4518 = vmatprep.subr.bf16.mxu1 %v7029_v6  ;;  %v1491_v52 = vld [vmem:[%s8441_s10 + $0xde0] sm:$0xff] }
 0x296   : > { %v7189_v57 = vcombine.high %v1483_v51, %v1491_v52  ;;  %v1211_v58 = vld [vmem:[%s8441_s10 + $0x520] sm:$0xff]  ;;  %v7188_v2 = vcombine.low %v1483_v51, %v1491_v52 }
 0x297   : > { %4476 = vmatpush1.bf16.msra.mxu0 %v6772_v19  ;;  %v1219_v62 = vld [vmem:[%s8441_s10 + $0x560] sm:$0xff] }
 0x298   : > { %4519 = vmatpush1.bf16.msra.mxu1 %v7028_v3  ;;  %4477 = vmatprep.subr.bf16.mxu0 %v6757_v4  ;;  %v1467_v63 = vld [vmem:[%s8441_s10 + $0xd20] sm:$0xff]  ;;  %v6917_v6 = vcombine.high %v1211_v58, %v1219_v62  ;;  %v6916_v3 = vcombine.low %v1211_v58, %v1219_v62  ;;  %v1116_v58 = vld [vmem:[%s8441_s10 + $0x228] sm:$0xff] }
 0x299   : > { %4520 = vmatprep.subr.bf16.mxu1 %v7013_v8  ;;  %v1475_v0 = vld [vmem:[%s8441_s10 + $0xd60] sm:$0xff]  ;;  %v1124_v62 = vld [vmem:[%s8441_s10 + $0x268] sm:$0xff] }
 0x29a   : > { %v7173_v10 = vcombine.high %v1467_v63, %v1475_v0  ;;  %v1195_v11 = vld [vmem:[%s8441_s10 + $0x4a0] sm:$0xff]  ;;  %v7172_v4 = vcombine.low %v1467_v63, %v1475_v0 }
 0x29b   : > { %4478 = vmatpush1.bf16.msra.mxu0 %v6756_v21  ;;  %v1203_v14 = vld [vmem:[%s8441_s10 + $0x4e0] sm:$0xff] }
 0x29c   : > { %4521 = vmatpush1.bf16.msra.mxu1 %v7012_v22  ;;  %4479 = vmatprep.subr.bf16.mxu0 %v6997_v23  ;;  %v1451_v18 = vld [vmem:[%s8441_s10 + $0xca0] sm:$0xff]  ;;  %v6901_v8 = vcombine.high %v1195_v11, %v1203_v14  ;;  %v6900_v22 = vcombine.low %v1195_v11, %v1203_v14  ;;  %v6838_v14 = vcombine.low %v1132_v41, %v1140_v42 }
 0x29d   : > { %4522 = vmatprep.subr.bf16.mxu1 %v7253_v24  ;;  %v1459_v19 = vld [vmem:[%s8441_s10 + $0xce0] sm:$0xff] }
 0x29e   : > { %v7157_v5 = vcombine.high %v1451_v18, %v1459_v19  ;;  %v1179_v7 = vld [vmem:[%s8441_s10 + $0x420] sm:$0xff]  ;;  %v7156_v23 = vcombine.low %v1451_v18, %v1459_v19 }
 0x29f   : > { %4480 = vmatpush2.bf16.msra.mxu0 %v6996_v29  ;;  %v1187_v9 = vld [vmem:[%s8441_s10 + $0x460] sm:$0xff]  ;;  %v1428_v29 = vld [vmem:[%s8441_s10 + $0xbe8] sm:$0xff] }
 0x2a0   : > { %4523 = vmatpush2.bf16.msra.mxu1 %v7252_v30  ;;  %4481 = vmatprep.subr.bf16.mxu0 %v6981_v31  ;;  %v1435_v20 = vld [vmem:[%s8441_s10 + $0xc20] sm:$0xff]  ;;  %v6885_v24 = vcombine.high %v1179_v7, %v1187_v9  ;;  %v6884_v30 = vcombine.low %v1179_v7, %v1187_v9  ;;  %v7127_v33 = vcombine.high %v1420_v28, %v1428_v29 }
 0x2a1   : > { %4524 = vmatprep.subr.bf16.mxu1 %v7237_v32  ;;  %v1443_v21 = vld [vmem:[%s8441_s10 + $0xc60] sm:$0xff]  ;;  %v6871_v32 = vcombine.high %v1164_v26, %v1172_v27  ;;  %v6822_v26 = vcombine.low %v1116_v58, %v1124_v62 }
 0x2a2   : > { %v7141_v25 = vcombine.high %v1435_v20, %v1443_v21  ;;  %v7140_v31 = vcombine.low %v1435_v20, %v1443_v21  ;;  %v1100_v20 = vld [vmem:[%s8441_s10 + $0x1a8] sm:$0xff] }
 0x2a3   : > { %4482 = vmatpush2.bf16.msra.mxu0 %v6980_v37  ;;  %v1404_v37 = vld [vmem:[%s8441_s10 + $0xb28] sm:$0xff] }
 0x2a4   : > { %4525 = vmatpush2.bf16.msra.mxu1 %v7236_v38  ;;  %4483 = vmatprep.subr.bf16.mxu0 %v6965_v39  ;;  %v1412_v38 = vld [vmem:[%s8441_s10 + $0xb68] sm:$0xff]  ;;  %v7126_v39 = vcombine.low %v1420_v28, %v1428_v29 }
 0x2a5   : > { %4526 = vmatprep.subr.bf16.mxu1 %v7221_v40  ;;  %v6855_v40 = vcombine.high %v1148_v34, %v1156_v35  ;;  %v7111_v44 = vcombine.high %v1404_v37, %v1412_v38  ;;  %v7110_v52 = vcombine.low %v1404_v37, %v1412_v38  ;;  %v1108_v21 = vld [vmem:[%s8441_s10 + $0x1e8] sm:$0xff] }
 0x2a6   : > { %v6807_v29 = vcombine.high %v1100_v20, %v1108_v21  ;;  %v1348_v34 = vld [vmem:[%s8441_s10 + $0x968] sm:$0xff]  ;;  %v6806_v35 = vcombine.low %v1100_v20, %v1108_v21 }
 0x2a7   : > { %4484 = vmatpush2.bf16.msra.mxu0 %v6964_v45  ;;  %v1388_v45 = vld [vmem:[%s8441_s10 + $0xaa8] sm:$0xff] }
 0x2a8   : > { %4527 = vmatpush2.bf16.msra.mxu1 %v7220_v46  ;;  %4485 = vmatprep.subr.bf16.mxu0 %v6949_v47  ;;  %v1396_v46 = vld [vmem:[%s8441_s10 + $0xae8] sm:$0xff]  ;;  %v1013_v47 = vld [vmem:[#allocation2 + $0xd8] sm:$0xff] }
 0x2a9   : > { %4528 = vmatprep.subr.bf16.mxu1 %v7205_v48  ;;  %v7094_v18 = vcombine.low %v1388_v45, %v1396_v46 }
 0x2ab   : > { %4486 = vmatpush2.bf16.msra.mxu0 %v6948_v53  ;;  %v6839_v53 = vcombine.high %v1132_v41, %v1140_v42  ;;  %v1324_v41 = vld [vmem:[%s8441_s10 + $0x8a8] sm:$0xff] }
 0x2ac   : > { %4529 = vmatpush2.bf16.msra.mxu1 %v7204_v55  ;;  %4487 = vmatprep.subr.bf16.mxu0 %v6933_v56  ;;  %v1014_v55 = vld [vmem:[#allocation2 + $0x18] sm:$0xff]  ;;  %v1332_v42 = vld [vmem:[%s8441_s10 + $0x8e8] sm:$0xff] }
 0x2ad   : > { %4530 = vmatprep.subr.bf16.mxu1 %v7189_v57  ;;  %v7095_v57 = vcombine.high %v1388_v45, %v1396_v46  ;;  %v7031_v46 = vcombine.high %v1324_v41, %v1332_v42 }
 0x2af   : > { %4488 = vmatpush2.bf16.msra.mxu0 %v6932_v1 }
 0x2b0   : > { %4531 = vmatpush2.bf16.msra.mxu1 %v7188_v2  ;;  %4489 = vmatprep.subr.bf16.mxu0 %v6917_v6  ;;  %v1372_v2 = vld [vmem:[%s8441_s10 + $0xa28] sm:$0xff] }
 0x2b1   : > { %4532 = vmatprep.subr.bf16.mxu1 %v7173_v10  ;;  %v1380_v6 = vld [vmem:[%s8441_s10 + $0xa68] sm:$0xff] }
 0x2b2   : > { %v1029_v10 = vld [vmem:[#allocation2 + $0x40] sm:$0xff]  ;;  %v7079_v9 = vcombine.high %v1372_v2, %v1380_v6  ;;  %v7078_v28 = vcombine.low %v1372_v2, %v1380_v6 }
 0x2b3   : > { %4490 = vmatpush2.bf16.msra.mxu0 %v6916_v3  ;;  %v1276_v6 = vld [vmem:[%s8441_s10 + $0x728] sm:$0xff] }
 0x2b4   : > { %4533 = vmatpush2.bf16.msra.mxu1 %v7172_v4  ;;  %4491 = vmatprep.subr.bf16.mxu0 %v6901_v8  ;;  %v6823_v8 = vcombine.high %v1116_v58, %v1124_v62  ;;  %v1548_v58 = vld [vmem:[%s8441_s10 + $0xfa8] sm:$0xff] }
 0x2b5   : > { %4534 = vmatprep.subr.bf16.mxu1 %v7157_v5  ;;  %v1030_v5 = vld [vmem:[#allocation2 + $0xc8] sm:$0xff]  ;;  %v1556_v62 = vld [vmem:[%s8441_s10 + $0xfe8] sm:$0xff] }
 0x2b6   : > { %v7255_v2 = vcombine.high %v1548_v58, %v1556_v62 }
 0x2b7   : > { %4492 = vmatpush2.bf16.msra.mxu0 %v6900_v22 }
 0x2b8   : > { %4535 = vmatpush2.bf16.msra.mxu1 %v7156_v23  ;;  %4493 = vmatprep.subr.bf16.mxu0 %v6885_v24  ;;  %v1356_v24 = vld [vmem:[%s8441_s10 + $0x9a8] sm:$0xff] }
 0x2b9   : > { %4536 = vmatprep.subr.bf16.mxu1 %v7141_v25  ;;  %v1364_v25 = vld [vmem:[%s8441_s10 + $0x9e8] sm:$0xff] }
 0x2bb   : > { %4494 = vmatpush2.bf16.msra.mxu0 %v6884_v30  ;;  %v7063_v30 = vcombine.high %v1356_v24, %v1364_v25 }
 0x2bc   : > { %4537 = vmatpush2.bf16.msra.mxu1 %v7140_v31  ;;  %4549 = vmatprep.subr.bf16.mxu0 %v6871_v32  ;;  %v1084_v31 = vld [vmem:[%s8441_s10 + $0x128] sm:$0xff] }
 0x2bd   : > { %4592 = vmatprep.subr.bf16.mxu1 %v7127_v33  ;;  %v1092_v32 = vld [vmem:[%s8441_s10 + $0x168] sm:$0xff] }
 0x2be   : > { %v4239_v43 = vpop.f32.mrf.mxu0  ;;  %4496 = vmatmul.mubr.bf16.vlgmr.msra.gmra.mxu0 %v8630_v59  ;;  %v1340_v33 = vld [vmem:[%s8441_s10 + $0x928] sm:$0xff]  ;;  %v6791_v37 = vcombine.high %v1084_v31, %v1092_v32 }
 0x2bf   : > { %v4282_v48 = vpop.f32.mrf.mxu1  ;;  %4539 = vmatmul.mubr.bf16.vlgmr.msra.gmra.mxu1 %v8634_v61  ;;  %4550 = vmatpush1.bf16.msra.mxu0 %v6870_v36  ;;  %v7062_v36 = vcombine.low %v1356_v24, %v1364_v25  ;;  %v7047_v38 = vcombine.high %v1340_v33, %v1348_v34  ;;  %v1244_v24 = vld [vmem:[%s8441_s10 + $0x628] sm:$0xff] }
 0x2c0   : > { %v4283_v50 = vadd.f32 %v4282_v48, %v4239_v43  ;;  %4581 = vmatprep.mubr.bf16.mxu0 %v8626_v54  ;;  %4593 = vmatpush1.bf16.msra.mxu1 %v7126_v39  ;;  %v4241_v51 = vpop.f32.mrf.mxu0  ;;  %v1068_v39 = vld [vmem:[%s8441_s10 + $0xa8] sm:$0xff]  ;;  %v6790_v43 = vcombine.low %v1084_v31, %v1092_v32 }
 0x2c1   : > { %4624 = vmatprep.mubr.bf16.mxu1 %v8632_v60  ;;  %v4284_v56 = vpop.f32.mrf.mxu1  ;;  %4551 = vmatprep.subr.bf16.mxu0 %v6855_v40  ;;  %v1076_v40 = vld [vmem:[%s8441_s10 + $0xe8] sm:$0xff] }
 0x2c2   : > { %v4809_v63 = vadd.f32 %v4283_v50, %v1013_v47  ;;  %v4285_v0 = vadd.f32 %v4284_v56, %v4241_v51  ;;  %v4243_v1 = vpop.f32.mrf.mxu0  ;;  %4594 = vmatprep.subr.bf16.mxu1 %v7111_v44  ;;  %v7046_v44 = vcombine.low %v1340_v33, %v1348_v34  ;;  %v6775_v45 = vcombine.high %v1068_v39, %v1076_v40  ;;  %v1052_v47 = vld [vmem:[%s8441_s10 + $0x28] sm:$0xff] }
 0x2c3   : > { %v4286_v11 = vpop.f32.mrf.mxu1  ;;  %4552 = vmatpush1.bf16.msra.mxu0 %v6854_v49  ;;  %v1060_v48 = vld [vmem:[%s8441_s10 + $0x68] sm:$0xff]  ;;  %v6774_v51 = vcombine.low %v1068_v39, %v1076_v40 }
 0x2c4   : > { %4841 = vst [vmem:[#allocation2 + $0xd8] sm:$0xff] %v4809_v63  ;;  %v4810_v19 = vadd.f32 %v4285_v0, %v1014_v55  ;;  %v4287_v3 = vadd.f32 %v4286_v11, %v4243_v1  ;;  %4595 = vmatpush1.bf16.msra.mxu1 %v7110_v52  ;;  %v4245_v4 = vpop.f32.mrf.mxu0  ;;  %4553 = vmatprep.subr.bf16.mxu0 %v6839_v53  ;;  %v1308_v49 = vld [vmem:[%s8441_s10 + $0x828] sm:$0xff] }
 0x2c5   : > { %v4288_v7 = vpop.f32.mrf.mxu1  ;;  %4596 = vmatprep.subr.bf16.mxu1 %v7095_v57  ;;  %v1316_v50 = vld [vmem:[%s8441_s10 + $0x868] sm:$0xff]  ;;  %v7030_v52 = vcombine.low %v1324_v41, %v1332_v42  ;;  %v6759_v53 = vcombine.high %v1052_v47, %v1060_v48  ;;  %v6758_v63 = vcombine.low %v1052_v47, %v1060_v48 }
 0x2c6   : > { %4842 = vst [vmem:[#allocation2 + $0x18] sm:$0xff] %v4810_v19  ;;  %v4825_v22 = vadd.f32 %v4287_v3, %v1029_v10  ;;  %v4289_v23 = vadd.f32 %v4288_v7, %v4245_v4  ;;  %v7015_v55 = vcombine.high %v1308_v49, %v1316_v50  ;;  %v1292_v56 = vld [vmem:[%s8441_s10 + $0x7a8] sm:$0xff]  ;;  %v7014_v0 = vcombine.low %v1308_v49, %v1316_v50 }
 0x2c7   : > { %4554 = vmatpush1.bf16.msra.mxu0 %v6838_v14  ;;  %v1300_v57 = vld [vmem:[%s8441_s10 + $0x7e8] sm:$0xff]  ;;  %v7254_v19 = vcombine.low %v1548_v58, %v1556_v62 }
 0x2c8   : > { %4857 = vst [vmem:[#allocation2 + $0x40] sm:$0xff] %v4825_v22  ;;  %v4826_v27 = vadd.f32 %v4289_v23, %v1030_v5  ;;  %4597 = vmatpush1.bf16.msra.mxu1 %v7094_v18  ;;  %4555 = vmatprep.subr.bf16.mxu0 %v6823_v8  ;;  %v6999_v1 = vcombine.high %v1292_v56, %v1300_v57  ;;  %v1284_v10 = vld [vmem:[%s8441_s10 + $0x768] sm:$0xff] }
 0x2c9   : > { %4598 = vmatprep.subr.bf16.mxu1 %v7079_v9  ;;  %v1532_v11 = vld [vmem:[%s8441_s10 + $0xf28] sm:$0xff]  ;;  %v6998_v18 = vcombine.low %v1292_v56, %v1300_v57  ;;  %v6983_v3 = vcombine.high %v1276_v6, %v1284_v10  ;;  %v6982_v20 = vcombine.low %v1276_v6, %v1284_v10  ;;  %v1165_v10 = vld [vmem:[%s8441_s10 + $0x3b0] sm:$0xff] }
 0x2ca   : > { %4858 = vst [vmem:[#allocation2 + $0xc8] sm:$0xff] %v4826_v27  ;;  %v1540_v14 = vld [vmem:[%s8441_s10 + $0xf68] sm:$0xff] }
 0x2cb   : > { %4556 = vmatpush1.bf16.msra.mxu0 %v6822_v26  ;;  %v7239_v4 = vcombine.high %v1532_v11, %v1540_v14  ;;  %v1260_v8 = vld [vmem:[%s8441_s10 + $0x6a8] sm:$0xff]  ;;  %v7238_v21 = vcombine.low %v1532_v11, %v1540_v14  ;;  %v1173_v11 = vld [vmem:[%s8441_s10 + $0x3f0] sm:$0xff] }
 0x2cc   : > { %4599 = vmatpush1.bf16.msra.mxu1 %v7078_v28  ;;  %4557 = vmatprep.subr.bf16.mxu0 %v6807_v29  ;;  %v1268_v5 = vld [vmem:[%s8441_s10 + $0x6e8] sm:$0xff]  ;;  %v1421_v14 = vld [vmem:[%s8441_s10 + $0xbb0] sm:$0xff] }
 0x2cd   : > { %4600 = vmatprep.subr.bf16.mxu1 %v7063_v30  ;;  %v1516_v7 = vld [vmem:[%s8441_s10 + $0xea8] sm:$0xff]  ;;  %v6967_v22 = vcombine.high %v1260_v8, %v1268_v5  ;;  %v6966_v28 = vcombine.low %v1260_v8, %v1268_v5  ;;  %v1149_v5 = vld [vmem:[%s8441_s10 + $0x330] sm:$0xff] }
 0x2ce   : > { %v1524_v9 = vld [vmem:[%s8441_s10 + $0xee8] sm:$0xff] }
 0x2cf   : > { %4558 = vmatpush1.bf16.msra.mxu0 %v6806_v35  ;;  %v7223_v23 = vcombine.high %v1516_v7, %v1524_v9  ;;  %v1252_v25 = vld [vmem:[%s8441_s10 + $0x668] sm:$0xff]  ;;  %v7222_v29 = vcombine.low %v1516_v7, %v1524_v9  ;;  %v1157_v7 = vld [vmem:[%s8441_s10 + $0x370] sm:$0xff]  ;;  %v6872_v9 = vcombine.low %v1165_v10, %v1173_v11 }
 0x2d0   : > { %4601 = vmatpush1.bf16.msra.mxu1 %v7062_v36  ;;  %4559 = vmatprep.subr.bf16.mxu0 %v6791_v37  ;;  %v1500_v26 = vld [vmem:[%s8441_s10 + $0xe28] sm:$0xff]  ;;  %v6951_v30 = vcombine.high %v1244_v24, %v1252_v25  ;;  %v6950_v36 = vcombine.low %v1244_v24, %v1252_v25  ;;  %v1133_v24 = vld [vmem:[%s8441_s10 + $0x2b0] sm:$0xff] }
 0x2d1   : > { %4602 = vmatprep.subr.bf16.mxu1 %v7047_v38  ;;  %v1508_v27 = vld [vmem:[%s8441_s10 + $0xe68] sm:$0xff]  ;;  %v1141_v25 = vld [vmem:[%s8441_s10 + $0x2f0] sm:$0xff] }
 0x2d2   : > { %v7207_v31 = vcombine.high %v1500_v26, %v1508_v27  ;;  %v1228_v32 = vld [vmem:[%s8441_s10 + $0x5a8] sm:$0xff]  ;;  %v7206_v37 = vcombine.low %v1500_v26, %v1508_v27 }
 0x2d3   : > { %4560 = vmatpush1.bf16.msra.mxu0 %v6790_v43  ;;  %v1236_v33 = vld [vmem:[%s8441_s10 + $0x5e8] sm:$0xff] }
 0x2d4   : > { %4603 = vmatpush1.bf16.msra.mxu1 %v7046_v44  ;;  %4561 = vmatprep.subr.bf16.mxu0 %v6775_v45  ;;  %v1484_v34 = vld [vmem:[%s8441_s10 + $0xda8] sm:$0xff]  ;;  %v6935_v38 = vcombine.high %v1228_v32, %v1236_v33  ;;  %v6934_v44 = vcombine.low %v1228_v32, %v1236_v33  ;;  %v6856_v32 = vcombine.low %v1149_v5, %v1157_v7 }
 0x2d5   : > { %4604 = vmatprep.subr.bf16.mxu1 %v7031_v46  ;;  %v1492_v35 = vld [vmem:[%s8441_s10 + $0xde8] sm:$0xff] }
 0x2d6   : > { %v7191_v39 = vcombine.high %v1484_v34, %v1492_v35  ;;  %v1212_v40 = vld [vmem:[%s8441_s10 + $0x528] sm:$0xff]  ;;  %v7190_v45 = vcombine.low %v1484_v34, %v1492_v35 }
 0x2d7   : > { %4562 = vmatpush1.bf16.msra.mxu0 %v6774_v51  ;;  %v1220_v41 = vld [vmem:[%s8441_s10 + $0x568] sm:$0xff] }
 0x2d8   : > { %4605 = vmatpush1.bf16.msra.mxu1 %v7030_v52  ;;  %4563 = vmatprep.subr.bf16.mxu0 %v6759_v53  ;;  %v1468_v42 = vld [vmem:[%s8441_s10 + $0xd28] sm:$0xff]  ;;  %v6919_v46 = vcombine.high %v1212_v40, %v1220_v41  ;;  %v6918_v52 = vcombine.low %v1212_v40, %v1220_v41  ;;  %v1117_v40 = vld [vmem:[%s8441_s10 + $0x230] sm:$0xff] }
 0x2d9   : > { %4606 = vmatprep.subr.bf16.mxu1 %v7015_v55  ;;  %v1476_v43 = vld [vmem:[%s8441_s10 + $0xd68] sm:$0xff]  ;;  %v1125_v41 = vld [vmem:[%s8441_s10 + $0x270] sm:$0xff] }
 0x2da   : > { %v7175_v47 = vcombine.high %v1468_v42, %v1476_v43  ;;  %v1196_v48 = vld [vmem:[%s8441_s10 + $0x4a8] sm:$0xff]  ;;  %v7174_v53 = vcombine.low %v1468_v42, %v1476_v43 }
 0x2db   : > { %4564 = vmatpush1.bf16.msra.mxu0 %v6758_v63  ;;  %v1204_v49 = vld [vmem:[%s8441_s10 + $0x4e8] sm:$0xff] }
 0x2dc   : > { %4607 = vmatpush1.bf16.msra.mxu1 %v7014_v0  ;;  %4565 = vmatprep.subr.bf16.mxu0 %v6999_v1  ;;  %v1452_v50 = vld [vmem:[%s8441_s10 + $0xca8] sm:$0xff]  ;;  %v6903_v55 = vcombine.high %v1196_v48, %v1204_v49  ;;  %v6902_v0 = vcombine.low %v1196_v48, %v1204_v49  ;;  %v6840_v49 = vcombine.low %v1133_v24, %v1141_v25 }
 0x2dd   : > { %4608 = vmatprep.subr.bf16.mxu1 %v7255_v2  ;;  %v1460_v51 = vld [vmem:[%s8441_s10 + $0xce8] sm:$0xff] }
 0x2de   : > { %v7159_v56 = vcombine.high %v1452_v50, %v1460_v51  ;;  %v1180_v57 = vld [vmem:[%s8441_s10 + $0x428] sm:$0xff]  ;;  %v7158_v1 = vcombine.low %v1452_v50, %v1460_v51 }
 0x2df   : > { %4566 = vmatpush2.bf16.msra.mxu0 %v6998_v18  ;;  %v1188_v58 = vld [vmem:[%s8441_s10 + $0x468] sm:$0xff]  ;;  %v1429_v18 = vld [vmem:[%s8441_s10 + $0xbf0] sm:$0xff] }
 0x2e0   : > { %4609 = vmatpush2.bf16.msra.mxu1 %v7254_v19  ;;  %4567 = vmatprep.subr.bf16.mxu0 %v6983_v3  ;;  %v1436_v62 = vld [vmem:[%s8441_s10 + $0xc28] sm:$0xff]  ;;  %v6887_v2 = vcombine.high %v1180_v57, %v1188_v58  ;;  %v6886_v19 = vcombine.low %v1180_v57, %v1188_v58  ;;  %v7129_v8 = vcombine.high %v1421_v14, %v1429_v18 }
 0x2e1   : > { %4610 = vmatprep.subr.bf16.mxu1 %v7239_v4  ;;  %v1444_v63 = vld [vmem:[%s8441_s10 + $0xc68] sm:$0xff]  ;;  %v6873_v4 = vcombine.high %v1165_v10, %v1173_v11  ;;  %v6824_v10 = vcombine.low %v1117_v40, %v1125_v41 }
 0x2e2   : > { %v7143_v6 = vcombine.high %v1436_v62, %v1444_v63  ;;  %v7142_v3 = vcombine.low %v1436_v62, %v1444_v63  ;;  %v1101_v62 = vld [vmem:[%s8441_s10 + $0x1b0] sm:$0xff] }
 0x2e3   : > { %4568 = vmatpush2.bf16.msra.mxu0 %v6982_v20  ;;  %v1405_v20 = vld [vmem:[%s8441_s10 + $0xb30] sm:$0xff] }
 0x2e4   : > { %4611 = vmatpush2.bf16.msra.mxu1 %v7238_v21  ;;  %4569 = vmatprep.subr.bf16.mxu0 %v6967_v22  ;;  %v1413_v21 = vld [vmem:[%s8441_s10 + $0xb70] sm:$0xff]  ;;  %v7128_v22 = vcombine.low %v1421_v14, %v1429_v18 }
 0x2e5   : > { %4612 = vmatprep.subr.bf16.mxu1 %v7223_v23  ;;  %v6857_v23 = vcombine.high %v1149_v5, %v1157_v7  ;;  %v7113_v27 = vcombine.high %v1405_v20, %v1413_v21  ;;  %v7112_v35 = vcombine.low %v1405_v20, %v1413_v21  ;;  %v1109_v63 = vld [vmem:[%s8441_s10 + $0x1f0] sm:$0xff] }
 0x2e6   : > { %v6809_v18 = vcombine.high %v1101_v62, %v1109_v63  ;;  %v1349_v5 = vld [vmem:[%s8441_s10 + $0x970] sm:$0xff]  ;;  %v6808_v7 = vcombine.low %v1101_v62, %v1109_v63 }
 0x2e7   : > { %4570 = vmatpush2.bf16.msra.mxu0 %v6966_v28  ;;  %v1389_v28 = vld [vmem:[%s8441_s10 + $0xab0] sm:$0xff] }
 0x2e8   : > { %4613 = vmatpush2.bf16.msra.mxu1 %v7222_v29  ;;  %4571 = vmatprep.subr.bf16.mxu0 %v6951_v30  ;;  %v1397_v29 = vld [vmem:[%s8441_s10 + $0xaf0] sm:$0xff]  ;;  %v1015_v30 = vld [vmem:[#allocation2 + $0x50] sm:$0xff] }
 0x2e9   : > { %4614 = vmatprep.subr.bf16.mxu1 %v7207_v31  ;;  %v7096_v50 = vcombine.low %v1389_v28, %v1397_v29 }
 0x2eb   : > { %4572 = vmatpush2.bf16.msra.mxu0 %v6950_v36  ;;  %v6841_v36 = vcombine.high %v1133_v24, %v1141_v25  ;;  %v1325_v24 = vld [vmem:[%s8441_s10 + $0x8b0] sm:$0xff] }
 0x2ec   : > { %4615 = vmatpush2.bf16.msra.mxu1 %v7206_v37  ;;  %4573 = vmatprep.subr.bf16.mxu0 %v6935_v38  ;;  %v1016_v37 = vld [vmem:[#allocation2 + $0x68] sm:$0xff] }
 0x2ed   : > { %4616 = vmatprep.subr.bf16.mxu1 %v7191_v39  ;;  %v7097_v39 = vcombine.high %v1389_v28, %v1397_v29  ;;  %v1333_v25 = vld [vmem:[%s8441_s10 + $0x8f0] sm:$0xff] }
 0x2ee   : > { %v7033_v29 = vcombine.high %v1325_v24, %v1333_v25 }
 0x2ef   : > { %4574 = vmatpush2.bf16.msra.mxu0 %v6934_v44 }
 0x2f0   : > { %4617 = vmatpush2.bf16.msra.mxu1 %v7190_v45  ;;  %4575 = vmatprep.subr.bf16.mxu0 %v6919_v46  ;;  %v1373_v45 = vld [vmem:[%s8441_s10 + $0xa30] sm:$0xff] }
 0x2f1   : > { %4618 = vmatprep.subr.bf16.mxu1 %v7175_v47  ;;  %v1381_v46 = vld [vmem:[%s8441_s10 + $0xa70] sm:$0xff]  ;;  %v1031_v47 = vld [vmem:[#allocation2 + $0xe0] sm:$0xff] }
 0x2f2   : > { %v7081_v58 = vcombine.high %v1373_v45, %v1381_v46  ;;  %v7080_v14 = vcombine.low %v1373_v45, %v1381_v46  ;;  %v1277_v46 = vld [vmem:[%s8441_s10 + $0x730] sm:$0xff] }
 0x2f3   : > { %4576 = vmatpush2.bf16.msra.mxu0 %v6918_v52 }
 0x2f4   : > { %4619 = vmatpush2.bf16.msra.mxu1 %v7174_v53  ;;  %4577 = vmatprep.subr.bf16.mxu0 %v6903_v55  ;;  %v6825_v55 = vcombine.high %v1117_v40, %v1125_v41  ;;  %v1549_v40 = vld [vmem:[%s8441_s10 + $0xfb0] sm:$0xff] }
 0x2f5   : > { %4620 = vmatprep.subr.bf16.mxu1 %v7159_v56  ;;  %v1032_v56 = vld [vmem:[#allocation2 + $0x90] sm:$0xff]  ;;  %v1557_v41 = vld [vmem:[%s8441_s10 + $0xff0] sm:$0xff] }
 0x2f6   : > { %v7257_v45 = vcombine.high %v1549_v40, %v1557_v41 }
 0x2f7   : > { %4578 = vmatpush2.bf16.msra.mxu0 %v6902_v0 }
 0x2f8   : > { %4621 = vmatpush2.bf16.msra.mxu1 %v7158_v1  ;;  %4579 = vmatprep.subr.bf16.mxu0 %v6887_v2  ;;  %v1357_v2 = vld [vmem:[%s8441_s10 + $0x9b0] sm:$0xff] }
 0x2f9   : > { %4622 = vmatprep.subr.bf16.mxu1 %v7143_v6  ;;  %v1365_v6 = vld [vmem:[%s8441_s10 + $0x9f0] sm:$0xff] }
 0x2fb   : > { %4580 = vmatpush2.bf16.msra.mxu0 %v6886_v19  ;;  %v7065_v19 = vcombine.high %v1357_v2, %v1365_v6 }
 0x2fc   : > { %4623 = vmatpush2.bf16.msra.mxu1 %v7142_v3  ;;  %4635 = vmatprep.subr.bf16.mxu0 %v6873_v4  ;;  %v1085_v3 = vld [vmem:[%s8441_s10 + $0x130] sm:$0xff] }
 0x2fd   : > { %4678 = vmatprep.subr.bf16.mxu1 %v7129_v8  ;;  %v1093_v4 = vld [vmem:[%s8441_s10 + $0x170] sm:$0xff] }
 0x2fe   : > { %v4325_v26 = vpop.f32.mrf.mxu0  ;;  %4582 = vmatmul.mubr.bf16.vlgmr.msra.gmra.mxu0 %v8630_v59  ;;  %v1341_v8 = vld [vmem:[%s8441_s10 + $0x930] sm:$0xff]  ;;  %v6793_v20 = vcombine.high %v1085_v3, %v1093_v4 }
 0x2ff   : > { %v4368_v31 = vpop.f32.mrf.mxu1  ;;  %4625 = vmatmul.mubr.bf16.vlgmr.msra.gmra.mxu1 %v8634_v61  ;;  %4636 = vmatpush1.bf16.msra.mxu0 %v6872_v9  ;;  %v7064_v9 = vcombine.low %v1357_v2, %v1365_v6  ;;  %v7049_v21 = vcombine.high %v1341_v8, %v1349_v5  ;;  %v1245_v2 = vld [vmem:[%s8441_s10 + $0x630] sm:$0xff] }
 0x300   : > { %v4369_v33 = vadd.f32 %v4368_v31, %v4325_v26  ;;  %4667 = vmatprep.mubr.bf16.mxu0 %v8626_v54  ;;  %4679 = vmatpush1.bf16.msra.mxu1 %v7128_v22  ;;  %v4327_v34 = vpop.f32.mrf.mxu0  ;;  %v1069_v22 = vld [vmem:[%s8441_s10 + $0xb0] sm:$0xff]  ;;  %v6792_v26 = vcombine.low %v1085_v3, %v1093_v4 }
 0x301   : > { %4710 = vmatprep.mubr.bf16.mxu1 %v8632_v60  ;;  %v4370_v38 = vpop.f32.mrf.mxu1  ;;  %4637 = vmatprep.subr.bf16.mxu0 %v6857_v23  ;;  %v1077_v23 = vld [vmem:[%s8441_s10 + $0xf0] sm:$0xff] }
 0x302   : > { %v4811_v42 = vadd.f32 %v4369_v33, %v1015_v30  ;;  %v4371_v43 = vadd.f32 %v4370_v38, %v4327_v34  ;;  %v4329_v44 = vpop.f32.mrf.mxu0  ;;  %4680 = vmatprep.subr.bf16.mxu1 %v7113_v27  ;;  %v7048_v27 = vcombine.low %v1341_v8, %v1349_v5  ;;  %v6777_v28 = vcombine.high %v1069_v22, %v1077_v23  ;;  %v1053_v30 = vld [vmem:[%s8441_s10 + $0x30] sm:$0xff] }
 0x303   : > { %v4372_v48 = vpop.f32.mrf.mxu1  ;;  %4638 = vmatpush1.bf16.msra.mxu0 %v6856_v32  ;;  %v1061_v31 = vld [vmem:[%s8441_s10 + $0x70] sm:$0xff]  ;;  %v6776_v34 = vcombine.low %v1069_v22, %v1077_v23 }
 0x304   : > { %4843 = vst [vmem:[#allocation2 + $0x50] sm:$0xff] %v4811_v42  ;;  %v4812_v51 = vadd.f32 %v4371_v43, %v1016_v37  ;;  %v4373_v52 = vadd.f32 %v4372_v48, %v4329_v44  ;;  %4681 = vmatpush1.bf16.msra.mxu1 %v7112_v35  ;;  %v4331_v53 = vpop.f32.mrf.mxu0  ;;  %4639 = vmatprep.subr.bf16.mxu0 %v6841_v36  ;;  %v1309_v32 = vld [vmem:[%s8441_s10 + $0x830] sm:$0xff] }
 0x305   : > { %v4374_v57 = vpop.f32.mrf.mxu1  ;;  %4682 = vmatprep.subr.bf16.mxu1 %v7097_v39  ;;  %v1317_v33 = vld [vmem:[%s8441_s10 + $0x870] sm:$0xff]  ;;  %v7032_v35 = vcombine.low %v1325_v24, %v1333_v25  ;;  %v6761_v36 = vcombine.high %v1053_v30, %v1061_v31  ;;  %v6760_v42 = vcombine.low %v1053_v30, %v1061_v31 }
 0x306   : > { %4844 = vst [vmem:[#allocation2 + $0x68] sm:$0xff] %v4812_v51  ;;  %v4827_v0 = vadd.f32 %v4373_v52, %v1031_v47  ;;  %v4375_v1 = vadd.f32 %v4374_v57, %v4331_v53  ;;  %v7017_v37 = vcombine.high %v1309_v32, %v1317_v33  ;;  %v1293_v38 = vld [vmem:[%s8441_s10 + $0x7b0] sm:$0xff]  ;;  %v7016_v43 = vcombine.low %v1309_v32, %v1317_v33 }
 0x307   : > { %4640 = vmatpush1.bf16.msra.mxu0 %v6840_v49  ;;  %v1301_v39 = vld [vmem:[%s8441_s10 + $0x7f0] sm:$0xff]  ;;  %v7256_v51 = vcombine.low %v1549_v40, %v1557_v41 }
 0x308   : > { %4859 = vst [vmem:[#allocation2 + $0xe0] sm:$0xff] %v4827_v0  ;;  %v4828_v11 = vadd.f32 %v4375_v1, %v1032_v56  ;;  %4683 = vmatpush1.bf16.msra.mxu1 %v7096_v50  ;;  %4641 = vmatprep.subr.bf16.mxu0 %v6825_v55  ;;  %v7001_v44 = vcombine.high %v1293_v38, %v1301_v39  ;;  %v1285_v47 = vld [vmem:[%s8441_s10 + $0x770] sm:$0xff] }
 0x309   : > { %4684 = vmatprep.subr.bf16.mxu1 %v7081_v58  ;;  %v1533_v48 = vld [vmem:[%s8441_s10 + $0xf30] sm:$0xff]  ;;  %v7000_v50 = vcombine.low %v1293_v38, %v1301_v39  ;;  %v6985_v52 = vcombine.high %v1277_v46, %v1285_v47  ;;  %v6984_v62 = vcombine.low %v1277_v46, %v1285_v47  ;;  %v1166_v47 = vld [vmem:[%s8441_s10 + $0x3b8] sm:$0xff] }
 0x30a   : > { %4860 = vst [vmem:[#allocation2 + $0x90] sm:$0xff] %v4828_v11  ;;  %v1541_v49 = vld [vmem:[%s8441_s10 + $0xf70] sm:$0xff] }
 0x30b   : > { %4642 = vmatpush1.bf16.msra.mxu0 %v6824_v10  ;;  %v7241_v53 = vcombine.high %v1533_v48, %v1541_v49  ;;  %v1261_v55 = vld [vmem:[%s8441_s10 + $0x6b0] sm:$0xff]  ;;  %v7240_v63 = vcombine.low %v1533_v48, %v1541_v49  ;;  %v1174_v48 = vld [vmem:[%s8441_s10 + $0x3f8] sm:$0xff] }
 0x30c   : > { %4685 = vmatpush1.bf16.msra.mxu1 %v7080_v14  ;;  %4643 = vmatprep.subr.bf16.mxu0 %v6809_v18  ;;  %v1269_v56 = vld [vmem:[%s8441_s10 + $0x6f0] sm:$0xff]  ;;  %v1422_v49 = vld [vmem:[%s8441_s10 + $0xbb8] sm:$0xff] }
 0x30d   : > { %4686 = vmatprep.subr.bf16.mxu1 %v7065_v19  ;;  %v1517_v57 = vld [vmem:[%s8441_s10 + $0xeb0] sm:$0xff]  ;;  %v6969_v0 = vcombine.high %v1261_v55, %v1269_v56  ;;  %v6968_v14 = vcombine.low %v1261_v55, %v1269_v56  ;;  %v1150_v56 = vld [vmem:[%s8441_s10 + $0x338] sm:$0xff] }
 0x30e   : > { %v1525_v58 = vld [vmem:[%s8441_s10 + $0xef0] sm:$0xff] }
 0x30f   : > { %4644 = vmatpush1.bf16.msra.mxu0 %v6808_v7  ;;  %v7225_v1 = vcombine.high %v1517_v57, %v1525_v58  ;;  %v1253_v6 = vld [vmem:[%s8441_s10 + $0x670] sm:$0xff]  ;;  %v7224_v18 = vcombine.low %v1517_v57, %v1525_v58  ;;  %v1158_v57 = vld [vmem:[%s8441_s10 + $0x378] sm:$0xff]  ;;  %v6874_v58 = vcombine.low %v1166_v47, %v1174_v48 }
 0x310   : > { %4687 = vmatpush1.bf16.msra.mxu1 %v7064_v9  ;;  %4645 = vmatprep.subr.bf16.mxu0 %v6793_v20  ;;  %v1501_v10 = vld [vmem:[%s8441_s10 + $0xe30] sm:$0xff]  ;;  %v6953_v19 = vcombine.high %v1245_v2, %v1253_v6  ;;  %v6952_v9 = vcombine.low %v1245_v2, %v1253_v6  ;;  %v1134_v2 = vld [vmem:[%s8441_s10 + $0x2b8] sm:$0xff] }
 0x311   : > { %4688 = vmatprep.subr.bf16.mxu1 %v7049_v21  ;;  %v1509_v11 = vld [vmem:[%s8441_s10 + $0xe70] sm:$0xff]  ;;  %v1142_v6 = vld [vmem:[%s8441_s10 + $0x2f8] sm:$0xff] }
 0x312   : > { %v7209_v3 = vcombine.high %v1501_v10, %v1509_v11  ;;  %v1229_v4 = vld [vmem:[%s8441_s10 + $0x5b0] sm:$0xff]  ;;  %v7208_v20 = vcombine.low %v1501_v10, %v1509_v11 }
 0x313   : > { %4646 = vmatpush1.bf16.msra.mxu0 %v6792_v26  ;;  %v1237_v8 = vld [vmem:[%s8441_s10 + $0x5f0] sm:$0xff] }
 0x314   : > { %4689 = vmatpush1.bf16.msra.mxu1 %v7048_v27  ;;  %4647 = vmatprep.subr.bf16.mxu0 %v6777_v28  ;;  %v1485_v5 = vld [vmem:[%s8441_s10 + $0xdb0] sm:$0xff]  ;;  %v6937_v21 = vcombine.high %v1229_v4, %v1237_v8  ;;  %v6936_v27 = vcombine.low %v1229_v4, %v1237_v8  ;;  %v6858_v4 = vcombine.low %v1150_v56, %v1158_v57 }
 0x315   : > { %4690 = vmatprep.subr.bf16.mxu1 %v7033_v29  ;;  %v1493_v7 = vld [vmem:[%s8441_s10 + $0xdf0] sm:$0xff] }
 0x316   : > { %v7193_v22 = vcombine.high %v1485_v5, %v1493_v7  ;;  %v1213_v23 = vld [vmem:[%s8441_s10 + $0x530] sm:$0xff]  ;;  %v7192_v28 = vcombine.low %v1485_v5, %v1493_v7 }
 0x317   : > { %4648 = vmatpush1.bf16.msra.mxu0 %v6776_v34  ;;  %v1221_v24 = vld [vmem:[%s8441_s10 + $0x570] sm:$0xff] }
 0x318   : > { %4691 = vmatpush1.bf16.msra.mxu1 %v7032_v35  ;;  %4649 = vmatprep.subr.bf16.mxu0 %v6761_v36  ;;  %v1469_v25 = vld [vmem:[%s8441_s10 + $0xd30] sm:$0xff]  ;;  %v6921_v29 = vcombine.high %v1213_v23, %v1221_v24  ;;  %v6920_v35 = vcombine.low %v1213_v23, %v1221_v24  ;;  %v1118_v23 = vld [vmem:[%s8441_s10 + $0x238] sm:$0xff] }
 0x319   : > { %4692 = vmatprep.subr.bf16.mxu1 %v7017_v37  ;;  %v1477_v26 = vld [vmem:[%s8441_s10 + $0xd70] sm:$0xff]  ;;  %v1126_v24 = vld [vmem:[%s8441_s10 + $0x278] sm:$0xff] }
 0x31a   : > { %v7177_v30 = vcombine.high %v1469_v25, %v1477_v26  ;;  %v1197_v31 = vld [vmem:[%s8441_s10 + $0x4b0] sm:$0xff]  ;;  %v7176_v36 = vcombine.low %v1469_v25, %v1477_v26 }
 0x31b   : > { %4650 = vmatpush1.bf16.msra.mxu0 %v6760_v42  ;;  %v1205_v32 = vld [vmem:[%s8441_s10 + $0x4f0] sm:$0xff] }
 0x31c   : > { %4693 = vmatpush1.bf16.msra.mxu1 %v7016_v43  ;;  %4651 = vmatprep.subr.bf16.mxu0 %v7001_v44  ;;  %v1453_v33 = vld [vmem:[%s8441_s10 + $0xcb0] sm:$0xff]  ;;  %v6905_v37 = vcombine.high %v1197_v31, %v1205_v32  ;;  %v6904_v43 = vcombine.low %v1197_v31, %v1205_v32  ;;  %v6842_v31 = vcombine.low %v1134_v2, %v1142_v6 }
 0x31d   : > { %4694 = vmatprep.subr.bf16.mxu1 %v7257_v45  ;;  %v1461_v34 = vld [vmem:[%s8441_s10 + $0xcf0] sm:$0xff] }
 0x31e   : > { %v7161_v38 = vcombine.high %v1453_v33, %v1461_v34  ;;  %v1181_v39 = vld [vmem:[%s8441_s10 + $0x430] sm:$0xff]  ;;  %v7160_v44 = vcombine.low %v1453_v33, %v1461_v34 }
 0x31f   : > { %4652 = vmatpush2.bf16.msra.mxu0 %v7000_v50  ;;  %v1189_v40 = vld [vmem:[%s8441_s10 + $0x470] sm:$0xff]  ;;  %v1430_v50 = vld [vmem:[%s8441_s10 + $0xbf8] sm:$0xff] }
 0x320   : > { %4695 = vmatpush2.bf16.msra.mxu1 %v7256_v51  ;;  %4653 = vmatprep.subr.bf16.mxu0 %v6985_v52  ;;  %v1437_v41 = vld [vmem:[%s8441_s10 + $0xc30] sm:$0xff]  ;;  %v6889_v45 = vcombine.high %v1181_v39, %v1189_v40  ;;  %v6888_v51 = vcombine.low %v1181_v39, %v1189_v40  ;;  %v7131_v55 = vcombine.high %v1422_v49, %v1430_v50  ;;  %v1102_v39 = vld [vmem:[%s8441_s10 + $0x1b8] sm:$0xff] }
 0x321   : > { %4696 = vmatprep.subr.bf16.mxu1 %v7241_v53  ;;  %v1445_v42 = vld [vmem:[%s8441_s10 + $0xc70] sm:$0xff]  ;;  %v6875_v53 = vcombine.high %v1166_v47, %v1174_v48  ;;  %v1110_v40 = vld [vmem:[%s8441_s10 + $0x1f8] sm:$0xff] }
 0x322   : > { %v7145_v46 = vcombine.high %v1437_v41, %v1445_v42  ;;  %v7144_v52 = vcombine.low %v1437_v41, %v1445_v42  ;;  %v6811_v48 = vcombine.high %v1102_v39, %v1110_v40 }
 0x323   : > { %4654 = vmatpush2.bf16.msra.mxu0 %v6984_v62  ;;  %v1406_v62 = vld [vmem:[%s8441_s10 + $0xb38] sm:$0xff] }
 0x324   : > { %4697 = vmatpush2.bf16.msra.mxu1 %v7240_v63  ;;  %4655 = vmatprep.subr.bf16.mxu0 %v6969_v0  ;;  %v1414_v63 = vld [vmem:[%s8441_s10 + $0xb78] sm:$0xff]  ;;  %v7130_v0 = vcombine.low %v1422_v49, %v1430_v50 }
 0x325   : > { %4698 = vmatprep.subr.bf16.mxu1 %v7225_v1  ;;  %v6859_v1 = vcombine.high %v1150_v56, %v1158_v57  ;;  %v7115_v11 = vcombine.high %v1406_v62, %v1414_v63  ;;  %v7114_v7 = vcombine.low %v1406_v62, %v1414_v63  ;;  %v1086_v50 = vld [vmem:[%s8441_s10 + $0x138] sm:$0xff] }
 0x326   : > { %v1070_v62 = vld [vmem:[%s8441_s10 + $0xb8] sm:$0xff] }
 0x327   : > { %4656 = vmatpush2.bf16.msra.mxu0 %v6968_v14  ;;  %v1390_v14 = vld [vmem:[%s8441_s10 + $0xab8] sm:$0xff] }
 0x328   : > { %4699 = vmatpush2.bf16.msra.mxu1 %v7224_v18  ;;  %4657 = vmatprep.subr.bf16.mxu0 %v6953_v19  ;;  %v1398_v18 = vld [vmem:[%s8441_s10 + $0xaf8] sm:$0xff] }
 0x329   : > { %4700 = vmatprep.subr.bf16.mxu1 %v7209_v3  ;;  %v1017_v19 = vld [vmem:[#allocation2 + $0x30] sm:$0xff]  ;;  %v7098_v32 = vcombine.low %v1390_v14, %v1398_v18 }
 0x32a   : > { %v1078_v63 = vld [vmem:[%s8441_s10 + $0xf8] sm:$0xff] }
 0x32b   : > { %4658 = vmatpush2.bf16.msra.mxu0 %v6952_v9  ;;  %v6843_v9 = vcombine.high %v1134_v2, %v1142_v6 }
 0x32c   : > { %4701 = vmatpush2.bf16.msra.mxu1 %v7208_v20  ;;  %4659 = vmatprep.subr.bf16.mxu0 %v6937_v21  ;;  %v1018_v20 = vld [vmem:[#allocation2 + $0x48] sm:$0xff] }
 0x32d   : > { %4702 = vmatprep.subr.bf16.mxu1 %v7193_v22  ;;  %v7099_v22 = vcombine.high %v1390_v14, %v1398_v18  ;;  %v1054_v14 = vld [vmem:[%s8441_s10 + $0x38] sm:$0xff] }
 0x32e   : > { %v1062_v18 = vld [vmem:[%s8441_s10 + $0x78] sm:$0xff] }
 0x32f   : > { %4660 = vmatpush2.bf16.msra.mxu0 %v6936_v27 }
 0x330   : > { %4703 = vmatpush2.bf16.msra.mxu1 %v7192_v28  ;;  %4661 = vmatprep.subr.bf16.mxu0 %v6921_v29  ;;  %v1374_v28 = vld [vmem:[%s8441_s10 + $0xa38] sm:$0xff] }
 0x331   : > { %4704 = vmatprep.subr.bf16.mxu1 %v7177_v30  ;;  %v1033_v29 = vld [vmem:[#allocation2 + $0x70] sm:$0xff] }
 0x333   : > { %4662 = vmatpush2.bf16.msra.mxu0 %v6920_v35  ;;  %v6827_v35 = vcombine.high %v1118_v23, %v1126_v24 }
 0x334   : > { %4705 = vmatpush2.bf16.msra.mxu1 %v7176_v36  ;;  %4663 = vmatprep.subr.bf16.mxu0 %v6905_v37  ;;  %v1034_v36 = vld [vmem:[#allocation2 + $0xc0] sm:$0xff] }
 0x335   : > { %4706 = vmatprep.subr.bf16.mxu1 %v7161_v38 }
 0x337   : > { %4664 = vmatpush2.bf16.msra.mxu0 %v6904_v43  ;;  %v1358_v43 = vld [vmem:[%s8441_s10 + $0x9b8] sm:$0xff] }
 0x338   : > { %4707 = vmatpush2.bf16.msra.mxu1 %v7160_v44  ;;  %4665 = vmatprep.subr.bf16.mxu0 %v6889_v45  ;;  %v1366_v44 = vld [vmem:[%s8441_s10 + $0x9f8] sm:$0xff]  ;;  %v6826_v45 = vcombine.low %v1118_v23, %v1126_v24  ;;  %v6762_v23 = vcombine.low %v1054_v14, %v1062_v18 }
 0x339   : > { %4708 = vmatprep.subr.bf16.mxu1 %v7145_v46  ;;  %v7067_v49 = vcombine.high %v1358_v43, %v1366_v44  ;;  %v7066_v56 = vcombine.low %v1358_v43, %v1366_v44  ;;  %v1502_v43 = vld [vmem:[%s8441_s10 + $0xe38] sm:$0xff] }
 0x33a   : > { %v1510_v44 = vld [vmem:[%s8441_s10 + $0xe78] sm:$0xff] }
 0x33b   : > { %4666 = vmatpush2.bf16.msra.mxu0 %v6888_v51  ;;  %v1094_v51 = vld [vmem:[%s8441_s10 + $0x178] sm:$0xff] }
 0x33c   : > { %4709 = vmatpush2.bf16.msra.mxu1 %v7144_v52  ;;  %4721 = vmatprep.subr.bf16.mxu0 %v6875_v53  ;;  %v1342_v52 = vld [vmem:[%s8441_s10 + $0x938] sm:$0xff]  ;;  %v6795_v57 = vcombine.high %v1086_v50, %v1094_v51  ;;  %v6794_v2 = vcombine.low %v1086_v50, %v1094_v51 }
 0x33d   : > { %4764 = vmatprep.subr.bf16.mxu1 %v7131_v55  ;;  %v1350_v53 = vld [vmem:[%s8441_s10 + $0x978] sm:$0xff]  ;;  %v6810_v55 = vcombine.low %v1102_v39, %v1110_v40 }
 0x33e   : > { %v4411_v10 = vpop.f32.mrf.mxu0  ;;  %4668 = vmatmul.mubr.bf16.vlgmr.msra.gmra.mxu0 %v8630_v59  ;;  %v7050_v6 = vcombine.low %v1342_v52, %v1350_v53  ;;  %v1238_v50 = vld [vmem:[%s8441_s10 + $0x5f8] sm:$0xff] }
 0x33f   : > { %v4454_v3 = vpop.f32.mrf.mxu1  ;;  %4711 = vmatmul.mubr.bf16.vlgmr.msra.gmra.mxu1 %v8634_v61  ;;  %4722 = vmatpush1.bf16.msra.mxu0 %v6874_v58  ;;  %v7051_v58 = vcombine.high %v1342_v52, %v1350_v53  ;;  %v1486_v51 = vld [vmem:[%s8441_s10 + $0xdb8] sm:$0xff] }
 0x340   : > { %v4455_v8 = vadd.f32 %v4454_v3, %v4411_v10  ;;  %4753 = vmatprep.mubr.bf16.mxu0 %v8626_v54  ;;  %4765 = vmatpush1.bf16.msra.mxu1 %v7130_v0  ;;  %v4413_v5 = vpop.f32.mrf.mxu0  ;;  %v1382_v54 = vld [vmem:[%s8441_s10 + $0xa78] sm:$0xff]  ;;  %v6779_v10 = vcombine.high %v1070_v62, %v1078_v63 }
 0x341   : > { %4796 = vmatprep.mubr.bf16.mxu1 %v8632_v60  ;;  %v4456_v21 = vpop.f32.mrf.mxu1  ;;  %4723 = vmatprep.subr.bf16.mxu0 %v6859_v1  ;;  %v7083_v38 = vcombine.high %v1374_v28, %v1382_v54  ;;  %v7082_v47 = vcombine.low %v1374_v28, %v1382_v54  ;;  %v1326_v0 = vld [vmem:[%s8441_s10 + $0x8b8] sm:$0xff] }
 0x342   : > { %v4813_v25 = vadd.f32 %v4455_v8, %v1017_v19  ;;  %v4457_v26 = vadd.f32 %v4456_v21, %v4413_v5  ;;  %v4415_v27 = vpop.f32.mrf.mxu0  ;;  %4766 = vmatprep.subr.bf16.mxu1 %v7115_v11  ;;  %v1334_v1 = vld [vmem:[%s8441_s10 + $0x8f8] sm:$0xff]  ;;  %v6763_v5 = vcombine.high %v1054_v14, %v1062_v18 }
 0x343   : > { %v4458_v30 = vpop.f32.mrf.mxu1  ;;  %4724 = vmatpush1.bf16.msra.mxu0 %v6858_v4  ;;  %v7035_v11 = vcombine.high %v1326_v0, %v1334_v1  ;;  %v1310_v19 = vld [vmem:[%s8441_s10 + $0x838] sm:$0xff]  ;;  %v6778_v4 = vcombine.low %v1070_v62, %v1078_v63  ;;  %v7034_v8 = vcombine.low %v1326_v0, %v1334_v1 }
 0x344   : > { %4845 = vst [vmem:[#allocation2 + $0x30] sm:$0xff] %v4813_v25  ;;  %v4814_v60 = vadd.f32 %v4457_v26, %v1018_v20  ;;  %v4459_v33 = vadd.f32 %v4458_v30, %v4415_v27  ;;  %4767 = vmatpush1.bf16.msra.mxu1 %v7114_v7  ;;  %v4417_v34 = vpop.f32.mrf.mxu0  ;;  %4725 = vmatprep.subr.bf16.mxu0 %v6843_v9  ;;  %v1318_v3 = vld [vmem:[%s8441_s10 + $0x878] sm:$0xff] }
 0x345   : > { %v4460_v37 = vpop.f32.mrf.mxu1  ;;  %4768 = vmatprep.subr.bf16.mxu1 %v7099_v22  ;;  %v7019_v7 = vcombine.high %v1310_v19, %v1318_v3  ;;  %v1294_v9 = vld [vmem:[%s8441_s10 + $0x7b8] sm:$0xff]  ;;  %v7018_v24 = vcombine.low %v1310_v19, %v1318_v3 }
 0x346   : > { %4846 = vst [vmem:[#allocation2 + $0x48] sm:$0xff] %v4814_v60  ;;  %v4829_v41 = vadd.f32 %v4459_v33, %v1033_v29  ;;  %v4461_v42 = vadd.f32 %v4460_v37, %v4417_v34  ;;  %v1302_v20 = vld [vmem:[%s8441_s10 + $0x7f8] sm:$0xff] }
 0x347   : > { %4726 = vmatpush1.bf16.msra.mxu0 %v6842_v31  ;;  %v1550_v21 = vld [vmem:[%s8441_s10 + $0xfb8] sm:$0xff]  ;;  %v7003_v25 = vcombine.high %v1294_v9, %v1302_v20  ;;  %v7002_v30 = vcombine.low %v1294_v9, %v1302_v20 }
 0x348   : > { %4861 = vst [vmem:[#allocation2 + $0x70] sm:$0xff] %v4829_v41  ;;  %v4830_v46 = vadd.f32 %v4461_v42, %v1034_v36  ;;  %4769 = vmatpush1.bf16.msra.mxu1 %v7098_v32  ;;  %4727 = vmatprep.subr.bf16.mxu0 %v6827_v35  ;;  %v1558_v22 = vld [vmem:[%s8441_s10 + $0xff8] sm:$0xff] }
 0x349   : > { %4770 = vmatprep.subr.bf16.mxu1 %v7083_v38  ;;  %v7259_v26 = vcombine.high %v1550_v21, %v1558_v22  ;;  %v1278_v27 = vld [vmem:[%s8441_s10 + $0x738] sm:$0xff]  ;;  %v7258_v31 = vcombine.low %v1550_v21, %v1558_v22 }
 0x34a   : > { %4862 = vst [vmem:[#allocation2 + $0xc0] sm:$0xff] %v4830_v46  ;;  %v1286_v28 = vld [vmem:[%s8441_s10 + $0x778] sm:$0xff] }
 0x34b   : > { %4728 = vmatpush1.bf16.msra.mxu0 %v6826_v45  ;;  %v1534_v54 = vld [vmem:[%s8441_s10 + $0xf38] sm:$0xff]  ;;  %v6987_v32 = vcombine.high %v1278_v27, %v1286_v28  ;;  %v6986_v37 = vcombine.low %v1278_v27, %v1286_v28 }
 0x34c   : > { %4771 = vmatpush1.bf16.msra.mxu1 %v7082_v47  ;;  %4729 = vmatprep.subr.bf16.mxu0 %v6811_v48  ;;  %v1542_v29 = vld [vmem:[%s8441_s10 + $0xf78] sm:$0xff]  ;;  %v7211_v48 = vcombine.high %v1502_v43, %v1510_v44 }
 0x34d   : > { %4772 = vmatprep.subr.bf16.mxu1 %v7067_v49  ;;  %v7243_v60 = vcombine.high %v1534_v54, %v1542_v29  ;;  %v1262_v33 = vld [vmem:[%s8441_s10 + $0x6b8] sm:$0xff]  ;;  %v7242_v38 = vcombine.low %v1534_v54, %v1542_v29  ;;  %v1019_v54 = vld [vmem:[#allocation2 + $0x80] sm:$0xff] }
 0x34e   : > { %v1270_v34 = vld [vmem:[%s8441_s10 + $0x6f8] sm:$0xff] }
 0x34f   : > { %4730 = vmatpush1.bf16.msra.mxu0 %v6810_v55  ;;  %v1518_v35 = vld [vmem:[%s8441_s10 + $0xeb8] sm:$0xff]  ;;  %v6971_v39 = vcombine.high %v1262_v33, %v1270_v34  ;;  %v6970_v45 = vcombine.low %v1262_v33, %v1270_v34  ;;  %v7210_v55 = vcombine.low %v1502_v43, %v1510_v44 }
 0x350   : > { %4773 = vmatpush1.bf16.msra.mxu1 %v7066_v56  ;;  %4731 = vmatprep.subr.bf16.mxu0 %v6795_v57  ;;  %v1526_v36 = vld [vmem:[%s8441_s10 + $0xef8] sm:$0xff] }
 0x351   : > { %4774 = vmatprep.subr.bf16.mxu1 %v7051_v58  ;;  %v7227_v40 = vcombine.high %v1518_v35, %v1526_v36  ;;  %v1246_v41 = vld [vmem:[%s8441_s10 + $0x638] sm:$0xff]  ;;  %v7226_v46 = vcombine.low %v1518_v35, %v1526_v36  ;;  %v1035_v36 = vld [vmem:[#allocation2 + $0xa8] sm:$0xff] }
 0x352   : > { %v1254_v42 = vld [vmem:[%s8441_s10 + $0x678] sm:$0xff] }
 0x353   : > { %4732 = vmatpush1.bf16.msra.mxu0 %v6794_v2  ;;  %v6955_v47 = vcombine.high %v1246_v41, %v1254_v42  ;;  %v1230_v49 = vld [vmem:[%s8441_s10 + $0x5b8] sm:$0xff]  ;;  %v6954_v53 = vcombine.low %v1246_v41, %v1254_v42 }
 0x354   : > { %4775 = vmatpush1.bf16.msra.mxu1 %v7050_v6  ;;  %4733 = vmatprep.subr.bf16.mxu0 %v6779_v10  ;;  %v1494_v52 = vld [vmem:[%s8441_s10 + $0xdf8] sm:$0xff]  ;;  %v6939_v56 = vcombine.high %v1230_v49, %v1238_v50  ;;  %v6938_v1 = vcombine.low %v1230_v49, %v1238_v50  ;;  %v1022_v49 = vld [vmem:[#allocation2 + $0xb8] sm:$0xff] }
 0x355   : > { %4776 = vmatprep.subr.bf16.mxu1 %v7035_v11  ;;  %v7195_v57 = vcombine.high %v1486_v51, %v1494_v52  ;;  %v1214_v58 = vld [vmem:[%s8441_s10 + $0x538] sm:$0xff]  ;;  %v7194_v2 = vcombine.low %v1486_v51, %v1494_v52 }
 0x356   : > { %v1222_v62 = vld [vmem:[%s8441_s10 + $0x578] sm:$0xff] }
 0x357   : > { %4734 = vmatpush1.bf16.msra.mxu0 %v6778_v4  ;;  %v1470_v63 = vld [vmem:[%s8441_s10 + $0xd38] sm:$0xff]  ;;  %v6923_v6 = vcombine.high %v1214_v58, %v1222_v62  ;;  %v6922_v3 = vcombine.low %v1214_v58, %v1222_v62 }
 0x358   : > { %4777 = vmatpush1.bf16.msra.mxu1 %v7034_v8  ;;  %4735 = vmatprep.subr.bf16.mxu0 %v6763_v5  ;;  %v1478_v0 = vld [vmem:[%s8441_s10 + $0xd78] sm:$0xff] }
 0x359   : > { %4778 = vmatprep.subr.bf16.mxu1 %v7019_v7  ;;  %v7179_v10 = vcombine.high %v1470_v63, %v1478_v0  ;;  %v1198_v11 = vld [vmem:[%s8441_s10 + $0x4b8] sm:$0xff]  ;;  %v7178_v4 = vcombine.low %v1470_v63, %v1478_v0  ;;  %v1038_v63 = vld [vmem:[#allocation2 + $0x28] sm:$0xff] }
 0x35a   : > { %v1206_v14 = vld [vmem:[%s8441_s10 + $0x4f8] sm:$0xff] }
 0x35b   : > { %4736 = vmatpush1.bf16.msra.mxu0 %v6762_v23  ;;  %v1454_v18 = vld [vmem:[%s8441_s10 + $0xcb8] sm:$0xff]  ;;  %v6907_v8 = vcombine.high %v1198_v11, %v1206_v14  ;;  %v6906_v22 = vcombine.low %v1198_v11, %v1206_v14  ;;  %v1023_v11 = vld [vmem:[#allocation2 + $0x60] sm:$0xff] }
 0x35c   : > { %4779 = vmatpush1.bf16.msra.mxu1 %v7018_v24  ;;  %4737 = vmatprep.subr.bf16.mxu0 %v7003_v25  ;;  %v1462_v19 = vld [vmem:[%s8441_s10 + $0xcf8] sm:$0xff] }
 0x35d   : > { %4780 = vmatprep.subr.bf16.mxu1 %v7259_v26  ;;  %v7163_v5 = vcombine.high %v1454_v18, %v1462_v19  ;;  %v1182_v7 = vld [vmem:[%s8441_s10 + $0x438] sm:$0xff]  ;;  %v7162_v23 = vcombine.low %v1454_v18, %v1462_v19 }
 0x35e   : > { %v1190_v9 = vld [vmem:[%s8441_s10 + $0x478] sm:$0xff] }
 0x35f   : > { %4738 = vmatpush2.bf16.msra.mxu0 %v7002_v30  ;;  %v1438_v20 = vld [vmem:[%s8441_s10 + $0xc38] sm:$0xff]  ;;  %v6891_v24 = vcombine.high %v1182_v7, %v1190_v9  ;;  %v6890_v26 = vcombine.low %v1182_v7, %v1190_v9  ;;  %v1039_v9 = vld [vmem:[#allocation2 + $0xa0] sm:$0xff] }
 0x360   : > { %4781 = vmatpush2.bf16.msra.mxu1 %v7258_v31  ;;  %4739 = vmatprep.subr.bf16.mxu0 %v6987_v32  ;;  %v1446_v21 = vld [vmem:[%s8441_s10 + $0xc78] sm:$0xff]  ;;  %v1020_v32 = vld [vmem:[#allocation2 + $0x88] sm:$0xff] }
 0x361   : > { %4782 = vmatprep.subr.bf16.mxu1 %v7243_v60  ;;  %v7147_v25 = vcombine.high %v1438_v20, %v1446_v21  ;;  %v7146_v27 = vcombine.low %v1438_v20, %v1446_v21  ;;  %v1036_v41 = vld [vmem:[#allocation2 + $0xd0] sm:$0xff] }
 0x363   : > { %4740 = vmatpush2.bf16.msra.mxu0 %v6986_v37 }
 0x364   : > { %4783 = vmatpush2.bf16.msra.mxu1 %v7242_v38  ;;  %4741 = vmatprep.subr.bf16.mxu0 %v6971_v39 }
 0x365   : > { %4784 = vmatprep.subr.bf16.mxu1 %v7227_v40 }
 0x367   : > { %4742 = vmatpush2.bf16.msra.mxu0 %v6970_v45  ;;  %v1021_v45 = vld [vmem:[#allocation2 + $0xe8] sm:$0xff] }
 0x368   : > { %4785 = vmatpush2.bf16.msra.mxu1 %v7226_v46  ;;  %4743 = vmatprep.subr.bf16.mxu0 %v6955_v47 }
 0x369   : > { %4786 = vmatprep.subr.bf16.mxu1 %v7211_v48 }
 0x36b   : > { %4744 = vmatpush2.bf16.msra.mxu0 %v6954_v53 }
 0x36c   : > { %4787 = vmatpush2.bf16.msra.mxu1 %v7210_v55  ;;  %4745 = vmatprep.subr.bf16.mxu0 %v6939_v56  ;;  %v1037_v55 = vld [vmem:[#allocation2 + $0x10] sm:$0xff] }
 0x36d   : > { %4788 = vmatprep.subr.bf16.mxu1 %v7195_v57 }
 0x36f   : > { %4746 = vmatpush2.bf16.msra.mxu0 %v6938_v1 }
 0x370   : > { %4789 = vmatpush2.bf16.msra.mxu1 %v7194_v2  ;;  %4747 = vmatprep.subr.bf16.mxu0 %v6923_v6 }
 0x371   : > { %4790 = vmatprep.subr.bf16.mxu1 %v7179_v10 }
 0x373   : > { %4748 = vmatpush2.bf16.msra.mxu0 %v6922_v3  ;;  %v1024_v3 = vld [vmem:[#allocation2 + $0xf0] sm:$0xff] }
 0x374   : > { %4791 = vmatpush2.bf16.msra.mxu1 %v7178_v4  ;;  %4749 = vmatprep.subr.bf16.mxu0 %v6907_v8 }
 0x375   : > { %4792 = vmatprep.subr.bf16.mxu1 %v7163_v5 }
 0x377   : > { %4750 = vmatpush2.bf16.msra.mxu0 %v6906_v22 }
 0x378   : > { %4793 = vmatpush2.bf16.msra.mxu1 %v7162_v23  ;;  %4751 = vmatprep.subr.bf16.mxu0 %v6891_v24  ;;  %v1040_v24 = vld [vmem:[#allocation2 + $0xf8] sm:$0xff] }
 0x379   : > { %4794 = vmatprep.subr.bf16.mxu1 %v7147_v25 }
 0x37b   : > { %4752 = vmatpush2.bf16.msra.mxu0 %v6890_v26 }
 0x37c   : > { %4795 = vmatpush2.bf16.msra.mxu1 %v7146_v27 }
 0x37e   : > { %v4497_v28 = vpop.f32.mrf.mxu0  ;;  %4754 = vmatmul.mubr.bf16.vlgmr.msra.gmra.mxu0 %v8630_v59 }
 0x37f   : > { %v4540_v29 = vpop.f32.mrf.mxu1  ;;  %4797 = vmatmul.mubr.bf16.vlgmr.msra.gmra.mxu1 %v8634_v61 }
 0x380   : > { %v4541_v30 = vadd.f32 %v4540_v29, %v4497_v28  ;;  %v4499_v31 = vpop.f32.mrf.mxu0  ;;  %v1025_v29 = vld [vmem:[#allocation2 + $0x8] sm:$0xff] }
 0x381   : > { %v4542_v60 = vpop.f32.mrf.mxu1 }
 0x382   : > { %v4815_v33 = vadd.f32 %v4541_v30, %v1019_v54  ;;  %v4543_v34 = vadd.f32 %v4542_v60, %v4499_v31  ;;  %v4501_v35 = vpop.f32.mrf.mxu0  ;;  %v1026_v60 = vld [vmem:[#allocation2 + $0x78] sm:$0xff] }
 0x383   : > { %v4544_v37 = vpop.f32.mrf.mxu1 }
 0x384   : > { %4847 = vst [vmem:[#allocation2 + $0x80] sm:$0xff] %v4815_v33  ;;  %v4816_v38 = vadd.f32 %v4543_v34, %v1020_v32  ;;  %v4545_v39 = vadd.f32 %v4544_v37, %v4501_v35  ;;  %v4503_v40 = vpop.f32.mrf.mxu0  ;;  %v1041_v37 = vld [vmem:[#allocation2 + $0x20] sm:$0xff] }
 0x385   : > { %v4546_v42 = vpop.f32.mrf.mxu1 }
 0x386   : > { %4848 = vst [vmem:[#allocation2 + $0x88] sm:$0xff] %v4816_v38  ;;  %v4831_v59 = vadd.f32 %v4545_v39, %v1035_v36  ;;  %v4547_v43 = vadd.f32 %v4546_v42, %v4503_v40  ;;  %v1042_v42 = vld [vmem:[#allocation2 + $0x98] sm:$0xff] }
 0x388   : > { %4863 = vst [vmem:[#allocation2 + $0xa8] sm:$0xff] %v4831_v59  ;;  %v4832_v61 = vadd.f32 %v4547_v43, %v1036_v41 }
 0x38a   : > { %4864 = vst [vmem:[#allocation2 + $0xd0] sm:$0xff] %v4832_v61 }
 0x3be   : > { %v4583_v44 = vpop.f32.mrf.mxu0 }
 0x3bf   : > { %v4626_v46 = vpop.f32.mrf.mxu1 }
 0x3c0   : > { %v4627_v47 = vadd.f32 %v4626_v46, %v4583_v44  ;;  %v4585_v48 = vpop.f32.mrf.mxu0 }
 0x3c1   : > { %v4628_v50 = vpop.f32.mrf.mxu1 }
 0x3c2   : > { %v4817_v51 = vadd.f32 %v4627_v47, %v1021_v45  ;;  %v4629_v52 = vadd.f32 %v4628_v50, %v4585_v48  ;;  %v4587_v53 = vpop.f32.mrf.mxu0 }
 0x3c3   : > { %v4630_v56 = vpop.f32.mrf.mxu1 }
 0x3c4   : > { %4849 = vst [vmem:[#allocation2 + $0xe8] sm:$0xff] %v4817_v51  ;;  %v4818_v57 = vadd.f32 %v4629_v52, %v1022_v49  ;;  %v4631_v58 = vadd.f32 %v4630_v56, %v4587_v53  ;;  %v4589_v62 = vpop.f32.mrf.mxu0 }
 0x3c5   : > { %v4632_v0 = vpop.f32.mrf.mxu1 }
 0x3c6   : > { %4850 = vst [vmem:[#allocation2 + $0xb8] sm:$0xff] %v4818_v57  ;;  %v4833_v1 = vadd.f32 %v4631_v58, %v1037_v55  ;;  %v4633_v2 = vadd.f32 %v4632_v0, %v4589_v62 }
 0x3c8   : > { %4865 = vst [vmem:[#allocation2 + $0x10] sm:$0xff] %v4833_v1  ;;  %v4834_v6 = vadd.f32 %v4633_v2, %v1038_v63 }
 0x3ca   : > { %4866 = vst [vmem:[#allocation2 + $0x28] sm:$0xff] %v4834_v6 }
 0x3fe   : > { %v4669_v10 = vpop.f32.mrf.mxu0 }
 0x3ff   : > { %v4712_v14 = vpop.f32.mrf.mxu1 }
 0x400   : > { %v4713_v18 = vadd.f32 %v4712_v14, %v4669_v10  ;;  %v4671_v19 = vpop.f32.mrf.mxu0 }
 0x401   : > { %v4714_v4 = vpop.f32.mrf.mxu1 }
 0x402   : > { %v4819_v8 = vadd.f32 %v4713_v18, %v1023_v11  ;;  %v4715_v5 = vadd.f32 %v4714_v4, %v4671_v19  ;;  %v4673_v7 = vpop.f32.mrf.mxu0 }
 0x403   : > { %v4716_v20 = vpop.f32.mrf.mxu1 }
 0x404   : > { %4851 = vst [vmem:[#allocation2 + $0x60] sm:$0xff] %v4819_v8  ;;  %v4820_v21 = vadd.f32 %v4715_v5, %v1024_v3  ;;  %v4717_v22 = vadd.f32 %v4716_v20, %v4673_v7  ;;  %v4675_v23 = vpop.f32.mrf.mxu0 }
 0x405   : > { %v4718_v25 = vpop.f32.mrf.mxu1 }
 0x406   : > { %4852 = vst [vmem:[#allocation2 + $0xf0] sm:$0xff] %v4820_v21  ;;  %v4835_v26 = vadd.f32 %v4717_v22, %v1039_v9  ;;  %v4719_v27 = vadd.f32 %v4718_v25, %v4675_v23 }
 0x408   : > { %4867 = vst [vmem:[#allocation2 + $0xa0] sm:$0xff] %v4835_v26  ;;  %v4836_v28 = vadd.f32 %v4719_v27, %v1040_v24 }
 0x40a   : > { %4868 = vst [vmem:[#allocation2 + $0xf8] sm:$0xff] %v4836_v28 }
 0x43e   : > { %v4755_v54 = vpop.f32.mrf.mxu0 }
 0x43f   : > { %v4798_v30 = vpop.f32.mrf.mxu1 }
 0x440   : > { %v4799_v31 = vadd.f32 %v4798_v30, %v4755_v54  ;;  %v4757_v32 = vpop.f32.mrf.mxu0 }
 0x441   : > { %v4800_v33 = vpop.f32.mrf.mxu1 }
 0x442   : > { %v4821_v34 = vadd.f32 %v4799_v31, %v1025_v29  ;;  %v4801_v35 = vadd.f32 %v4800_v33, %v4757_v32  ;;  %v4759_v36 = vpop.f32.mrf.mxu0 }
 0x443   : > { %v4802_v38 = vpop.f32.mrf.mxu1 }
 0x444   : > { %4853 = vst [vmem:[#allocation2 + $0x8] sm:$0xff] %v4821_v34  ;;  %v4822_v39 = vadd.f32 %v4801_v35, %v1026_v60  ;;  %v4803_v40 = vadd.f32 %v4802_v38, %v4759_v36  ;;  %v4761_v41 = vpop.f32.mrf.mxu0 }
 0x445   : > { %v4804_v59 = vpop.f32.mrf.mxu1 }
 0x446   : > { %4854 = vst [vmem:[#allocation2 + $0x78] sm:$0xff] %v4822_v39  ;;  %v4837_v43 = vadd.f32 %v4803_v40, %v1041_v37  ;;  %v4805_v61 = vadd.f32 %v4804_v59, %v4761_v41  ;;  %4874 = sbr.rel (%p7260_p12) target bundleno = 1449 (0x5a9), region = 84 }
 0x448   : > { %4869 = vst [vmem:[#allocation2 + $0x20] sm:$0xff] %v4837_v43  ;;  %v4838_v44 = vadd.f32 %v4805_v61, %v1042_v42 }
 0x44a   : > { %4870 = vst [vmem:[#allocation2 + $0x98] sm:$0xff] %v4838_v44 }
 0x44b   : > { %v7797_v45 = vld [vmem:[#allocation12 + $0x78] sm:$0xff]   ;;  %v7801_v49 = vld [vmem:[#allocation12 + $0x70] sm:$0xff]   ;;  %v7805_v53 = vld [vmem:[#allocation12 + $0x68] sm:$0xff]  }
 0x44c   : > { %v7798_v46 = vld [vmem:[#allocation12 + $0xf8] sm:$0xff]   ;;  %7398 = vmatprep.subr.bf16.mxu0 %v7797_v45  ;;  %v7802_v50 = vld [vmem:[#allocation12 + $0xf0] sm:$0xff]   ;;  %v7806_v55 = vld [vmem:[#allocation12 + $0xe8] sm:$0xff]  }
 0x44d   : > { %v7799_v47 = vld [vmem:[#allocation12 + $0x38] sm:$0xff]   ;;  %7420 = vmatprep.subr.bf16.mxu1 %v7798_v46  ;;  %v7803_v51 = vld [vmem:[#allocation12 + $0x30] sm:$0xff]   ;;  %v7807_v56 = vld [vmem:[#allocation12 + $0x28] sm:$0xff]  }
 0x44e   : > { %v7800_v48 = vld [vmem:[#allocation12 + $0xb8] sm:$0xff]   ;;  %7399 = vmatpush3.bf16.msra.mxu0 %v7799_v47  ;;  %v7804_v52 = vld [vmem:[#allocation12 + $0xb0] sm:$0xff]   ;;  %v7808_v57 = vld [vmem:[#allocation12 + $0xa8] sm:$0xff]  }
 0x44f   : > { %7421 = vmatpush3.bf16.msra.mxu1 %v7800_v48  ;;  %7400 = vmatprep.subr.bf16.mxu0 %v7801_v49  ;;  %v7809_v58 = vld [vmem:[#allocation12 + $0x60] sm:$0xff]   ;;  %v7813_v1 = vld [vmem:[#allocation12 + $0x58] sm:$0xff]   ;;  %v7817_v11 = vld [vmem:[#allocation12 + $0x50] sm:$0xff]  }
 0x450   : > { %7422 = vmatprep.subr.bf16.mxu1 %v7802_v50  ;;  %v7810_v62 = vld [vmem:[#allocation12 + $0xe0] sm:$0xff]   ;;  %v7814_v2 = vld [vmem:[#allocation12 + $0xd8] sm:$0xff]   ;;  %v7818_v14 = vld [vmem:[#allocation12 + $0xd0] sm:$0xff]  }
 0x451   : > { %v7811_v63 = vld [vmem:[#allocation12 + $0x20] sm:$0xff]   ;;  %v7815_v6 = vld [vmem:[#allocation12 + $0x18] sm:$0xff]   ;;  %v7819_v18 = vld [vmem:[#allocation12 + $0x10] sm:$0xff]  }
 0x452   : > { %7401 = vmatpush3.bf16.msra.mxu0 %v7803_v51  ;;  %v7812_v0 = vld [vmem:[#allocation12 + $0xa0] sm:$0xff]   ;;  %v7816_v10 = vld [vmem:[#allocation12 + $0x98] sm:$0xff]   ;;  %v7820_v19 = vld [vmem:[#allocation12 + $0x90] sm:$0xff]  }
 0x453   : > { %7423 = vmatpush3.bf16.msra.mxu1 %v7804_v52  ;;  %7402 = vmatprep.subr.bf16.mxu0 %v7805_v53  ;;  %v7821_v3 = vld [vmem:[#allocation12 + $0x48] sm:$0xff]   ;;  %v7825_v7 = vld [vmem:[#allocation12 + $0x40] sm:$0xff]   ;;  %v4876_v22 = vld [vmem:[#allocation2] sm:$0xff] }
 0x454   : > { %7424 = vmatprep.subr.bf16.mxu1 %v7806_v55  ;;  %v7822_v4 = vld [vmem:[#allocation12 + $0xc8] sm:$0xff]   ;;  %v7826_v9 = vld [vmem:[#allocation12 + $0xc0] sm:$0xff]   ;;  %v4892_v23 = vld [vmem:[#allocation2 + $0x58] sm:$0xff] }
 0x455   : > { %v7823_v8 = vld [vmem:[#allocation12 + $0x8] sm:$0xff]   ;;  %v7827_v20 = vld [vmem:[#allocation12] sm:$0xff]   ;;  %v9115_v24 = vld [vmem:[#allocation11] sm:$0xff] }
 0x456   : > { %7403 = vmatpush3.bf16.msra.mxu0 %v7807_v56  ;;  %v7824_v5 = vld [vmem:[#allocation12 + $0x88] sm:$0xff]   ;;  %v7828_v21 = vld [vmem:[#allocation12 + $0x80] sm:$0xff]   ;;  %v4918_v25 = vrot.slane %v9115_v24, %v8611_v15  ;;  %v4878_v26 = vld [vmem:[#allocation2 + $0x18] sm:$0xff]  ;;  %v4926_v28 = vrot.slane %v9115_v24, %v8614_v16  ;;  %v4914_v29 = vrot.slane %v9115_v24, %v8607_v13  ;;  %v4922_v30 = vrot.slane %v9115_v24, %v8617_v17 }
 0x457   : > { %7425 = vmatpush3.bf16.msra.mxu1 %v7808_v57  ;;  %7404 = vmatprep.subr.bf16.mxu0 %v7809_v58  ;;  %v4894_v27 = vld [vmem:[#allocation2 + $0xc8] sm:$0xff]  ;;  %v4875_v54 = vld [vmem:[#allocation2 + $0xb0] sm:$0xff]  ;;  %v4891_v31 = vld [vmem:[#allocation2 + $0x38] sm:$0xff] }
 0x458   : > { %7426 = vmatprep.subr.bf16.mxu1 %v7810_v62  ;;  %v4877_v32 = vld [vmem:[#allocation2 + $0xd8] sm:$0xff]  ;;  %v4893_v60 = vld [vmem:[#allocation2 + $0x40] sm:$0xff]  ;;  %v4992_v33 = vadd.f32 %v4918_v25, %v4876_v22  ;;  %v5008_v34 = vadd.f32 %v4918_v25, %v4892_v23  ;;  %v4994_v35 = vadd.f32 %v4926_v28, %v4878_v26  ;;  %v5010_v36 = vadd.f32 %v4926_v28, %v4894_v27 }
 0x459   : > { %v7829_v37 = vld [vmem:[#allocation12 + $0x178] sm:$0xff]   ;;  %v4991_v38 = vadd.f32 %v4914_v29, %v4875_v54  ;;  %v5007_v39 = vadd.f32 %v4914_v29, %v4891_v31  ;;  %v4993_v40 = vadd.f32 %v4922_v30, %v4877_v32  ;;  %v5009_v41 = vadd.f32 %v4922_v30, %v4893_v60  ;;  %v7849_v25 = vld [vmem:[#allocation12 + $0x150] sm:$0xff]   ;;  %v7853_v54 = vld [vmem:[#allocation12 + $0x148] sm:$0xff]  }
 0x45a   : > { %7405 = vmatpush3.bf16.msra.mxu0 %v7811_v63  ;;  %v7830_v42 = vld [vmem:[#allocation12 + $0x1f8] sm:$0xff]   ;;  %vm5024_vm8 = vcmp.gt.f32.partialorder %v4992_v33, 0.0  ;;  %vm5040_vm9 = vcmp.gt.f32.partialorder %v5008_v34, 0.0  ;;  %v5056_v59 = vmul.f32 0.01, %v4992_v33  ;;  %vm5026_vm10 = vcmp.gt.f32.partialorder %v4994_v35, 0.0 }
 0x45b   : > { %7427 = vmatpush3.bf16.msra.mxu1 %v7812_v0  ;;  %7406 = vmatprep.subr.bf16.mxu0 %v7813_v1  ;;  %v5072_v43 = vmul.f32 0.01, %v5008_v34  ;;  %vm5042_vm11 = vcmp.gt.f32.partialorder %v5010_v36, 0.0  ;;  %v5058_v61 = vmul.f32 0.01, %v4994_v35  ;;  %vm5023_vm12 = vcmp.gt.f32.partialorder %v4991_v38, 0.0 }
 0x45c   : > { %7428 = vmatprep.subr.bf16.mxu1 %v7814_v2  ;;  %v5074_v44 = vmul.f32 0.01, %v5010_v36  ;;  %v5088_v45 = vsel %vm5024_vm8, %v4992_v33, %v5056_v59  ;;  %vm5039_vm13 = vcmp.gt.f32.partialorder %v5007_v39, 0.0  ;;  %v5055_v50 = vmul.f32 0.01, %v4991_v38  ;;  %v7831_v53 = vld [vmem:[#allocation12 + $0x138] sm:$0xff]  }
 0x45d   : > { %v5104_v46 = vsel %vm5040_vm9, %v5008_v34, %v5072_v43  ;;  %v5090_v48 = vsel %vm5026_vm10, %v4994_v35, %v5058_v61  ;;  %v5071_v52 = vmul.f32 0.01, %v5007_v39  ;;  %vm5025_vm14 = vcmp.gt.f32.partialorder %v4993_v40, 0.0  ;;  %v7832_v58 = vld [vmem:[#allocation12 + $0x1b8] sm:$0xff]   ;;  %v7833_v63 = vld [vmem:[#allocation12 + $0x170] sm:$0xff]   ;;  %v7854_v30 = vld [vmem:[#allocation12 + $0x1c8] sm:$0xff]  }
 0x45e   : > { %7407 = vmatpush3.bf16.msra.mxu0 %v7815_v6  ;;  %v5120_v47 = vpack.c.bf16 %v5104_v46, %v5088_v45  ;;  %v5106_v49 = vsel %vm5042_vm11, %v5010_v36, %v5074_v44  ;;  %vm5041_vm15 = vcmp.gt.f32.partialorder %v5009_v41, 0.0  ;;  %v5087_v55 = vsel %vm5023_vm12, %v4991_v38, %v5055_v50  ;;  %v7834_v6 = vld [vmem:[#allocation12 + $0x1f0] sm:$0xff]   ;;  %v7847_v22 = vld [vmem:[#allocation12 + $0x118] sm:$0xff]   ;;  %v7855_v32 = vld [vmem:[#allocation12 + $0x108] sm:$0xff]  }
 0x45f   : > { %7429 = vmatpush3.bf16.msra.mxu1 %v7816_v10  ;;  %7408 = vmatprep.subr.bf16.mxu0 %v7817_v11  ;;  %v5122_v51 = vpack.c.bf16 %v5106_v49, %v5090_v48  ;;  %v5057_v56 = vmul.f32 0.01, %v4993_v40  ;;  %v5073_v57 = vmul.f32 0.01, %v5009_v41  ;;  %v5103_v62 = vsel %vm5039_vm13, %v5007_v39, %v5071_v52  ;;  %v7835_v11 = vld [vmem:[#allocation12 + $0x130] sm:$0xff]   ;;  %v7848_v23 = vld [vmem:[#allocation12 + $0x198] sm:$0xff]  }
 0x460   : > { %7430 = vmatprep.subr.bf16.mxu1 %v7818_v14  ;;  %6198 = vmatprep.mubr.bf16.mxu0 %v5120_v47  ;;  %v5119_v0 = vpack.c.bf16 %v5103_v62, %v5087_v55  ;;  %v7836_v14 = vld [vmem:[#allocation12 + $0x1b0] sm:$0xff]   ;;  %v4933_v29 = vsub.s32 5, %v8604_v12  ;;  %v4941_v31 = vsub.s32 7, %v8604_v12  ;;  %v4929_v60 = vsub.s32 4, %v8604_v12  ;;  %v7856_v33 = vld [vmem:[#allocation12 + $0x188] sm:$0xff]   ;;  %v7857_v34 = vld [vmem:[#allocation12 + $0x140] sm:$0xff]  }
 0x461   : > { %6239 = vmatprep.mubr.bf16.mxu1 %v5122_v51  ;;  %v5089_v1 = vsel %vm5025_vm14, %v4993_v40, %v5057_v56  ;;  %v5105_v2 = vsel %vm5041_vm15, %v5009_v41, %v5073_v57  ;;  %v7850_v26 = vld [vmem:[#allocation12 + $0x1d0] sm:$0xff]   ;;  %v4937_v36 = vsub.s32 6, %v8604_v12  ;;  %v7859_v39 = vld [vmem:[#allocation12 + $0x100] sm:$0xff]   ;;  %v4896_v59 = vld [vmem:[#allocation2 + $0x90] sm:$0xff] }
 0x462   : > { %7409 = vmatpush3.bf16.msra.mxu0 %v7819_v18  ;;  %v5121_v10 = vpack.c.bf16 %v5105_v2, %v5089_v1  ;;  %v7837_v18 = vld [vmem:[#allocation12 + $0x168] sm:$0xff]   ;;  %v7851_v27 = vld [vmem:[#allocation12 + $0x110] sm:$0xff]   ;;  %v4934_v35 = vrot.slane %v9115_v24, %v4933_v29  ;;  %v4942_v38 = vrot.slane %v9115_v24, %v4941_v31  ;;  %v4930_v40 = vrot.slane %v9115_v24, %v4929_v60  ;;  %v7860_v41 = vld [vmem:[#allocation12 + $0x180] sm:$0xff]  }
 0x463   : > { %7431 = vmatpush3.bf16.msra.mxu1 %v7820_v19  ;;  %7410 = vmatprep.subr.bf16.mxu0 %v7821_v3  ;;  %v7838_v19 = vld [vmem:[#allocation12 + $0x1e8] sm:$0xff]   ;;  %v7852_v28 = vld [vmem:[#allocation12 + $0x190] sm:$0xff]   ;;  %v4882_v61 = vld [vmem:[#allocation2 + $0x48] sm:$0xff]  ;;  %v4938_v45 = vrot.slane %v9115_v24, %v4937_v36 }
 0x464   : > { %7432 = vmatprep.subr.bf16.mxu1 %v7822_v4  ;;  %v7839_v3 = vld [vmem:[#allocation12 + $0x128] sm:$0xff]   ;;  %v4898_v44 = vld [vmem:[#allocation2 + $0xc0] sm:$0xff]  ;;  %v5012_v46 = vadd.f32 %v4934_v35, %v4896_v59  ;;  %v4998_v47 = vadd.f32 %v4942_v38, %v4882_v61  ;;  %v7882_v61 = vld [vmem:[#allocation12 + $0x2d0] sm:$0xff]  }
 0x465   : > { %v7840_v4 = vld [vmem:[#allocation12 + $0x1a8] sm:$0xff]   ;;  %v5014_v48 = vadd.f32 %v4942_v38, %v4898_v44  ;;  %v4895_v50 = vld [vmem:[#allocation2 + $0xe0] sm:$0xff]  ;;  %v7875_v38 = vld [vmem:[#allocation12 + $0x220] sm:$0xff]  }
 0x466   : > { %7411 = vmatpush3.bf16.msra.mxu0 %v7823_v8  ;;  %v7841_v8 = vld [vmem:[#allocation12 + $0x160] sm:$0xff]   ;;  %v4879_v49 = vld [vmem:[#allocation2 + $0x50] sm:$0xff]  ;;  %v5011_v55 = vadd.f32 %v4930_v40, %v4895_v50  ;;  %vm5044_vm1 = vcmp.gt.f32.partialorder %v5012_v46, 0.0  ;;  %v5076_v57 = vmul.f32 0.01, %v5012_v46  ;;  %vm5030_vm2 = vcmp.gt.f32.partialorder %v4998_v47, 0.0 }
 0x467   : > { %7433 = vmatpush3.bf16.msra.mxu1 %v7824_v5  ;;  %7412 = vmatprep.subr.bf16.mxu0 %v7825_v7  ;;  %v7842_v5 = vld [vmem:[#allocation12 + $0x1e0] sm:$0xff]   ;;  %v4881_v51 = vld [vmem:[#allocation2 + $0x30] sm:$0xff]  ;;  %vm5046_vm3 = vcmp.gt.f32.partialorder %v5014_v48, 0.0  ;;  %v5062_v62 = vmul.f32 0.01, %v4998_v47  ;;  %v7880_v59 = vld [vmem:[#allocation12 + $0x298] sm:$0xff]  }
 0x468   : > { %7434 = vmatprep.subr.bf16.mxu1 %v7826_v9  ;;  %v7843_v7 = vld [vmem:[#allocation12 + $0x120] sm:$0xff]   ;;  %v4897_v56 = vld [vmem:[#allocation2 + $0x70] sm:$0xff]  ;;  %v5108_v1 = vsel %vm5044_vm1, %v5012_v46, %v5076_v57  ;;  %vm5043_vm5 = vcmp.gt.f32.partialorder %v5011_v55, 0.0  ;;  %v7883_v44 = vld [vmem:[#allocation12 + $0x210] sm:$0xff]  }
 0x469   : > { %v7844_v9 = vld [vmem:[#allocation12 + $0x1a0] sm:$0xff]   ;;  %v7885_v46 = vld [vmem:[#allocation12 + $0x248] sm:$0xff]   ;;  %v9144_v57 = vld [vmem:[#allocation11 + $0x8] sm:$0xff] }
 0x46a   : > { %7413 = vmatpush3.bf16.msra.mxu0 %v7827_v20  ;;  %v7845_v20 = vld [vmem:[#allocation12 + $0x158] sm:$0xff]   ;;  %v7889_v50 = vld [vmem:[#allocation12 + $0x240] sm:$0xff]  }
 0x46b   : > { %7435 = vmatpush3.bf16.msra.mxu1 %v7828_v21  ;;  %7442 = vmatprep.subr.bf16.mxu0 %v7829_v37  ;;  %v7846_v21 = vld [vmem:[#allocation12 + $0x1d8] sm:$0xff]   ;;  %v7858_v37 = vld [vmem:[#allocation12 + $0x1c0] sm:$0xff]  }
 0x46c   : > { %7464 = vmatprep.subr.bf16.mxu1 %v7830_v42  ;;  %v4880_v42 = vld [vmem:[#allocation2 + $0x68] sm:$0xff]  ;;  %v4905_v12 = vld [vmem:[#allocation2 + $0x20] sm:$0xff] }
 0x46d   : > { %6199 = vmatmul.mubr.bf16.vlgmr.msra.gmra.mxu0 %v5119_v0  ;;  %v4996_v43 = vadd.f32 %v4934_v35, %v4880_v42  ;;  %v7862_v0 = vld [vmem:[#allocation12 + $0x2f8] sm:$0xff]   ;;  %v7873_v35 = vld [vmem:[#allocation12 + $0x260] sm:$0xff]  }
 0x46e   : > { %6240 = vmatmul.mubr.bf16.vlgmr.msra.gmra.mxu1 %v5121_v10  ;;  %7443 = vmatpush3.bf16.msra.mxu0 %v7831_v53  ;;  %v4995_v53 = vadd.f32 %v4930_v40, %v4879_v49  ;;  %v7863_v10 = vld [vmem:[#allocation12 + $0x238] sm:$0xff]   ;;  %v7888_v49 = vld [vmem:[#allocation12 + $0x288] sm:$0xff]  }
 0x46f   : > { %7465 = vmatpush3.bf16.msra.mxu1 %v7832_v58  ;;  %7444 = vmatprep.subr.bf16.mxu0 %v7833_v63  ;;  %vm5028_vm0 = vcmp.gt.f32.partialorder %v4996_v43, 0.0  ;;  %v5060_v52 = vmul.f32 0.01, %v4996_v43  ;;  %v7861_v58 = vld [vmem:[#allocation12 + $0x278] sm:$0xff]   ;;  %v5078_v63 = vmul.f32 0.01, %v5014_v48 }
 0x470   : > { %7466 = vmatprep.subr.bf16.mxu1 %v7834_v6  ;;  %vm5027_vm4 = vcmp.gt.f32.partialorder %v4995_v53, 0.0  ;;  %v5059_v2 = vmul.f32 0.01, %v4995_v53  ;;  %v5075_v6 = vmul.f32 0.01, %v5011_v55  ;;  %v7877_v40 = vld [vmem:[#allocation12 + $0x258] sm:$0xff]  }
 0x471   : > { %v5092_v24 = vsel %vm5028_vm0, %v4996_v43, %v5060_v52  ;;  %v7879_v42 = vld [vmem:[#allocation12 + $0x218] sm:$0xff]   ;;  %v7881_v43 = vld [vmem:[#allocation12 + $0x250] sm:$0xff]   ;;  %v7891_v52 = vld [vmem:[#allocation12 + $0x200] sm:$0xff]  }
 0x472   : > { %7445 = vmatpush3.bf16.msra.mxu0 %v7835_v11  ;;  %v5124_v11 = vpack.c.bf16 %v5108_v1, %v5092_v24  ;;  %v4902_v24 = vld [vmem:[#allocation2 + $0x28] sm:$0xff] }
 0x473   : > { %7467 = vmatpush3.bf16.msra.mxu1 %v7836_v14  ;;  %7446 = vmatprep.subr.bf16.mxu0 %v7837_v18  ;;  %v5094_v14 = vsel %vm5030_vm2, %v4998_v47, %v5062_v62  ;;  %v5110_v18 = vsel %vm5046_vm3, %v5014_v48, %v5078_v63  ;;  %v7886_v47 = vld [vmem:[#allocation12 + $0x2c8] sm:$0xff]   ;;  %v4950_v62 = vrot.slane %v9144_v57, %v8611_v15  ;;  %v4899_v1 = vld [vmem:[#allocation2 + $0xa8] sm:$0xff] }
 0x474   : > { %7468 = vmatprep.subr.bf16.mxu1 %v7838_v19  ;;  %v4997_v19 = vadd.f32 %v4938_v45, %v4881_v51  ;;  %6280 = vmatprep.mubr.bf16.mxu0 %v5124_v11  ;;  %v7887_v48 = vld [vmem:[#allocation12 + $0x208] sm:$0xff]   ;;  %v7890_v51 = vld [vmem:[#allocation12 + $0x2c0] sm:$0xff]   ;;  %v4958_v63 = vrot.slane %v9144_v57, %v8614_v16  ;;  %v4954_v11 = vrot.slane %v9144_v57, %v8617_v17 }
 0x476   : > { %7447 = vmatpush3.bf16.msra.mxu0 %v7839_v3  ;;  %v5126_v3 = vpack.c.bf16 %v5110_v18, %v5094_v14  ;;  %vm5029_vm6 = vcmp.gt.f32.partialorder %v4997_v19, 0.0 }
 0x477   : > { %7469 = vmatpush3.bf16.msra.mxu1 %v7840_v4  ;;  %7448 = vmatprep.subr.bf16.mxu0 %v7841_v8  ;;  %v5091_v4 = vsel %vm5027_vm4, %v4995_v53, %v5059_v2  ;;  %v5107_v8 = vsel %vm5043_vm5, %v5011_v55, %v5075_v6  ;;  %v7892_v53 = vld [vmem:[#allocation12 + $0x280] sm:$0xff]   ;;  %v4946_v2 = vrot.slane %v9144_v57, %v8607_v13 }
 0x478   : > { %7470 = vmatprep.subr.bf16.mxu1 %v7842_v5  ;;  %v5013_v5 = vadd.f32 %v4938_v45, %v4897_v56  ;;  %6321 = vmatprep.mubr.bf16.mxu1 %v5126_v3  ;;  %v7884_v45 = vld [vmem:[#allocation12 + $0x290] sm:$0xff]   ;;  %v4884_v55 = vld [vmem:[#allocation2 + $0x88] sm:$0xff]  ;;  %v4900_v56 = vld [vmem:[#allocation2 + $0xd0] sm:$0xff]  ;;  %v5018_v3 = vadd.f32 %v4958_v63, %v4902_v24 }
 0x479   : > { %v4885_v6 = vld [vmem:[#allocation2 + $0xe8] sm:$0xff]  ;;  %v5000_v14 = vadd.f32 %v4950_v62, %v4884_v55  ;;  %v5016_v18 = vadd.f32 %v4950_v62, %v4900_v56  ;;  %v7911_v55 = vld [vmem:[#allocation12 + $0x318] sm:$0xff]   ;;  %v7914_v24 = vld [vmem:[#allocation12 + $0x3d0] sm:$0xff]  }
 0x47a   : > { %7449 = vmatpush3.bf16.msra.mxu0 %v7843_v7  ;;  %v5123_v7 = vpack.c.bf16 %v5107_v8, %v5091_v4  ;;  %vm5045_vm7 = vcmp.gt.f32.partialorder %v5013_v5, 0.0  ;;  %v7893_v4 = vld [vmem:[#allocation12 + $0x378] sm:$0xff]   ;;  %v5015_v8 = vadd.f32 %v4946_v2, %v4899_v1  ;;  %vm5050_vm11 = vcmp.gt.f32.partialorder %v5018_v3, 0.0  ;;  %v7915_v62 = vld [vmem:[#allocation12 + $0x310] sm:$0xff]   ;;  %v7918_v1 = vld [vmem:[#allocation12 + $0x3c8] sm:$0xff]  }
 0x47b   : > { %7471 = vmatpush3.bf16.msra.mxu1 %v7844_v9  ;;  %7450 = vmatprep.subr.bf16.mxu0 %v7845_v20  ;;  %v5061_v9 = vmul.f32 0.01, %v4997_v19  ;;  %v5077_v20 = vmul.f32 0.01, %v5013_v5  ;;  %vm5032_vm8 = vcmp.gt.f32.partialorder %v5000_v14, 0.0  ;;  %vm5048_vm9 = vcmp.gt.f32.partialorder %v5016_v18, 0.0 }
 0x47c   : > { %7472 = vmatprep.subr.bf16.mxu1 %v7846_v21  ;;  %v7864_v21 = vld [vmem:[#allocation12 + $0x2b8] sm:$0xff]   ;;  %v5064_v13 = vmul.f32 0.01, %v5000_v14  ;;  %v5082_v17 = vmul.f32 0.01, %v5018_v3  ;;  %vm5047_vm13 = vcmp.gt.f32.partialorder %v5015_v8, 0.0 }
 0x47d   : > { %v7912_v56 = vld [vmem:[#allocation12 + $0x398] sm:$0xff]  }
 0x47e   : > { %7451 = vmatpush3.bf16.msra.mxu0 %v7847_v22  ;;  %v7865_v22 = vld [vmem:[#allocation12 + $0x270] sm:$0xff]  }
 0x47f   : > { %7473 = vmatpush3.bf16.msra.mxu1 %v7848_v23  ;;  %7452 = vmatprep.subr.bf16.mxu0 %v7849_v25  ;;  %v5093_v23 = vsel %vm5029_vm6, %v4997_v19, %v5061_v9  ;;  %v5109_v25 = vsel %vm5045_vm7, %v5013_v5, %v5077_v20  ;;  %v5001_v5 = vadd.f32 %v4954_v11, %v4885_v6  ;;  %v5080_v9 = vmul.f32 0.01, %v5016_v18 }
 0x480   : > { %7474 = vmatprep.subr.bf16.mxu1 %v7850_v26  ;;  %v7866_v26 = vld [vmem:[#allocation12 + $0x2f0] sm:$0xff]   ;;  %v4966_v6 = vrot.slane %v9144_v57, %v4933_v29 }
 0x481   : > { %vm5033_vm14 = vcmp.gt.f32.partialorder %v5001_v5, 0.0  ;;  %v4906_v29 = vld [vmem:[#allocation2 + $0x98] sm:$0xff] }
 0x482   : > { %7453 = vmatpush3.bf16.msra.mxu0 %v7851_v27  ;;  %v5125_v27 = vpack.c.bf16 %v5109_v25, %v5093_v23 }
 0x483   : > { %7475 = vmatpush3.bf16.msra.mxu1 %v7852_v28  ;;  %7454 = vmatprep.subr.bf16.mxu0 %v7853_v54  ;;  %v7867_v28 = vld [vmem:[#allocation12 + $0x230] sm:$0xff]  }
 0x484   : > { %7476 = vmatprep.subr.bf16.mxu1 %v7854_v30  ;;  %v7868_v54 = vld [vmem:[#allocation12 + $0x2b0] sm:$0xff]   ;;  %v7869_v30 = vld [vmem:[#allocation12 + $0x268] sm:$0xff]  }
 0x486   : > { %7455 = vmatpush3.bf16.msra.mxu0 %v7855_v32  ;;  %v7870_v32 = vld [vmem:[#allocation12 + $0x2e8] sm:$0xff]  }
 0x487   : > { %7477 = vmatpush3.bf16.msra.mxu1 %v7856_v33  ;;  %7456 = vmatprep.subr.bf16.mxu0 %v7857_v34  ;;  %v7871_v33 = vld [vmem:[#allocation12 + $0x228] sm:$0xff]  }
 0x488   : > { %7478 = vmatprep.subr.bf16.mxu1 %v7858_v37  ;;  %v7872_v34 = vld [vmem:[#allocation12 + $0x2a8] sm:$0xff]   ;;  %v7874_v37 = vld [vmem:[#allocation12 + $0x2e0] sm:$0xff]  }
 0x48a   : > { %7457 = vmatpush3.bf16.msra.mxu0 %v7859_v39  ;;  %v7876_v39 = vld [vmem:[#allocation12 + $0x2a0] sm:$0xff]  }
 0x48b   : > { %7479 = vmatpush3.bf16.msra.mxu1 %v7860_v41  ;;  %7486 = vmatprep.subr.bf16.mxu0 %v7861_v58  ;;  %v7878_v41 = vld [vmem:[#allocation12 + $0x2d8] sm:$0xff]   ;;  %v4886_v58 = vld [vmem:[#allocation2 + $0xb8] sm:$0xff] }
 0x48c   : > { %7508 = vmatprep.subr.bf16.mxu1 %v7862_v0  ;;  %v4883_v0 = vld [vmem:[#allocation2 + $0x80] sm:$0xff]  ;;  %v5002_v19 = vadd.f32 %v4958_v63, %v4886_v58  ;;  %v7913_v58 = vld [vmem:[#allocation12 + $0x350] sm:$0xff]  }
 0x48d   : > { %6281 = vmatmul.mubr.bf16.vlgmr.msra.gmra.mxu0 %v5123_v7  ;;  %v4999_v15 = vadd.f32 %v4946_v2, %v4883_v0  ;;  %v7894_v7 = vld [vmem:[#allocation12 + $0x3f8] sm:$0xff]   ;;  %v7916_v63 = vld [vmem:[#allocation12 + $0x390] sm:$0xff]   ;;  %v7917_v0 = vld [vmem:[#allocation12 + $0x348] sm:$0xff]  }
 0x48e   : > { %7487 = vmatpush3.bf16.msra.mxu0 %v7863_v10  ;;  %6322 = vmatmul.mubr.bf16.vlgmr.msra.gmra.mxu1 %v5125_v27  ;;  %v4901_v10 = vld [vmem:[#allocation2 + $0x10] sm:$0xff]  ;;  %vm5034_vm10 = vcmp.gt.f32.partialorder %v5002_v19, 0.0  ;;  %v5066_v20 = vmul.f32 0.01, %v5002_v19 }
 0x48f   : > { %7488 = vmatprep.subr.bf16.mxu0 %v7865_v22  ;;  %7509 = vmatpush3.bf16.msra.mxu1 %v7864_v21  ;;  %v5017_v16 = vadd.f32 %v4954_v11, %v4901_v10  ;;  %v5096_v21 = vsel %vm5032_vm8, %v5000_v14, %v5064_v13  ;;  %v5112_v22 = vsel %vm5048_vm9, %v5016_v18, %v5080_v9  ;;  %vm5031_vm12 = vcmp.gt.f32.partialorder %v4999_v15, 0.0  ;;  %v7919_v2 = vld [vmem:[#allocation12 + $0x308] sm:$0xff]   ;;  %v7921_v14 = vld [vmem:[#allocation12 + $0x340] sm:$0xff]   ;;  %v4903_v9 = vld [vmem:[#allocation2 + $0xa0] sm:$0xff] }
 0x490   : > { %7510 = vmatprep.subr.bf16.mxu1 %v7866_v26  ;;  %v5128_v23 = vpack.c.bf16 %v5112_v22, %v5096_v21  ;;  %v5098_v25 = vsel %vm5034_vm10, %v5002_v19, %v5066_v20  ;;  %v5114_v26 = vsel %vm5050_vm11, %v5018_v3, %v5082_v17  ;;  %v5063_v27 = vmul.f32 0.01, %v4999_v15  ;;  %v7920_v10 = vld [vmem:[#allocation12 + $0x388] sm:$0xff]   ;;  %v7922_v19 = vld [vmem:[#allocation12 + $0x3c0] sm:$0xff]  }
 0x491   : > { %vm5049_vm15 = vcmp.gt.f32.partialorder %v5017_v16, 0.0  ;;  %v4974_v11 = vrot.slane %v9144_v57, %v4941_v31  ;;  %v4962_v18 = vrot.slane %v9144_v57, %v4929_v60  ;;  %v4888_v3 = vld [vmem:[#allocation2 + $0xf0] sm:$0xff]  ;;  %v4887_v31 = vld [vmem:[#allocation2 + $0x60] sm:$0xff]  ;;  %v4970_v20 = vrot.slane %v9144_v57, %v4937_v36  ;;  %v7924_v60 = vld [vmem:[#allocation12 + $0x380] sm:$0xff]  }
 0x492   : > { %7489 = vmatpush3.bf16.msra.mxu0 %v7867_v28  ;;  %v5130_v28 = vpack.c.bf16 %v5114_v26, %v5098_v25  ;;  %6362 = vmatprep.mubr.bf16.mxu0 %v5128_v23  ;;  %v4889_v25 = vld [vmem:[#allocation2 + $0x8] sm:$0xff] }
 0x493   : > { %7490 = vmatprep.subr.bf16.mxu0 %v7869_v30  ;;  %7511 = vmatpush3.bf16.msra.mxu1 %v7868_v54  ;;  %v5079_v54 = vmul.f32 0.01, %v5015_v8  ;;  %v5095_v30 = vsel %vm5031_vm12, %v4999_v15, %v5063_v27  ;;  %v5004_v15 = vadd.f32 %v4966_v6, %v4888_v3  ;;  %v5022_v13 = vadd.f32 %v4974_v11, %v4906_v29 }
 0x494   : > { %7512 = vmatprep.subr.bf16.mxu1 %v7870_v32  ;;  %v5065_v32 = vmul.f32 0.01, %v5001_v5  ;;  %6403 = vmatprep.mubr.bf16.mxu1 %v5130_v28  ;;  %v5003_v21 = vadd.f32 %v4962_v18, %v4887_v31  ;;  %v5019_v22 = vadd.f32 %v4962_v18, %v4903_v9 }
 0x495   : > { %vm5036_vm0 = vcmp.gt.f32.partialorder %v5004_v15, 0.0  ;;  %v5068_v17 = vmul.f32 0.01, %v5004_v15  ;;  %vm5054_vm3 = vcmp.gt.f32.partialorder %v5022_v13, 0.0  ;;  %v5086_v28 = vmul.f32 0.01, %v5022_v13 }
 0x496   : > { %7491 = vmatpush3.bf16.msra.mxu0 %v7871_v33  ;;  %v5081_v33 = vmul.f32 0.01, %v5017_v16  ;;  %vm5035_vm4 = vcmp.gt.f32.partialorder %v5003_v21, 0.0  ;;  %vm5051_vm5 = vcmp.gt.f32.partialorder %v5019_v22, 0.0  ;;  %v5067_v57 = vmul.f32 0.01, %v5003_v21 }
 0x497   : > { %7492 = vmatprep.subr.bf16.mxu0 %v7873_v35  ;;  %7513 = vmatpush3.bf16.msra.mxu1 %v7872_v34  ;;  %v7895_v34 = vld [vmem:[#allocation12 + $0x338] sm:$0xff]   ;;  %v5100_v26 = vsel %vm5036_vm0, %v5004_v15, %v5068_v17 }
 0x498   : > { %7514 = vmatprep.subr.bf16.mxu1 %v7874_v37  ;;  %v7896_v35 = vld [vmem:[#allocation12 + $0x3b8] sm:$0xff]   ;;  %v5111_v37 = vsel %vm5047_vm13, %v5015_v8, %v5079_v54  ;;  %v4890_v8 = vld [vmem:[#allocation2 + $0x78] sm:$0xff]  ;;  %v5083_v54 = vmul.f32 0.01, %v5019_v22 }
 0x49a   : > { %7493 = vmatpush3.bf16.msra.mxu0 %v7875_v38  ;;  %v5127_v38 = vpack.c.bf16 %v5111_v37, %v5095_v30  ;;  %v5099_v37 = vsel %vm5035_vm4, %v5003_v21, %v5067_v57 }
 0x49b   : > { %7494 = vmatprep.subr.bf16.mxu0 %v7877_v40  ;;  %7515 = vmatpush3.bf16.msra.mxu1 %v7876_v39  ;;  %v5097_v39 = vsel %vm5033_vm14, %v5001_v5, %v5065_v32  ;;  %v5113_v40 = vsel %vm5049_vm15, %v5017_v16, %v5081_v33  ;;  %v7923_v5 = vld [vmem:[#allocation12 + $0x300] sm:$0xff]   ;;  %v5118_v33 = vsel %vm5054_vm3, %v5022_v13, %v5086_v28 }
 0x49c   : > { %7516 = vmatprep.subr.bf16.mxu1 %v7878_v41  ;;  %v7897_v41 = vld [vmem:[#allocation12 + $0x370] sm:$0xff]  }
 0x49e   : > { %7495 = vmatpush3.bf16.msra.mxu0 %v7879_v42  ;;  %v5129_v42 = vpack.c.bf16 %v5113_v40, %v5097_v39  ;;  %v5021_v39 = vadd.f32 %v4970_v20, %v4905_v12 }
 0x49f   : > { %7496 = vmatprep.subr.bf16.mxu0 %v7881_v43  ;;  %7517 = vmatpush3.bf16.msra.mxu1 %v7880_v59  ;;  %v7898_v59 = vld [vmem:[#allocation12 + $0x3f0] sm:$0xff]  }
 0x4a0   : > { %7518 = vmatprep.subr.bf16.mxu1 %v7882_v61  ;;  %v7899_v43 = vld [vmem:[#allocation12 + $0x330] sm:$0xff]   ;;  %vm5053_vm7 = vcmp.gt.f32.partialorder %v5021_v39, 0.0 }
 0x4a1   : > { %v7900_v61 = vld [vmem:[#allocation12 + $0x3b0] sm:$0xff]  }
 0x4a2   : > { %7497 = vmatpush3.bf16.msra.mxu0 %v7883_v44  ;;  %v7901_v44 = vld [vmem:[#allocation12 + $0x368] sm:$0xff]  }
 0x4a3   : > { %7498 = vmatprep.subr.bf16.mxu0 %v7885_v46  ;;  %7519 = vmatpush3.bf16.msra.mxu1 %v7884_v45  ;;  %v7902_v45 = vld [vmem:[#allocation12 + $0x3e8] sm:$0xff]  }
 0x4a4   : > { %7520 = vmatprep.subr.bf16.mxu1 %v7886_v47  ;;  %v7903_v46 = vld [vmem:[#allocation12 + $0x328] sm:$0xff]  }
 0x4a5   : > { %v7904_v47 = vld [vmem:[#allocation12 + $0x3a8] sm:$0xff]  }
 0x4a6   : > { %7499 = vmatpush3.bf16.msra.mxu0 %v7887_v48  ;;  %v7905_v48 = vld [vmem:[#allocation12 + $0x360] sm:$0xff]  }
 0x4a7   : > { %7500 = vmatprep.subr.bf16.mxu0 %v7889_v50  ;;  %7521 = vmatpush3.bf16.msra.mxu1 %v7888_v49  ;;  %v7906_v49 = vld [vmem:[#allocation12 + $0x3e0] sm:$0xff]  }
 0x4a8   : > { %7522 = vmatprep.subr.bf16.mxu1 %v7890_v51  ;;  %v7907_v50 = vld [vmem:[#allocation12 + $0x320] sm:$0xff]  }
 0x4a9   : > { %v7908_v51 = vld [vmem:[#allocation12 + $0x3a0] sm:$0xff]  }
 0x4aa   : > { %7501 = vmatpush3.bf16.msra.mxu0 %v7891_v52  ;;  %v7909_v52 = vld [vmem:[#allocation12 + $0x358] sm:$0xff]  }
 0x4ab   : > { %7523 = vmatpush3.bf16.msra.mxu1 %v7892_v53  ;;  %7530 = vmatprep.subr.bf16.mxu0 %v7893_v4  ;;  %v7910_v53 = vld [vmem:[#allocation12 + $0x3d8] sm:$0xff]   ;;  %v4904_v4 = vld [vmem:[#allocation2 + $0xf8] sm:$0xff] }
 0x4ac   : > { %7552 = vmatprep.subr.bf16.mxu1 %v7894_v7  ;;  %v5020_v16 = vadd.f32 %v4966_v6, %v4904_v4  ;;  %v5006_v7 = vadd.f32 %v4974_v11, %v4890_v8 }
 0x4ad   : > { %6363 = vmatmul.mubr.bf16.vlgmr.msra.gmra.mxu0 %v5127_v38  ;;  %v5115_v38 = vsel %vm5051_vm5, %v5019_v22, %v5083_v54 }
 0x4ae   : > { %6404 = vmatmul.mubr.bf16.vlgmr.msra.gmra.mxu1 %v5129_v42  ;;  %7531 = vmatpush3.bf16.msra.mxu0 %v7895_v34  ;;  %vm5052_vm1 = vcmp.gt.f32.partialorder %v5020_v16, 0.0  ;;  %v5084_v23 = vmul.f32 0.01, %v5020_v16  ;;  %vm5038_vm2 = vcmp.gt.f32.partialorder %v5006_v7, 0.0  ;;  %v5070_v27 = vmul.f32 0.01, %v5006_v7 }
 0x4af   : > { %7553 = vmatpush3.bf16.msra.mxu1 %v7896_v35  ;;  %7532 = vmatprep.subr.bf16.mxu0 %v7897_v41  ;;  %v5005_v34 = vadd.f32 %v4970_v20, %v4889_v25  ;;  %v5131_v40 = vpack.c.bf16 %v5115_v38, %v5099_v37  ;;  %v5085_v42 = vmul.f32 0.01, %v5021_v39 }
 0x4b0   : > { %7554 = vmatprep.subr.bf16.mxu1 %v7898_v59  ;;  %v5116_v36 = vsel %vm5052_vm1, %v5020_v16, %v5084_v23  ;;  %v5102_v32 = vsel %vm5038_vm2, %v5006_v7, %v5070_v27 }
 0x4b1   : > { %v5132_v30 = vpack.c.bf16 %v5116_v36, %v5100_v26  ;;  %v5134_v35 = vpack.c.bf16 %v5118_v33, %v5102_v32  ;;  %vm5037_vm6 = vcmp.gt.f32.partialorder %v5005_v34, 0.0  ;;  %v5069_v41 = vmul.f32 0.01, %v5005_v34 }
 0x4b2   : > { %7533 = vmatpush3.bf16.msra.mxu0 %v7899_v43  ;;  %v5117_v43 = vsel %vm5053_vm7, %v5021_v39, %v5085_v42 }
 0x4b3   : > { %7555 = vmatpush3.bf16.msra.mxu1 %v7900_v61  ;;  %7534 = vmatprep.subr.bf16.mxu0 %v7901_v44  ;;  %v5101_v59 = vsel %vm5037_vm6, %v5005_v34, %v5069_v41 }
 0x4b4   : > { %7556 = vmatprep.subr.bf16.mxu1 %v7902_v45  ;;  %6444 = vmatprep.mubr.bf16.mxu0 %v5132_v30  ;;  %v5133_v61 = vpack.c.bf16 %v5117_v43, %v5101_v59 }
 0x4b5   : > { %6485 = vmatprep.mubr.bf16.mxu1 %v5134_v35 }
 0x4b6   : > { %7535 = vmatpush3.bf16.msra.mxu0 %v7903_v46 }
 0x4b7   : > { %7557 = vmatpush3.bf16.msra.mxu1 %v7904_v47  ;;  %7536 = vmatprep.subr.bf16.mxu0 %v7905_v48 }
 0x4b8   : > { %7558 = vmatprep.subr.bf16.mxu1 %v7906_v49 }
 0x4ba   : > { %7537 = vmatpush3.bf16.msra.mxu0 %v7907_v50 }
 0x4bb   : > { %7559 = vmatpush3.bf16.msra.mxu1 %v7908_v51  ;;  %7538 = vmatprep.subr.bf16.mxu0 %v7909_v52 }
 0x4bc   : > { %7560 = vmatprep.subr.bf16.mxu1 %v7910_v53 }
 0x4be   : > { %7539 = vmatpush3.bf16.msra.mxu0 %v7911_v55 }
 0x4bf   : > { %7561 = vmatpush3.bf16.msra.mxu1 %v7912_v56  ;;  %7540 = vmatprep.subr.bf16.mxu0 %v7913_v58 }
 0x4c0   : > { %7562 = vmatprep.subr.bf16.mxu1 %v7914_v24 }
 0x4c2   : > { %7541 = vmatpush3.bf16.msra.mxu0 %v7915_v62 }
 0x4c3   : > { %7563 = vmatpush3.bf16.msra.mxu1 %v7916_v63  ;;  %7542 = vmatprep.subr.bf16.mxu0 %v7917_v0  ;;  %v7261_v63 = vld [vmem:[#allocation14] ss:$0 sm:$0xff] }
 0x4c4   : > { %7564 = vmatprep.subr.bf16.mxu1 %v7918_v1 }
 0x4c6   : > { %7543 = vmatpush3.bf16.msra.mxu0 %v7919_v2 }
 0x4c7   : > { %7565 = vmatpush3.bf16.msra.mxu1 %v7920_v10  ;;  %7544 = vmatprep.subr.bf16.mxu0 %v7921_v14 }
 0x4c8   : > { %7566 = vmatprep.subr.bf16.mxu1 %v7922_v19 }
 0x4ca   : > { %7545 = vmatpush3.bf16.msra.mxu0 %v7923_v5 }
 0x4cb   : > { %7567 = vmatpush3.bf16.msra.mxu1 %v7924_v60 }
 0x4cd   : > { %6445 = vmatmul.mubr.bf16.vlgmr.msra.gmra.mxu0 %v5131_v40 }
 0x4ce   : > { %6486 = vmatmul.mubr.bf16.vlgmr.msra.gmra.mxu1 %v5133_v61 }
 0x52d   : > { %v7414_v44 = vpop.f32.mrf.mxu0 }
 0x52e   : > { %v7436_v46 = vpop.f32.mrf.mxu1 }
 0x52f   : > { %v7415_v45 = vpop.f32.mrf.mxu0 }
 0x530   : > { %v7437_v48 = vpop.f32.mrf.mxu1  ;;  %v7416_v62 = vadd.f32 %v7415_v45, %v7414_v44 }
 0x531   : > { %v7417_v47 = vpop.f32.mrf.mxu0  ;;  %v7438_v6 = vadd.f32 %v7437_v48, %v7436_v46 }
 0x532   : > { %v7439_v50 = vpop.f32.mrf.mxu1  ;;  %v6201_v2 = vadd.f32 %v7416_v62, %v7261_v63 }
 0x533   : > { %v7418_v49 = vpop.f32.mrf.mxu0 }
 0x534   : > { %v7440_v52 = vpop.f32.mrf.mxu1  ;;  %v7419_v10 = vadd.f32 %v7418_v49, %v7417_v47  ;;  %v6242_v3 = vadd.f32 %v7438_v6, %v6201_v2 }
 0x535   : > { %v7441_v8 = vadd.f32 %v7440_v52, %v7439_v50 }
 0x536   : > { %v6204_v4 = vadd.f32 %v7419_v10, %v7261_v63 }
 0x538   : > { %v6245_v13 = vadd.f32 %v7441_v8, %v6204_v4 }
 0x54d   : > { %v7458_v51 = vpop.f32.mrf.mxu0 }
 0x54e   : > { %v7480_v55 = vpop.f32.mrf.mxu1 }
 0x54f   : > { %v7459_v53 = vpop.f32.mrf.mxu0 }
 0x550   : > { %v7481_v58 = vpop.f32.mrf.mxu1  ;;  %v7460_v18 = vadd.f32 %v7459_v53, %v7458_v51 }
 0x551   : > { %v7461_v56 = vpop.f32.mrf.mxu0  ;;  %v7482_v5 = vadd.f32 %v7481_v58, %v7480_v55 }
 0x552   : > { %v7483_v0 = vpop.f32.mrf.mxu1  ;;  %v6283_v29 = vadd.f32 %v7460_v18, %v6242_v3 }
 0x553   : > { %v7462_v24 = vpop.f32.mrf.mxu0 }
 0x554   : > { %v7484_v11 = vpop.f32.mrf.mxu1  ;;  %v7463_v16 = vadd.f32 %v7462_v24, %v7461_v56  ;;  %v6324_v20 = vadd.f32 %v7482_v5, %v6283_v29 }
 0x555   : > { %v7485_v21 = vadd.f32 %v7484_v11, %v7483_v0 }
 0x556   : > { %v6286_v60 = vadd.f32 %v7463_v16, %v6245_v13 }
 0x558   : > { %v6327_v27 = vadd.f32 %v7485_v21, %v6286_v60 }
 0x56d   : > { %v7502_v1 = vpop.f32.mrf.mxu0 }
 0x56e   : > { %v7524_v19 = vpop.f32.mrf.mxu1 }
 0x56f   : > { %v7503_v14 = vpop.f32.mrf.mxu0 }
 0x570   : > { %v7525_v7 = vpop.f32.mrf.mxu1  ;;  %v7504_v31 = vadd.f32 %v7503_v14, %v7502_v1 }
 0x571   : > { %v7505_v15 = vpop.f32.mrf.mxu0  ;;  %v7526_v23 = vadd.f32 %v7525_v7, %v7524_v19 }
 0x572   : > { %v7527_v17 = vpop.f32.mrf.mxu1  ;;  %v6365_v22 = vadd.f32 %v7504_v31, %v6324_v20 }
 0x573   : > { %v7506_v9 = vpop.f32.mrf.mxu0 }
 0x574   : > { %v7507_v25 = vadd.f32 %v7506_v9, %v7505_v15  ;;  %v7528_v28 = vpop.f32.mrf.mxu1  ;;  %v6406_v36 = vadd.f32 %v7526_v23, %v6365_v22 }
 0x575   : > { %v7529_v33 = vadd.f32 %v7528_v28, %v7527_v17 }
 0x576   : > { %v6368_v57 = vadd.f32 %v7507_v25, %v6327_v27 }
 0x578   : > { %v6409_v38 = vadd.f32 %v7529_v33, %v6368_v57 }
 0x58d   : > { %v7546_v26 = vpop.f32.mrf.mxu0 }
 0x58e   : > { %v7568_v30 = vpop.f32.mrf.mxu1 }
 0x58f   : > { %v7547_v12 = vpop.f32.mrf.mxu0 }
 0x590   : > { %v7548_v54 = vadd.f32 %v7547_v12, %v7546_v26  ;;  %v7569_v35 = vpop.f32.mrf.mxu1 }
 0x591   : > { %v7549_v32 = vpop.f32.mrf.mxu0  ;;  %v7570_v39 = vadd.f32 %v7569_v35, %v7568_v30 }
 0x592   : > { %v6447_v34 = vadd.f32 %v7548_v54, %v6406_v36  ;;  %v7571_v41 = vpop.f32.mrf.mxu1 }
 0x593   : > { %v7550_v37 = vpop.f32.mrf.mxu0 }
 0x594   : > { %v7551_v40 = vadd.f32 %v7550_v37, %v7549_v32  ;;  %v6488_v42 = vadd.f32 %v7570_v39, %v6447_v34  ;;  %v7572_v43 = vpop.f32.mrf.mxu1 }
 0x595   : > { %v7573_v61 = vadd.f32 %v7572_v43, %v7571_v41 }
 0x596   : > { %v6450_v59 = vadd.f32 %v7551_v40, %v6409_v38  ;;  %7925 = vtanh.f32 %v6488_v42 }
 0x598   : > { %v6491_v44 = vadd.f32 %v7573_v61, %v6450_v59 }
 0x59a   : > { %7927 = vtanh.f32 %v6491_v44 }
 0x5a3   : > { %v7926_v45 = vpop.eup %7925 }
 0x5a4   : > { %6496 = vst [vmem:[#allocation15] sm:$0xff] %v7926_v45 }
 0x5a7   : > { %v7928_v46 = vpop.eup %7927 }
 0x5a8   : > { %6497 = vst [vmem:[#allocation15 + $0x8] sm:$0xff] %v7928_v46 }
 0x5a9 PF: > { %p7632_p13 = scmp.eq.s32.totalorder %s8301_s30, 1  ;;  %s8229_s27 = smov [#allocation15]  }
 0x5aa   : > { %s6507_s8 = sshll.u32 %s8229_s27, 4  ;;  %s6508_s8 = int_to_ptr.vmem [resolvable:$true] %s6507_s8 }
 0x5ab   : > { %s8117_s0 = scalar_lea.vmem %s6508_s8, 256  ;;  %p8124_p9 = scmp.lt.s32.totalorder %s6508_s8, %s6508_s8 }
 0x5ac   : > { %p8118_p3 = scmp.ne.s32.totalorder %s6508_s8, %s8117_s0  ;;  %p8125_p2 = scmp.lt.s32.totalorder %s8117_s0, %s8117_s0 }
 0x5ae   : > { %p8119_p8 = pnand %p8118_p3, %p7632_p13  ;;  %p8126_p10 = por %p8125_p2, %p8124_p9 }
 0x5b0   : > { %p8120_p6 = pneg %p8119_p8 }
 0x5b2   : > { %p8127_p1 = pnand %p8126_p10, %p8120_p6 }
 0x5b4   : > { %8130 = shalt.err (!%p8127_p1)
}
 0x5b5   : > { %s8230_s20 = smov 128   ;;  %s8231_s5 = smov 8  }
 0x5b6   : > { %7597 = dma.vmem_to_hbm [thread:$0]  (%p7632_p13), %s6508_s8, 256, %s9204_s7, [#allocation5], %s8230_s20, %s8230_s20, %s8231_s5  }
 0x5b7   : > { %8186 = dma.done.wait (%p7632_p13), [#allocation5], 256  }
 0x5b8   : > { %8188 = vsyncadd (%p7632_p13), [#allocation5], 4294967040 }
 0x5b9 PF: > { %s26_s29 = sadd.s32 1, %s8211_s29   ;;  %s9232_s24 = smov %s8195_s25 }
 0x5ba   : > { %p23_p0 = scmp.ge.s32.totalorder %s26_s29, 4   ;;  %s9233_s25 = smov %s8199_s26 }
 0x5bb   : > { %s9234_s26 = smov %s8362_s16  ;;  %s9235_s27 = smov %s8207_s28 }
 0x5bc   : > { %s9236_s28 = smov %s9238_s23  ;;  %25 = sbr.rel (!%p23_p0) target bundleno = 14 (0xe), region = 136 }
 0x5c1   :  { %6523 = vsyncpa [#allocation4], 1 }
 0x5c2   :  { %6525 = vsyncpa [#allocation4 + $0x1], 1 }
 0x5c3   :  { %6526 = vsyncpa [#allocation7], 1 }
 0x5c4   :  { %6528 = vsyncpa [#allocation7 + $0x1], 1 }
 0x5c5   :  { %6529 = vsyncpa [#allocation10], 1 }
 0x5c6   :  { %6531 = vsyncpa [#allocation10 + $0x1], 1 }
 0x5c7   :  { %6532 = vsyncpa [#allocation13], 1 }
 0x5c8   :  { %6533 = vsyncpa [#allocation5], 1 }
 0x5c9   :  { %6535 = vsyncpa [#allocation5 + $0x1], 1 }

</bundles_post_ra>
